<compile_context>
chip_gen: v7x
topology: tpu7x:2x2x1
jax: 0.10.0
libtpu: 0.0.40
codegen_flags: <defaults>
</compile_context>

<pallas_src>
import functools

import jax
import jax.numpy as jnp
from jax.experimental import pallas as pl
from jax.experimental.pallas import tpu as pltpu


# ----------------------------------------------------------------------------
# Weight-slab layout (static Python, shared by packer and kernel)
# ----------------------------------------------------------------------------
def _round8(n):
    return -(-n // 8) * 8


def make_weight_layout(hidden, n_layers):
    """Every segment starts on an 8-row (sublane-tile) aligned offset."""
    layout = {}
    off = 0

    def add(name, rows):
        nonlocal off
        layout[name] = off
        off += _round8(rows)

    add("emb_w", 3)
    add("emb_b", 1)
    for l in range(n_layers):
        add(f"w1a_{l}", hidden)   # phi_e Linear(2H+1,H): rows for h_i
        add(f"w1b_{l}", hidden)   #                        rows for h_j
        add(f"w1n_{l}", 1)        #                        row for |dr|^2
        add(f"b1_{l}", 1)
        add(f"w2_{l}", hidden)
        add(f"b2_{l}", 1)
        add(f"wr1_{l}", hidden)   # phi_r
        add(f"br1_{l}", 1)
        add(f"wr2t_{l}", 1)
        add(f"br2_{l}", 1)
        add(f"wh1a_{l}", hidden)  # phi_h Linear(2H,H): rows for h
        add(f"wh1b_{l}", hidden)  #                      rows for m
        add(f"bh1_{l}", 1)
        add(f"wh2_{l}", hidden)
        add(f"bh2_{l}", 1)
    add("mw1", hidden)            # final MLP
    add("mb1", 1)
    add("mw2", hidden)
    add("mb2", 1)
    add("mw3t", 1)
    add("mb3", 1)
    return layout, off


def pack_params(params, hidden, n_layers=3):
    """Pack all weights/biases into one (rows, hidden) f32 slab."""
    layout, total = make_weight_layout(hidden, n_layers)
    slab = jnp.zeros((total, hidden), jnp.float32)

    def put(slab, name, arr):
        arr = jnp.asarray(arr, jnp.float32)
        if arr.ndim == 1:
            arr = arr[None, :]
        if arr.shape[-1] != hidden:           # scalar biases -> broadcast row
            arr = jnp.broadcast_to(arr[:, 0:1], (arr.shape[0], hidden))
        off = layout[name]
        return slab.at[off:off + arr.shape[0], :].set(arr)

    H = hidden
    slab = put(slab, "emb_w", params["embed_w"])
    slab = put(slab, "emb_b", params["embed_b"])
    for l, lp in enumerate(params["layers"]):
        slab = put(slab, f"w1a_{l}", lp["w1"][:H])
        slab = put(slab, f"w1b_{l}", lp["w1"][H:2 * H])
        slab = put(slab, f"w1n_{l}", lp["w1"][2 * H:2 * H + 1])
        slab = put(slab, f"b1_{l}", lp["b1"])
        slab = put(slab, f"w2_{l}", lp["w2"])
        slab = put(slab, f"b2_{l}", lp["b2"])
        slab = put(slab, f"wr1_{l}", lp["wr1"])
        slab = put(slab, f"br1_{l}", lp["br1"])
        slab = put(slab, f"wr2t_{l}", lp["wr2"].T)
        slab = put(slab, f"br2_{l}", lp["br2"])
        slab = put(slab, f"wh1a_{l}", lp["wh1"][:H])
        slab = put(slab, f"wh1b_{l}", lp["wh1"][H:2 * H])
        slab = put(slab, f"bh1_{l}", lp["bh1"])
        slab = put(slab, f"wh2_{l}", lp["wh2"])
        slab = put(slab, f"bh2_{l}", lp["bh2"])
    m = params["mlp"]
    slab = put(slab, "mw1", m["w1"])
    slab = put(slab, "mb1", m["b1"])
    slab = put(slab, "mw2", m["w2"])
    slab = put(slab, "mb2", m["b2"])
    slab = put(slab, "mw3t", m["w3"].T)
    slab = put(slab, "mb3", m["b3"])
    return slab


# ----------------------------------------------------------------------------
# Fused Pallas kernel
# ----------------------------------------------------------------------------
def _silu(x):
    return x * jax.nn.sigmoid(x)


def egnn_fused_kernel(nodes_ref, idx_ref, contrib_ref, w_ref, e_ref, *,
                      layout, hidden, n_layers):
    n = nodes_ref.shape[0]              # atoms
    n_edges = idx_ref.shape[1]          # padded edges per layer
    n_out = e_ref.shape[1]              # even energy segments
    H = hidden
    f32 = jnp.float32

    def W(name, rows=None):             # static slab view -> (rows, H)
        rows = H if rows is None else rows
        off = layout[name]
        return w_ref[off:off + rows, :]

    def vec(name):                      # (1, H) bias / row-vector
        return W(name, 1)

    def scalar(name):                   # (1, 1) scalar bias
        return W(name, 1)[:, 0:1]

    # ---- embedding: h = [1, xn, xn^2] @ W_e + b_e, xn = x / max(x) ----
    x = nodes_ref[:, 0:1]                                  # (N, 1)
    r = nodes_ref[:, 1:4]                                  # (N, 3)
    xm = jnp.max(x, axis=0, keepdims=True)                 # (1, 1)
    xn = x / xm                                            # exact divide
    ew = W("emb_w", 3)                                     # (3, H)
    h = ew[0:1, :] + xn * ew[1:2, :] + (xn * xn) * ew[2:3, :] + vec("emb_b")

    # iota reused by every layer's one-hot incidence construction
    edge_iota = jax.lax.broadcasted_iota(jnp.int32, (n_edges, n), 1)  # (E, N)
    cdims = (((0,), (0,)), ((), ()))    # contract the edge axis (scatter-add)

    for l in range(n_layers):
        src = idx_ref[2 * l]                               # (E, 1) source j
        dst = idx_ref[2 * l + 1]                           # (E, 1) target i

        # one-hot gather matrices; sentinel index n -> all-zero rows
        g_src = jnp.where(edge_iota == src, 1.0, 0.0)      # (E, N)
        g_dst = jnp.where(edge_iota == dst, 1.0, 0.0)      # (E, N)

        h_j = jnp.dot(g_src, h, preferred_element_type=f32)    # (E, H)
        h_i = jnp.dot(g_dst, h, preferred_element_type=f32)    # (E, H)
        # dr = r_j - r_i in a single MXU pass
        dr = jnp.dot(g_src - g_dst, r, preferred_element_type=f32)  # (E, 3)
        norm_dr = jnp.sum(dr * dr, axis=1, keepdims=True)           # (E, 1)

        # phi_e on cat([h_i, h_j, |dr|^2]) -- split weights, no concat
        z1 = _silu(jnp.dot(h_i, W(f"w1a_{l}"), preferred_element_type=f32)
                   + jnp.dot(h_j, W(f"w1b_{l}"), preferred_element_type=f32)
                   + norm_dr * vec(f"w1n_{l}") + vec(f"b1_{l}"))
        mij = _silu(jnp.dot(z1, W(f"w2_{l}"), preferred_element_type=f32)
                    + vec(f"b2_{l}"))                       # (E, H)

        # phi_r: Linear -> SiLU -> Linear(H,1) -> Tanh (H->1 on VPU/XLU)
        u1 = _silu(jnp.dot(mij, W(f"wr1_{l}"), preferred_element_type=f32)
                   + vec(f"br1_{l}"))
        scal = jnp.tanh(jnp.sum(u1 * vec(f"wr2t_{l}"), axis=1, keepdims=True)
                        + scalar(f"br2_{l}"))               # (E, 1)
        delr = dr * scal                                    # (E, 3)

        # scatter-add onto target nodes: reuse g_dst, contract the edge axis
        # (no (N, E) one-hot is ever materialized)
        m_agg = jax.lax.dot_general(g_dst, mij, cdims,
                                    preferred_element_type=f32)   # (N, H)
        dr_agg = jax.lax.dot_general(g_dst, delr, cdims,
                                     preferred_element_type=f32)  # (N, 3)
        r = r + dr_agg

        # phi_h on cat([h, m]) -- split weights, no concat
        z = _silu(jnp.dot(h, W(f"wh1a_{l}"), preferred_element_type=f32)
                  + jnp.dot(m_agg, W(f"wh1b_{l}"), preferred_element_type=f32)
                  + vec(f"bh1_{l}"))
        h_prime = (jnp.dot(z, W(f"wh2_{l}"), preferred_element_type=f32)
                   + vec(f"bh2_{l}"))

        # update(): nodes with any incoming message take h_prime
        msum = jnp.sum(jnp.abs(m_agg), axis=1, keepdims=True)
        h1 = jnp.where(msum > 0.0, h_prime, h)
        # forward(): rows of h1 that are all-zero get the original h added
        h1sum = jnp.sum(jnp.abs(h1), axis=1, keepdims=True)
        h = jnp.where(h1sum == 0.0, h1 + h, h1)

    # ---- final MLP: Linear -> SiLU -> Linear -> SiLU -> Linear(H, 1) ----
    z1 = _silu(jnp.dot(h, W("mw1"), preferred_element_type=f32) + vec("mb1"))
    z2 = _silu(jnp.dot(z1, W("mw2"), preferred_element_type=f32) + vec("mb2"))
    e_local = (jnp.sum(z2 * vec("mw3t"), axis=1, keepdims=True)
               + scalar("mb3"))                             # (N, 1)

    # scatter(E_local, contributions)[::2], emitted lane-dense as (1, n_out)
    seg_iota = jax.lax.broadcasted_iota(jnp.int32, (n, n_out), 1) * 2
    sel = jnp.where(seg_iota == contrib_ref[...], 1.0, 0.0)       # (N, n_out)
    e_ref[...] = jnp.sum(e_local * sel, axis=0, keepdims=True)


# ----------------------------------------------------------------------------
# Wrapper: graph-data packing + single pallas_call
# ----------------------------------------------------------------------------
def _vmem_spec():
    return pl.BlockSpec(memory_space=pltpu.MemorySpace.VMEM)


def _pad_edges(edge_index, e_max, n_nodes):
    """Pad (2, E) edge indices with sentinel n_nodes (zero one-hot rows)."""
    edge_index = edge_index.astype(jnp.int32)
    pad = e_max - edge_index.shape[1]
    if pad > 0:
        sentinel = jnp.full((2, pad), n_nodes, dtype=jnp.int32)
        edge_index = jnp.concatenate([edge_index, sentinel], axis=1)
    return edge_index


@functools.partial(jax.jit, static_argnames=("num_energy_segments",))
def egnn_forward(w_slab, x, r, edge_index0, edge_index1, edge_index2,
                 contributions, num_energy_segments):
    n = x.shape[0]
    hidden = w_slab.shape[1]
    n_layers = 3
    layout, _ = make_weight_layout(hidden, n_layers)

    # layer application order matches the nn.Module forward:
    #   conv0 <- edge_index2, conv1 <- edge_index1, conv2 <- edge_index0
    eis = [edge_index2, edge_index1, edge_index0]
    e_max = max(int(e.shape[1]) for e in eis)
    e_max = -(-e_max // 8) * 8                        # sublane-align edges
    idx = jnp.concatenate(
        [_pad_edges(e, e_max, n).reshape(2, e_max, 1) for e in eis], axis=0)

    nodes = jnp.concatenate(
        [x.astype(jnp.float32).reshape(n, 1), r.astype(jnp.float32)], axis=1)
    contrib = contributions.astype(jnp.int32).reshape(n, 1)

    n_out = (num_energy_segments + 1) // 2            # E[::2]

    kernel = functools.partial(egnn_fused_kernel, layout=layout,
                               hidden=hidden, n_layers=n_layers)
    return pl.pallas_call(
        kernel,
        out_shape=jax.ShapeDtypeStruct((1, n_out), jnp.float32),
        in_specs=[_vmem_spec()] * 4,
        out_specs=_vmem_spec(),
    )(nodes, idx, contrib, w_slab)


# ----------------------------------------------------------------------------
# Deterministic parameter construction (matches the nn.Module shapes)
# ----------------------------------------------------------------------------
def _linear(key, fan_in, fan_out):
    kw, kb = jax.random.split(key)
    lim = 1.0 / jnp.sqrt(jnp.float32(fan_in))
    w = jax.random.uniform(kw, (fan_in, fan_out), jnp.float32, -lim, lim)
    b = jax.random.uniform(kb, (1, fan_out), jnp.float32, -lim, lim)
    return w, b


def make_egcl_params(key, hidden):
    k1, k2, k3, k4, k5, k6 = jax.random.split(key, 6)
    w1, b1 = _linear(k1, 2 * hidden + 1, hidden)    # phi_e layer 1
    w2, b2 = _linear(k2, hidden, hidden)            # phi_e layer 2
    wr1, br1 = _linear(k3, hidden, hidden)          # phi_r layer 1
    wr2, br2 = _linear(k4, hidden, 1)               # phi_r layer 2
    wh1, bh1 = _linear(k5, 2 * hidden, hidden)      # phi_h layer 1
    wh2, bh2 = _linear(k6, hidden, hidden)          # phi_h layer 2
    return dict(w1=w1, b1=b1, w2=w2, b2=b2, wr1=wr1, br1=br1,
                wr2=wr2, br2=br2, wh1=wh1, bh1=bh1, wh2=wh2, bh2=bh2)


def make_params(key, in_node_fl=3, hidden=32, n_layers=3):
    keys = jax.random.split(key, n_layers + 4)
    embed_w, embed_b = _linear(keys[0], in_node_fl, hidden)
    layers = [make_egcl_params(keys[1 + i], hidden) for i in range(n_layers)]
    w1, b1 = _linear(keys[n_layers + 1], hidden, hidden)
    w2, b2 = _linear(keys[n_layers + 2], hidden, hidden)
    w3, b3 = _linear(keys[n_layers + 3], hidden, 1)
    return dict(embed_w=embed_w, embed_b=embed_b, layers=layers,
                mlp=dict(w1=w1, b1=b1, w2=w2, b2=b2, w3=w3, b3=b3))


# ----------------------------------------------------------------------------
# Example run
# ----------------------------------------------------------------------------
if __name__ == "__main__":
    key = jax.random.PRNGKey(0)
    kp, kx, kr = jax.random.split(key, 3)

    N, H = 8, 32
    params = make_params(kp, in_node_fl=3, hidden=H)
    w_slab = pack_params(params, hidden=H, n_layers=3)   # packed once

    # atomic-number-like positive features and 3D positions
    x = jax.random.randint(kx, (N,), 1, 10).astype(jnp.float32)
    r = jax.random.normal(kr, (N, 3), jnp.float32)

    # complete graph without self loops, reused for the three cutoff edge sets
    edges = [(j, i) for i in range(N) for j in range(N) if i != j]
    src = jnp.array([e[0] for e in edges], dtype=jnp.int32)
    dst = jnp.array([e[1] for e in edges], dtype=jnp.int32)
    edge_index = jnp.stack([src, dst])          # (2, E) with E = 56

    # per-atom energy contribution index (even segments selected by E[::2])
    contributions = jnp.concatenate(
        [jnp.zeros(N // 2, jnp.int32), jnp.ones(N - N // 2, jnp.int32)])
    num_energy_segments = 2

    out = egnn_forward(w_slab, x, r,
                       edge_index, edge_index, edge_index,
                       contributions, num_energy_segments)
    jax.block_until_ready(out)
    assert out.shape == (1, 1)
    print("KERNEL_OK")
</pallas_src>

<mosaic_0001>
module attributes {stable_mosaic.version = 11 : i64} {
  func.func @egnn_fused_kernel(%arg0: memref<8x4xf32, #tpu.memory_space<vmem>>, %arg1: memref<6x56x1xi32, #tpu.memory_space<vmem>>, %arg2: memref<8x1xi32, #tpu.memory_space<vmem>>, %arg3: memref<976x32xf32, #tpu.memory_space<vmem>>, %arg4: memref<1x1xf32, #tpu.memory_space<vmem>>) attributes {dimension_semantics = [], scalar_prefetch = 0 : i64, scratch_operands = 0 : i64, tpu.core_type = #tpu.core_type<tc>} {
    %c0 = arith.constant 0 : index
    %c0_0 = arith.constant 0 : index
    %0 = vector.load %arg0[%c0, %c0_0] : memref<8x4xf32, #tpu.memory_space<vmem>>, vector<8x1xf32>
    %c0_1 = arith.constant 0 : index
    %c1 = arith.constant 1 : index
    %1 = vector.load %arg0[%c0_1, %c1] : memref<8x4xf32, #tpu.memory_space<vmem>>, vector<8x3xf32>
    %cst = arith.constant dense<0xFF800000> : vector<1xf32>
    %2 = vector.multi_reduction <maximumf>, %0, %cst [0] : vector<8x1xf32> to vector<1xf32>
    %3 = vector.shape_cast %2 : vector<1xf32> to vector<1x1xf32>
    %4 = vector.broadcast %3 : vector<1x1xf32> to vector<8x1xf32>
    %5 = arith.divf %0, %4 : vector<8x1xf32>
    %c0_2 = arith.constant 0 : index
    %c0_3 = arith.constant 0 : index
    %6 = vector.load %arg3[%c0_2, %c0_3] : memref<976x32xf32, #tpu.memory_space<vmem>>, vector<3x32xf32>
    %7 = vector.extract_strided_slice %6 {offsets = [0, 0], sizes = [1, 32], strides = [1, 1]} : vector<3x32xf32> to vector<1x32xf32>
    %8 = vector.extract_strided_slice %6 {offsets = [1, 0], sizes = [1, 32], strides = [1, 1]} : vector<3x32xf32> to vector<1x32xf32>
    %9 = vector.broadcast %5 : vector<8x1xf32> to vector<8x32xf32>
    %10 = vector.broadcast %8 : vector<1x32xf32> to vector<8x32xf32>
    %11 = arith.mulf %9, %10 : vector<8x32xf32>
    %12 = vector.broadcast %7 : vector<1x32xf32> to vector<8x32xf32>
    %13 = arith.addf %12, %11 : vector<8x32xf32>
    %14 = arith.mulf %5, %5 : vector<8x1xf32>
    %15 = vector.extract_strided_slice %6 {offsets = [2, 0], sizes = [1, 32], strides = [1, 1]} : vector<3x32xf32> to vector<1x32xf32>
    %16 = vector.broadcast %14 : vector<8x1xf32> to vector<8x32xf32>
    %17 = vector.broadcast %15 : vector<1x32xf32> to vector<8x32xf32>
    %18 = arith.mulf %16, %17 : vector<8x32xf32>
    %19 = arith.addf %13, %18 : vector<8x32xf32>
    %c8 = arith.constant 8 : index
    %c0_4 = arith.constant 0 : index
    %20 = vector.load %arg3[%c8, %c0_4] : memref<976x32xf32, #tpu.memory_space<vmem>>, vector<1x32xf32>
    %21 = vector.broadcast %20 : vector<1x32xf32> to vector<8x32xf32>
    %22 = arith.addf %19, %21 : vector<8x32xf32>
    %23 = tpu.iota {dimensions = array<i32: 1>} : vector<56x8xi32>
    %c0_5 = arith.constant 0 : index
    %c0_6 = arith.constant 0 : index
    %c0_7 = arith.constant 0 : index
    %24 = vector.load %arg1[%c0_5, %c0_6, %c0_7] : memref<6x56x1xi32, #tpu.memory_space<vmem>>, vector<1x56x1xi32>
    %25 = vector.shape_cast %24 : vector<1x56x1xi32> to vector<56x1xi32>
    %c1_8 = arith.constant 1 : index
    %c0_9 = arith.constant 0 : index
    %c0_10 = arith.constant 0 : index
    %26 = vector.load %arg1[%c1_8, %c0_9, %c0_10] : memref<6x56x1xi32, #tpu.memory_space<vmem>>, vector<1x56x1xi32>
    %27 = vector.shape_cast %26 : vector<1x56x1xi32> to vector<56x1xi32>
    %28 = vector.broadcast %25 : vector<56x1xi32> to vector<56x8xi32>
    %29 = arith.cmpi eq, %23, %28 : vector<56x8xi32>
    %cst_11 = arith.constant 1.000000e+00 : f32
    %cst_12 = arith.constant 0.000000e+00 : f32
    %30 = vector.broadcast %cst_11 : f32 to vector<56x8xf32>
    %31 = vector.broadcast %cst_12 : f32 to vector<56x8xf32>
    %32 = arith.select %29, %30, %31 : vector<56x8xi1>, vector<56x8xf32>
    %33 = vector.broadcast %27 : vector<56x1xi32> to vector<56x8xi32>
    %34 = arith.cmpi eq, %23, %33 : vector<56x8xi32>
    %cst_13 = arith.constant 1.000000e+00 : f32
    %cst_14 = arith.constant 0.000000e+00 : f32
    %35 = vector.broadcast %cst_13 : f32 to vector<56x8xf32>
    %36 = vector.broadcast %cst_14 : f32 to vector<56x8xf32>
    %37 = arith.select %34, %35, %36 : vector<56x8xi1>, vector<56x8xf32>
    %cst_15 = arith.constant dense<0.000000e+00> : vector<56x32xf32>
    %38 = tpu.matmul %32, %22, %cst_15 {dimension_numbers = #tpu.dot_dimension_numbers<[1], [0], [0], [1], [0, 0, 1, 1], [], []>} : vector<56x8xf32>, vector<8x32xf32>, vector<56x32xf32> -> vector<56x32xf32>
    %cst_16 = arith.constant dense<0.000000e+00> : vector<56x32xf32>
    %39 = tpu.matmul %37, %22, %cst_16 {dimension_numbers = #tpu.dot_dimension_numbers<[1], [0], [0], [1], [0, 0, 1, 1], [], []>} : vector<56x8xf32>, vector<8x32xf32>, vector<56x32xf32> -> vector<56x32xf32>
    %40 = arith.subf %32, %37 : vector<56x8xf32>
    %cst_17 = arith.constant dense<0.000000e+00> : vector<56x3xf32>
    %41 = tpu.matmul %40, %1, %cst_17 {dimension_numbers = #tpu.dot_dimension_numbers<[1], [0], [0], [1], [0, 0, 1, 1], [], []>} : vector<56x8xf32>, vector<8x3xf32>, vector<56x3xf32> -> vector<56x3xf32>
    %42 = arith.mulf %41, %41 : vector<56x3xf32>
    %cst_18 = arith.constant dense<0.000000e+00> : vector<56xf32>
    %43 = vector.multi_reduction <add>, %42, %cst_18 [1] : vector<56x3xf32> to vector<56xf32>
    %44 = vector.shape_cast %43 : vector<56xf32> to vector<56x1xf32>
    %c16 = arith.constant 16 : index
    %c0_19 = arith.constant 0 : index
    %45 = vector.load %arg3[%c16, %c0_19] : memref<976x32xf32, #tpu.memory_space<vmem>>, vector<32x32xf32>
    %cst_20 = arith.constant dense<0.000000e+00> : vector<56x32xf32>
    %46 = tpu.matmul %39, %45, %cst_20 {dimension_numbers = #tpu.dot_dimension_numbers<[1], [0], [0], [1], [0, 0, 1, 1], [], []>} : vector<56x32xf32>, vector<32x32xf32>, vector<56x32xf32> -> vector<56x32xf32>
    %c48 = arith.constant 48 : index
    %c0_21 = arith.constant 0 : index
    %47 = vector.load %arg3[%c48, %c0_21] : memref<976x32xf32, #tpu.memory_space<vmem>>, vector<32x32xf32>
    %cst_22 = arith.constant dense<0.000000e+00> : vector<56x32xf32>
    %48 = tpu.matmul %38, %47, %cst_22 {dimension_numbers = #tpu.dot_dimension_numbers<[1], [0], [0], [1], [0, 0, 1, 1], [], []>} : vector<56x32xf32>, vector<32x32xf32>, vector<56x32xf32> -> vector<56x32xf32>
    %49 = arith.addf %46, %48 : vector<56x32xf32>
    %c80 = arith.constant 80 : index
    %c0_23 = arith.constant 0 : index
    %50 = vector.load %arg3[%c80, %c0_23] : memref<976x32xf32, #tpu.memory_space<vmem>>, vector<1x32xf32>
    %51 = vector.broadcast %44 : vector<56x1xf32> to vector<56x32xf32>
    %52 = vector.broadcast %50 : vector<1x32xf32> to vector<56x32xf32>
    %53 = arith.mulf %51, %52 : vector<56x32xf32>
    %54 = arith.addf %49, %53 : vector<56x32xf32>
    %c88 = arith.constant 88 : index
    %c0_24 = arith.constant 0 : index
    %55 = vector.load %arg3[%c88, %c0_24] : memref<976x32xf32, #tpu.memory_space<vmem>>, vector<1x32xf32>
    %56 = vector.broadcast %55 : vector<1x32xf32> to vector<56x32xf32>
    %57 = arith.addf %54, %56 : vector<56x32xf32>
    %58 = arith.negf %57 : vector<56x32xf32>
    %59 = math.exp %58 : vector<56x32xf32>
    %cst_25 = arith.constant 1.000000e+00 : f32
    %60 = vector.broadcast %cst_25 : f32 to vector<56x32xf32>
    %61 = arith.addf %60, %59 : vector<56x32xf32>
    %62 = arith.divf %60, %61 : vector<56x32xf32>
    %63 = arith.mulf %57, %62 : vector<56x32xf32>
    %c96 = arith.constant 96 : index
    %c0_26 = arith.constant 0 : index
    %64 = vector.load %arg3[%c96, %c0_26] : memref<976x32xf32, #tpu.memory_space<vmem>>, vector<32x32xf32>
    %cst_27 = arith.constant dense<0.000000e+00> : vector<56x32xf32>
    %65 = tpu.matmul %63, %64, %cst_27 {dimension_numbers = #tpu.dot_dimension_numbers<[1], [0], [0], [1], [0, 0, 1, 1], [], []>} : vector<56x32xf32>, vector<32x32xf32>, vector<56x32xf32> -> vector<56x32xf32>
    %c128 = arith.constant 128 : index
    %c0_28 = arith.constant 0 : index
    %66 = vector.load %arg3[%c128, %c0_28] : memref<976x32xf32, #tpu.memory_space<vmem>>, vector<1x32xf32>
    %67 = vector.broadcast %66 : vector<1x32xf32> to vector<56x32xf32>
    %68 = arith.addf %65, %67 : vector<56x32xf32>
    %69 = arith.negf %68 : vector<56x32xf32>
    %70 = math.exp %69 : vector<56x32xf32>
    %cst_29 = arith.constant 1.000000e+00 : f32
    %71 = vector.broadcast %cst_29 : f32 to vector<56x32xf32>
    %72 = arith.addf %71, %70 : vector<56x32xf32>
    %73 = arith.divf %71, %72 : vector<56x32xf32>
    %74 = arith.mulf %68, %73 : vector<56x32xf32>
    %c136 = arith.constant 136 : index
    %c0_30 = arith.constant 0 : index
    %75 = vector.load %arg3[%c136, %c0_30] : memref<976x32xf32, #tpu.memory_space<vmem>>, vector<32x32xf32>
    %cst_31 = arith.constant dense<0.000000e+00> : vector<56x32xf32>
    %76 = tpu.matmul %74, %75, %cst_31 {dimension_numbers = #tpu.dot_dimension_numbers<[1], [0], [0], [1], [0, 0, 1, 1], [], []>} : vector<56x32xf32>, vector<32x32xf32>, vector<56x32xf32> -> vector<56x32xf32>
    %c168 = arith.constant 168 : index
    %c0_32 = arith.constant 0 : index
    %77 = vector.load %arg3[%c168, %c0_32] : memref<976x32xf32, #tpu.memory_space<vmem>>, vector<1x32xf32>
    %78 = vector.broadcast %77 : vector<1x32xf32> to vector<56x32xf32>
    %79 = arith.addf %76, %78 : vector<56x32xf32>
    %80 = arith.negf %79 : vector<56x32xf32>
    %81 = math.exp %80 : vector<56x32xf32>
    %cst_33 = arith.constant 1.000000e+00 : f32
    %82 = vector.broadcast %cst_33 : f32 to vector<56x32xf32>
    %83 = arith.addf %82, %81 : vector<56x32xf32>
    %84 = arith.divf %82, %83 : vector<56x32xf32>
    %85 = arith.mulf %79, %84 : vector<56x32xf32>
    %c176 = arith.constant 176 : index
    %c0_34 = arith.constant 0 : index
    %86 = vector.load %arg3[%c176, %c0_34] : memref<976x32xf32, #tpu.memory_space<vmem>>, vector<1x32xf32>
    %87 = vector.broadcast %86 : vector<1x32xf32> to vector<56x32xf32>
    %88 = arith.mulf %85, %87 : vector<56x32xf32>
    %cst_35 = arith.constant dense<0.000000e+00> : vector<56xf32>
    %89 = vector.multi_reduction <add>, %88, %cst_35 [1] : vector<56x32xf32> to vector<56xf32>
    %90 = vector.shape_cast %89 : vector<56xf32> to vector<56x1xf32>
    %c184 = arith.constant 184 : index
    %c0_36 = arith.constant 0 : index
    %91 = vector.load %arg3[%c184, %c0_36] : memref<976x32xf32, #tpu.memory_space<vmem>>, vector<1x32xf32>
    %92 = vector.extract_strided_slice %91 {offsets = [0, 0], sizes = [1, 1], strides = [1, 1]} : vector<1x32xf32> to vector<1x1xf32>
    %93 = vector.broadcast %92 : vector<1x1xf32> to vector<56x1xf32>
    %94 = arith.addf %90, %93 : vector<56x1xf32>
    %95 = math.tanh %94 : vector<56x1xf32>
    %96 = vector.broadcast %95 : vector<56x1xf32> to vector<56x3xf32>
    %97 = arith.mulf %41, %96 : vector<56x3xf32>
    %cst_37 = arith.constant dense<0.000000e+00> : vector<8x32xf32>
    %98 = tpu.matmul %37, %74, %cst_37 {dimension_numbers = #tpu.dot_dimension_numbers<[0], [0], [1], [1], [0, 1, 1, 1], [], []>} : vector<56x8xf32>, vector<56x32xf32>, vector<8x32xf32> -> vector<8x32xf32>
    %cst_38 = arith.constant dense<0.000000e+00> : vector<8x3xf32>
    %99 = tpu.matmul %37, %97, %cst_38 {dimension_numbers = #tpu.dot_dimension_numbers<[0], [0], [1], [1], [0, 1, 1, 1], [], []>} : vector<56x8xf32>, vector<56x3xf32>, vector<8x3xf32> -> vector<8x3xf32>
    %100 = arith.addf %1, %99 : vector<8x3xf32>
    %c192 = arith.constant 192 : index
    %c0_39 = arith.constant 0 : index
    %101 = vector.load %arg3[%c192, %c0_39] : memref<976x32xf32, #tpu.memory_space<vmem>>, vector<32x32xf32>
    %cst_40 = arith.constant dense<0.000000e+00> : vector<8x32xf32>
    %102 = tpu.matmul %22, %101, %cst_40 {dimension_numbers = #tpu.dot_dimension_numbers<[1], [0], [0], [1], [0, 0, 1, 1], [], []>} : vector<8x32xf32>, vector<32x32xf32>, vector<8x32xf32> -> vector<8x32xf32>
    %c224 = arith.constant 224 : index
    %c0_41 = arith.constant 0 : index
    %103 = vector.load %arg3[%c224, %c0_41] : memref<976x32xf32, #tpu.memory_space<vmem>>, vector<32x32xf32>
    %cst_42 = arith.constant dense<0.000000e+00> : vector<8x32xf32>
    %104 = tpu.matmul %98, %103, %cst_42 {dimension_numbers = #tpu.dot_dimension_numbers<[1], [0], [0], [1], [0, 0, 1, 1], [], []>} : vector<8x32xf32>, vector<32x32xf32>, vector<8x32xf32> -> vector<8x32xf32>
    %105 = arith.addf %102, %104 : vector<8x32xf32>
    %c256 = arith.constant 256 : index
    %c0_43 = arith.constant 0 : index
    %106 = vector.load %arg3[%c256, %c0_43] : memref<976x32xf32, #tpu.memory_space<vmem>>, vector<1x32xf32>
    %107 = vector.broadcast %106 : vector<1x32xf32> to vector<8x32xf32>
    %108 = arith.addf %105, %107 : vector<8x32xf32>
    %109 = arith.negf %108 : vector<8x32xf32>
    %110 = math.exp %109 : vector<8x32xf32>
    %cst_44 = arith.constant 1.000000e+00 : f32
    %111 = vector.broadcast %cst_44 : f32 to vector<8x32xf32>
    %112 = arith.addf %111, %110 : vector<8x32xf32>
    %113 = arith.divf %111, %112 : vector<8x32xf32>
    %114 = arith.mulf %108, %113 : vector<8x32xf32>
    %c264 = arith.constant 264 : index
    %c0_45 = arith.constant 0 : index
    %115 = vector.load %arg3[%c264, %c0_45] : memref<976x32xf32, #tpu.memory_space<vmem>>, vector<32x32xf32>
    %cst_46 = arith.constant dense<0.000000e+00> : vector<8x32xf32>
    %116 = tpu.matmul %114, %115, %cst_46 {dimension_numbers = #tpu.dot_dimension_numbers<[1], [0], [0], [1], [0, 0, 1, 1], [], []>} : vector<8x32xf32>, vector<32x32xf32>, vector<8x32xf32> -> vector<8x32xf32>
    %c296 = arith.constant 296 : index
    %c0_47 = arith.constant 0 : index
    %117 = vector.load %arg3[%c296, %c0_47] : memref<976x32xf32, #tpu.memory_space<vmem>>, vector<1x32xf32>
    %118 = vector.broadcast %117 : vector<1x32xf32> to vector<8x32xf32>
    %119 = arith.addf %116, %118 : vector<8x32xf32>
    %120 = math.absf %98 : vector<8x32xf32>
    %cst_48 = arith.constant dense<0.000000e+00> : vector<8xf32>
    %121 = vector.multi_reduction <add>, %120, %cst_48 [1] : vector<8x32xf32> to vector<8xf32>
    %122 = vector.shape_cast %121 : vector<8xf32> to vector<8x1xf32>
    %cst_49 = arith.constant 0.000000e+00 : f32
    %123 = vector.broadcast %cst_49 : f32 to vector<8x1xf32>
    %124 = arith.cmpf ogt, %122, %123 : vector<8x1xf32>
    %125 = vector.shape_cast %124 : vector<8x1xi1> to vector<8x1xi1>
    %126 = vector.broadcast %125 : vector<8x1xi1> to vector<8x32xi1>
    %127 = arith.select %126, %119, %22 : vector<8x32xi1>, vector<8x32xf32>
    %128 = math.absf %127 : vector<8x32xf32>
    %cst_50 = arith.constant dense<0.000000e+00> : vector<8xf32>
    %129 = vector.multi_reduction <add>, %128, %cst_50 [1] : vector<8x32xf32> to vector<8xf32>
    %130 = vector.shape_cast %129 : vector<8xf32> to vector<8x1xf32>
    %cst_51 = arith.constant 0.000000e+00 : f32
    %131 = vector.broadcast %cst_51 : f32 to vector<8x1xf32>
    %132 = arith.cmpf oeq, %130, %131 : vector<8x1xf32>
    %133 = arith.addf %127, %22 : vector<8x32xf32>
    %134 = vector.shape_cast %132 : vector<8x1xi1> to vector<8x1xi1>
    %135 = vector.broadcast %134 : vector<8x1xi1> to vector<8x32xi1>
    %136 = arith.select %135, %133, %127 : vector<8x32xi1>, vector<8x32xf32>
    %c2 = arith.constant 2 : index
    %c0_52 = arith.constant 0 : index
    %c0_53 = arith.constant 0 : index
    %137 = vector.load %arg1[%c2, %c0_52, %c0_53] : memref<6x56x1xi32, #tpu.memory_space<vmem>>, vector<1x56x1xi32>
    %138 = vector.shape_cast %137 : vector<1x56x1xi32> to vector<56x1xi32>
    %c3 = arith.constant 3 : index
    %c0_54 = arith.constant 0 : index
    %c0_55 = arith.constant 0 : index
    %139 = vector.load %arg1[%c3, %c0_54, %c0_55] : memref<6x56x1xi32, #tpu.memory_space<vmem>>, vector<1x56x1xi32>
    %140 = vector.shape_cast %139 : vector<1x56x1xi32> to vector<56x1xi32>
    %141 = vector.broadcast %138 : vector<56x1xi32> to vector<56x8xi32>
    %142 = arith.cmpi eq, %23, %141 : vector<56x8xi32>
    %cst_56 = arith.constant 1.000000e+00 : f32
    %cst_57 = arith.constant 0.000000e+00 : f32
    %143 = vector.broadcast %cst_56 : f32 to vector<56x8xf32>
    %144 = vector.broadcast %cst_57 : f32 to vector<56x8xf32>
    %145 = arith.select %142, %143, %144 : vector<56x8xi1>, vector<56x8xf32>
    %146 = vector.broadcast %140 : vector<56x1xi32> to vector<56x8xi32>
    %147 = arith.cmpi eq, %23, %146 : vector<56x8xi32>
    %cst_58 = arith.constant 1.000000e+00 : f32
    %cst_59 = arith.constant 0.000000e+00 : f32
    %148 = vector.broadcast %cst_58 : f32 to vector<56x8xf32>
    %149 = vector.broadcast %cst_59 : f32 to vector<56x8xf32>
    %150 = arith.select %147, %148, %149 : vector<56x8xi1>, vector<56x8xf32>
    %cst_60 = arith.constant dense<0.000000e+00> : vector<56x32xf32>
    %151 = tpu.matmul %145, %136, %cst_60 {dimension_numbers = #tpu.dot_dimension_numbers<[1], [0], [0], [1], [0, 0, 1, 1], [], []>} : vector<56x8xf32>, vector<8x32xf32>, vector<56x32xf32> -> vector<56x32xf32>
    %cst_61 = arith.constant dense<0.000000e+00> : vector<56x32xf32>
    %152 = tpu.matmul %150, %136, %cst_61 {dimension_numbers = #tpu.dot_dimension_numbers<[1], [0], [0], [1], [0, 0, 1, 1], [], []>} : vector<56x8xf32>, vector<8x32xf32>, vector<56x32xf32> -> vector<56x32xf32>
    %153 = arith.subf %145, %150 : vector<56x8xf32>
    %cst_62 = arith.constant dense<0.000000e+00> : vector<56x3xf32>
    %154 = tpu.matmul %153, %100, %cst_62 {dimension_numbers = #tpu.dot_dimension_numbers<[1], [0], [0], [1], [0, 0, 1, 1], [], []>} : vector<56x8xf32>, vector<8x3xf32>, vector<56x3xf32> -> vector<56x3xf32>
    %155 = arith.mulf %154, %154 : vector<56x3xf32>
    %cst_63 = arith.constant dense<0.000000e+00> : vector<56xf32>
    %156 = vector.multi_reduction <add>, %155, %cst_63 [1] : vector<56x3xf32> to vector<56xf32>
    %157 = vector.shape_cast %156 : vector<56xf32> to vector<56x1xf32>
    %c304 = arith.constant 304 : index
    %c0_64 = arith.constant 0 : index
    %158 = vector.load %arg3[%c304, %c0_64] : memref<976x32xf32, #tpu.memory_space<vmem>>, vector<32x32xf32>
    %cst_65 = arith.constant dense<0.000000e+00> : vector<56x32xf32>
    %159 = tpu.matmul %152, %158, %cst_65 {dimension_numbers = #tpu.dot_dimension_numbers<[1], [0], [0], [1], [0, 0, 1, 1], [], []>} : vector<56x32xf32>, vector<32x32xf32>, vector<56x32xf32> -> vector<56x32xf32>
    %c336 = arith.constant 336 : index
    %c0_66 = arith.constant 0 : index
    %160 = vector.load %arg3[%c336, %c0_66] : memref<976x32xf32, #tpu.memory_space<vmem>>, vector<32x32xf32>
    %cst_67 = arith.constant dense<0.000000e+00> : vector<56x32xf32>
    %161 = tpu.matmul %151, %160, %cst_67 {dimension_numbers = #tpu.dot_dimension_numbers<[1], [0], [0], [1], [0, 0, 1, 1], [], []>} : vector<56x32xf32>, vector<32x32xf32>, vector<56x32xf32> -> vector<56x32xf32>
    %162 = arith.addf %159, %161 : vector<56x32xf32>
    %c368 = arith.constant 368 : index
    %c0_68 = arith.constant 0 : index
    %163 = vector.load %arg3[%c368, %c0_68] : memref<976x32xf32, #tpu.memory_space<vmem>>, vector<1x32xf32>
    %164 = vector.broadcast %157 : vector<56x1xf32> to vector<56x32xf32>
    %165 = vector.broadcast %163 : vector<1x32xf32> to vector<56x32xf32>
    %166 = arith.mulf %164, %165 : vector<56x32xf32>
    %167 = arith.addf %162, %166 : vector<56x32xf32>
    %c376 = arith.constant 376 : index
    %c0_69 = arith.constant 0 : index
    %168 = vector.load %arg3[%c376, %c0_69] : memref<976x32xf32, #tpu.memory_space<vmem>>, vector<1x32xf32>
    %169 = vector.broadcast %168 : vector<1x32xf32> to vector<56x32xf32>
    %170 = arith.addf %167, %169 : vector<56x32xf32>
    %171 = arith.negf %170 : vector<56x32xf32>
    %172 = math.exp %171 : vector<56x32xf32>
    %cst_70 = arith.constant 1.000000e+00 : f32
    %173 = vector.broadcast %cst_70 : f32 to vector<56x32xf32>
    %174 = arith.addf %173, %172 : vector<56x32xf32>
    %175 = arith.divf %173, %174 : vector<56x32xf32>
    %176 = arith.mulf %170, %175 : vector<56x32xf32>
    %c384 = arith.constant 384 : index
    %c0_71 = arith.constant 0 : index
    %177 = vector.load %arg3[%c384, %c0_71] : memref<976x32xf32, #tpu.memory_space<vmem>>, vector<32x32xf32>
    %cst_72 = arith.constant dense<0.000000e+00> : vector<56x32xf32>
    %178 = tpu.matmul %176, %177, %cst_72 {dimension_numbers = #tpu.dot_dimension_numbers<[1], [0], [0], [1], [0, 0, 1, 1], [], []>} : vector<56x32xf32>, vector<32x32xf32>, vector<56x32xf32> -> vector<56x32xf32>
    %c416 = arith.constant 416 : index
    %c0_73 = arith.constant 0 : index
    %179 = vector.load %arg3[%c416, %c0_73] : memref<976x32xf32, #tpu.memory_space<vmem>>, vector<1x32xf32>
    %180 = vector.broadcast %179 : vector<1x32xf32> to vector<56x32xf32>
    %181 = arith.addf %178, %180 : vector<56x32xf32>
    %182 = arith.negf %181 : vector<56x32xf32>
    %183 = math.exp %182 : vector<56x32xf32>
    %cst_74 = arith.constant 1.000000e+00 : f32
    %184 = vector.broadcast %cst_74 : f32 to vector<56x32xf32>
    %185 = arith.addf %184, %183 : vector<56x32xf32>
    %186 = arith.divf %184, %185 : vector<56x32xf32>
    %187 = arith.mulf %181, %186 : vector<56x32xf32>
    %c424 = arith.constant 424 : index
    %c0_75 = arith.constant 0 : index
    %188 = vector.load %arg3[%c424, %c0_75] : memref<976x32xf32, #tpu.memory_space<vmem>>, vector<32x32xf32>
    %cst_76 = arith.constant dense<0.000000e+00> : vector<56x32xf32>
    %189 = tpu.matmul %187, %188, %cst_76 {dimension_numbers = #tpu.dot_dimension_numbers<[1], [0], [0], [1], [0, 0, 1, 1], [], []>} : vector<56x32xf32>, vector<32x32xf32>, vector<56x32xf32> -> vector<56x32xf32>
    %c456 = arith.constant 456 : index
    %c0_77 = arith.constant 0 : index
    %190 = vector.load %arg3[%c456, %c0_77] : memref<976x32xf32, #tpu.memory_space<vmem>>, vector<1x32xf32>
    %191 = vector.broadcast %190 : vector<1x32xf32> to vector<56x32xf32>
    %192 = arith.addf %189, %191 : vector<56x32xf32>
    %193 = arith.negf %192 : vector<56x32xf32>
    %194 = math.exp %193 : vector<56x32xf32>
    %cst_78 = arith.constant 1.000000e+00 : f32
    %195 = vector.broadcast %cst_78 : f32 to vector<56x32xf32>
    %196 = arith.addf %195, %194 : vector<56x32xf32>
    %197 = arith.divf %195, %196 : vector<56x32xf32>
    %198 = arith.mulf %192, %197 : vector<56x32xf32>
    %c464 = arith.constant 464 : index
    %c0_79 = arith.constant 0 : index
    %199 = vector.load %arg3[%c464, %c0_79] : memref<976x32xf32, #tpu.memory_space<vmem>>, vector<1x32xf32>
    %200 = vector.broadcast %199 : vector<1x32xf32> to vector<56x32xf32>
    %201 = arith.mulf %198, %200 : vector<56x32xf32>
    %cst_80 = arith.constant dense<0.000000e+00> : vector<56xf32>
    %202 = vector.multi_reduction <add>, %201, %cst_80 [1] : vector<56x32xf32> to vector<56xf32>
    %203 = vector.shape_cast %202 : vector<56xf32> to vector<56x1xf32>
    %c472 = arith.constant 472 : index
    %c0_81 = arith.constant 0 : index
    %204 = vector.load %arg3[%c472, %c0_81] : memref<976x32xf32, #tpu.memory_space<vmem>>, vector<1x32xf32>
    %205 = vector.extract_strided_slice %204 {offsets = [0, 0], sizes = [1, 1], strides = [1, 1]} : vector<1x32xf32> to vector<1x1xf32>
    %206 = vector.broadcast %205 : vector<1x1xf32> to vector<56x1xf32>
    %207 = arith.addf %203, %206 : vector<56x1xf32>
    %208 = math.tanh %207 : vector<56x1xf32>
    %209 = vector.broadcast %208 : vector<56x1xf32> to vector<56x3xf32>
    %210 = arith.mulf %154, %209 : vector<56x3xf32>
    %cst_82 = arith.constant dense<0.000000e+00> : vector<8x32xf32>
    %211 = tpu.matmul %150, %187, %cst_82 {dimension_numbers = #tpu.dot_dimension_numbers<[0], [0], [1], [1], [0, 1, 1, 1], [], []>} : vector<56x8xf32>, vector<56x32xf32>, vector<8x32xf32> -> vector<8x32xf32>
    %cst_83 = arith.constant dense<0.000000e+00> : vector<8x3xf32>
    %212 = tpu.matmul %150, %210, %cst_83 {dimension_numbers = #tpu.dot_dimension_numbers<[0], [0], [1], [1], [0, 1, 1, 1], [], []>} : vector<56x8xf32>, vector<56x3xf32>, vector<8x3xf32> -> vector<8x3xf32>
    %213 = arith.addf %100, %212 : vector<8x3xf32>
    %c480 = arith.constant 480 : index
    %c0_84 = arith.constant 0 : index
    %214 = vector.load %arg3[%c480, %c0_84] : memref<976x32xf32, #tpu.memory_space<vmem>>, vector<32x32xf32>
    %cst_85 = arith.constant dense<0.000000e+00> : vector<8x32xf32>
    %215 = tpu.matmul %136, %214, %cst_85 {dimension_numbers = #tpu.dot_dimension_numbers<[1], [0], [0], [1], [0, 0, 1, 1], [], []>} : vector<8x32xf32>, vector<32x32xf32>, vector<8x32xf32> -> vector<8x32xf32>
    %c512 = arith.constant 512 : index
    %c0_86 = arith.constant 0 : index
    %216 = vector.load %arg3[%c512, %c0_86] : memref<976x32xf32, #tpu.memory_space<vmem>>, vector<32x32xf32>
    %cst_87 = arith.constant dense<0.000000e+00> : vector<8x32xf32>
    %217 = tpu.matmul %211, %216, %cst_87 {dimension_numbers = #tpu.dot_dimension_numbers<[1], [0], [0], [1], [0, 0, 1, 1], [], []>} : vector<8x32xf32>, vector<32x32xf32>, vector<8x32xf32> -> vector<8x32xf32>
    %218 = arith.addf %215, %217 : vector<8x32xf32>
    %c544 = arith.constant 544 : index
    %c0_88 = arith.constant 0 : index
    %219 = vector.load %arg3[%c544, %c0_88] : memref<976x32xf32, #tpu.memory_space<vmem>>, vector<1x32xf32>
    %220 = vector.broadcast %219 : vector<1x32xf32> to vector<8x32xf32>
    %221 = arith.addf %218, %220 : vector<8x32xf32>
    %222 = arith.negf %221 : vector<8x32xf32>
    %223 = math.exp %222 : vector<8x32xf32>
    %cst_89 = arith.constant 1.000000e+00 : f32
    %224 = vector.broadcast %cst_89 : f32 to vector<8x32xf32>
    %225 = arith.addf %224, %223 : vector<8x32xf32>
    %226 = arith.divf %224, %225 : vector<8x32xf32>
    %227 = arith.mulf %221, %226 : vector<8x32xf32>
    %c552 = arith.constant 552 : index
    %c0_90 = arith.constant 0 : index
    %228 = vector.load %arg3[%c552, %c0_90] : memref<976x32xf32, #tpu.memory_space<vmem>>, vector<32x32xf32>
    %cst_91 = arith.constant dense<0.000000e+00> : vector<8x32xf32>
    %229 = tpu.matmul %227, %228, %cst_91 {dimension_numbers = #tpu.dot_dimension_numbers<[1], [0], [0], [1], [0, 0, 1, 1], [], []>} : vector<8x32xf32>, vector<32x32xf32>, vector<8x32xf32> -> vector<8x32xf32>
    %c584 = arith.constant 584 : index
    %c0_92 = arith.constant 0 : index
    %230 = vector.load %arg3[%c584, %c0_92] : memref<976x32xf32, #tpu.memory_space<vmem>>, vector<1x32xf32>
    %231 = vector.broadcast %230 : vector<1x32xf32> to vector<8x32xf32>
    %232 = arith.addf %229, %231 : vector<8x32xf32>
    %233 = math.absf %211 : vector<8x32xf32>
    %cst_93 = arith.constant dense<0.000000e+00> : vector<8xf32>
    %234 = vector.multi_reduction <add>, %233, %cst_93 [1] : vector<8x32xf32> to vector<8xf32>
    %235 = vector.shape_cast %234 : vector<8xf32> to vector<8x1xf32>
    %cst_94 = arith.constant 0.000000e+00 : f32
    %236 = vector.broadcast %cst_94 : f32 to vector<8x1xf32>
    %237 = arith.cmpf ogt, %235, %236 : vector<8x1xf32>
    %238 = vector.shape_cast %237 : vector<8x1xi1> to vector<8x1xi1>
    %239 = vector.broadcast %238 : vector<8x1xi1> to vector<8x32xi1>
    %240 = arith.select %239, %232, %136 : vector<8x32xi1>, vector<8x32xf32>
    %241 = math.absf %240 : vector<8x32xf32>
    %cst_95 = arith.constant dense<0.000000e+00> : vector<8xf32>
    %242 = vector.multi_reduction <add>, %241, %cst_95 [1] : vector<8x32xf32> to vector<8xf32>
    %243 = vector.shape_cast %242 : vector<8xf32> to vector<8x1xf32>
    %cst_96 = arith.constant 0.000000e+00 : f32
    %244 = vector.broadcast %cst_96 : f32 to vector<8x1xf32>
    %245 = arith.cmpf oeq, %243, %244 : vector<8x1xf32>
    %246 = arith.addf %240, %136 : vector<8x32xf32>
    %247 = vector.shape_cast %245 : vector<8x1xi1> to vector<8x1xi1>
    %248 = vector.broadcast %247 : vector<8x1xi1> to vector<8x32xi1>
    %249 = arith.select %248, %246, %240 : vector<8x32xi1>, vector<8x32xf32>
    %c4 = arith.constant 4 : index
    %c0_97 = arith.constant 0 : index
    %c0_98 = arith.constant 0 : index
    %250 = vector.load %arg1[%c4, %c0_97, %c0_98] : memref<6x56x1xi32, #tpu.memory_space<vmem>>, vector<1x56x1xi32>
    %251 = vector.shape_cast %250 : vector<1x56x1xi32> to vector<56x1xi32>
    %c5 = arith.constant 5 : index
    %c0_99 = arith.constant 0 : index
    %c0_100 = arith.constant 0 : index
    %252 = vector.load %arg1[%c5, %c0_99, %c0_100] : memref<6x56x1xi32, #tpu.memory_space<vmem>>, vector<1x56x1xi32>
    %253 = vector.shape_cast %252 : vector<1x56x1xi32> to vector<56x1xi32>
    %254 = vector.broadcast %251 : vector<56x1xi32> to vector<56x8xi32>
    %255 = arith.cmpi eq, %23, %254 : vector<56x8xi32>
    %cst_101 = arith.constant 1.000000e+00 : f32
    %cst_102 = arith.constant 0.000000e+00 : f32
    %256 = vector.broadcast %cst_101 : f32 to vector<56x8xf32>
    %257 = vector.broadcast %cst_102 : f32 to vector<56x8xf32>
    %258 = arith.select %255, %256, %257 : vector<56x8xi1>, vector<56x8xf32>
    %259 = vector.broadcast %253 : vector<56x1xi32> to vector<56x8xi32>
    %260 = arith.cmpi eq, %23, %259 : vector<56x8xi32>
    %cst_103 = arith.constant 1.000000e+00 : f32
    %cst_104 = arith.constant 0.000000e+00 : f32
    %261 = vector.broadcast %cst_103 : f32 to vector<56x8xf32>
    %262 = vector.broadcast %cst_104 : f32 to vector<56x8xf32>
    %263 = arith.select %260, %261, %262 : vector<56x8xi1>, vector<56x8xf32>
    %cst_105 = arith.constant dense<0.000000e+00> : vector<56x32xf32>
    %264 = tpu.matmul %258, %249, %cst_105 {dimension_numbers = #tpu.dot_dimension_numbers<[1], [0], [0], [1], [0, 0, 1, 1], [], []>} : vector<56x8xf32>, vector<8x32xf32>, vector<56x32xf32> -> vector<56x32xf32>
    %cst_106 = arith.constant dense<0.000000e+00> : vector<56x32xf32>
    %265 = tpu.matmul %263, %249, %cst_106 {dimension_numbers = #tpu.dot_dimension_numbers<[1], [0], [0], [1], [0, 0, 1, 1], [], []>} : vector<56x8xf32>, vector<8x32xf32>, vector<56x32xf32> -> vector<56x32xf32>
    %266 = arith.subf %258, %263 : vector<56x8xf32>
    %cst_107 = arith.constant dense<0.000000e+00> : vector<56x3xf32>
    %267 = tpu.matmul %266, %213, %cst_107 {dimension_numbers = #tpu.dot_dimension_numbers<[1], [0], [0], [1], [0, 0, 1, 1], [], []>} : vector<56x8xf32>, vector<8x3xf32>, vector<56x3xf32> -> vector<56x3xf32>
    %268 = arith.mulf %267, %267 : vector<56x3xf32>
    %cst_108 = arith.constant dense<0.000000e+00> : vector<56xf32>
    %269 = vector.multi_reduction <add>, %268, %cst_108 [1] : vector<56x3xf32> to vector<56xf32>
    %270 = vector.shape_cast %269 : vector<56xf32> to vector<56x1xf32>
    %c592 = arith.constant 592 : index
    %c0_109 = arith.constant 0 : index
    %271 = vector.load %arg3[%c592, %c0_109] : memref<976x32xf32, #tpu.memory_space<vmem>>, vector<32x32xf32>
    %cst_110 = arith.constant dense<0.000000e+00> : vector<56x32xf32>
    %272 = tpu.matmul %265, %271, %cst_110 {dimension_numbers = #tpu.dot_dimension_numbers<[1], [0], [0], [1], [0, 0, 1, 1], [], []>} : vector<56x32xf32>, vector<32x32xf32>, vector<56x32xf32> -> vector<56x32xf32>
    %c624 = arith.constant 624 : index
    %c0_111 = arith.constant 0 : index
    %273 = vector.load %arg3[%c624, %c0_111] : memref<976x32xf32, #tpu.memory_space<vmem>>, vector<32x32xf32>
    %cst_112 = arith.constant dense<0.000000e+00> : vector<56x32xf32>
    %274 = tpu.matmul %264, %273, %cst_112 {dimension_numbers = #tpu.dot_dimension_numbers<[1], [0], [0], [1], [0, 0, 1, 1], [], []>} : vector<56x32xf32>, vector<32x32xf32>, vector<56x32xf32> -> vector<56x32xf32>
    %275 = arith.addf %272, %274 : vector<56x32xf32>
    %c656 = arith.constant 656 : index
    %c0_113 = arith.constant 0 : index
    %276 = vector.load %arg3[%c656, %c0_113] : memref<976x32xf32, #tpu.memory_space<vmem>>, vector<1x32xf32>
    %277 = vector.broadcast %270 : vector<56x1xf32> to vector<56x32xf32>
    %278 = vector.broadcast %276 : vector<1x32xf32> to vector<56x32xf32>
    %279 = arith.mulf %277, %278 : vector<56x32xf32>
    %280 = arith.addf %275, %279 : vector<56x32xf32>
    %c664 = arith.constant 664 : index
    %c0_114 = arith.constant 0 : index
    %281 = vector.load %arg3[%c664, %c0_114] : memref<976x32xf32, #tpu.memory_space<vmem>>, vector<1x32xf32>
    %282 = vector.broadcast %281 : vector<1x32xf32> to vector<56x32xf32>
    %283 = arith.addf %280, %282 : vector<56x32xf32>
    %284 = arith.negf %283 : vector<56x32xf32>
    %285 = math.exp %284 : vector<56x32xf32>
    %cst_115 = arith.constant 1.000000e+00 : f32
    %286 = vector.broadcast %cst_115 : f32 to vector<56x32xf32>
    %287 = arith.addf %286, %285 : vector<56x32xf32>
    %288 = arith.divf %286, %287 : vector<56x32xf32>
    %289 = arith.mulf %283, %288 : vector<56x32xf32>
    %c672 = arith.constant 672 : index
    %c0_116 = arith.constant 0 : index
    %290 = vector.load %arg3[%c672, %c0_116] : memref<976x32xf32, #tpu.memory_space<vmem>>, vector<32x32xf32>
    %cst_117 = arith.constant dense<0.000000e+00> : vector<56x32xf32>
    %291 = tpu.matmul %289, %290, %cst_117 {dimension_numbers = #tpu.dot_dimension_numbers<[1], [0], [0], [1], [0, 0, 1, 1], [], []>} : vector<56x32xf32>, vector<32x32xf32>, vector<56x32xf32> -> vector<56x32xf32>
    %c704 = arith.constant 704 : index
    %c0_118 = arith.constant 0 : index
    %292 = vector.load %arg3[%c704, %c0_118] : memref<976x32xf32, #tpu.memory_space<vmem>>, vector<1x32xf32>
    %293 = vector.broadcast %292 : vector<1x32xf32> to vector<56x32xf32>
    %294 = arith.addf %291, %293 : vector<56x32xf32>
    %295 = arith.negf %294 : vector<56x32xf32>
    %296 = math.exp %295 : vector<56x32xf32>
    %cst_119 = arith.constant 1.000000e+00 : f32
    %297 = vector.broadcast %cst_119 : f32 to vector<56x32xf32>
    %298 = arith.addf %297, %296 : vector<56x32xf32>
    %299 = arith.divf %297, %298 : vector<56x32xf32>
    %300 = arith.mulf %294, %299 : vector<56x32xf32>
    %cst_120 = arith.constant dense<0.000000e+00> : vector<8x32xf32>
    %301 = tpu.matmul %263, %300, %cst_120 {dimension_numbers = #tpu.dot_dimension_numbers<[0], [0], [1], [1], [0, 1, 1, 1], [], []>} : vector<56x8xf32>, vector<56x32xf32>, vector<8x32xf32> -> vector<8x32xf32>
    %c768 = arith.constant 768 : index
    %c0_121 = arith.constant 0 : index
    %302 = vector.load %arg3[%c768, %c0_121] : memref<976x32xf32, #tpu.memory_space<vmem>>, vector<32x32xf32>
    %cst_122 = arith.constant dense<0.000000e+00> : vector<8x32xf32>
    %303 = tpu.matmul %249, %302, %cst_122 {dimension_numbers = #tpu.dot_dimension_numbers<[1], [0], [0], [1], [0, 0, 1, 1], [], []>} : vector<8x32xf32>, vector<32x32xf32>, vector<8x32xf32> -> vector<8x32xf32>
    %c800 = arith.constant 800 : index
    %c0_123 = arith.constant 0 : index
    %304 = vector.load %arg3[%c800, %c0_123] : memref<976x32xf32, #tpu.memory_space<vmem>>, vector<32x32xf32>
    %cst_124 = arith.constant dense<0.000000e+00> : vector<8x32xf32>
    %305 = tpu.matmul %301, %304, %cst_124 {dimension_numbers = #tpu.dot_dimension_numbers<[1], [0], [0], [1], [0, 0, 1, 1], [], []>} : vector<8x32xf32>, vector<32x32xf32>, vector<8x32xf32> -> vector<8x32xf32>
    %306 = arith.addf %303, %305 : vector<8x32xf32>
    %c832 = arith.constant 832 : index
    %c0_125 = arith.constant 0 : index
    %307 = vector.load %arg3[%c832, %c0_125] : memref<976x32xf32, #tpu.memory_space<vmem>>, vector<1x32xf32>
    %308 = vector.broadcast %307 : vector<1x32xf32> to vector<8x32xf32>
    %309 = arith.addf %306, %308 : vector<8x32xf32>
    %310 = arith.negf %309 : vector<8x32xf32>
    %311 = math.exp %310 : vector<8x32xf32>
    %cst_126 = arith.constant 1.000000e+00 : f32
    %312 = vector.broadcast %cst_126 : f32 to vector<8x32xf32>
    %313 = arith.addf %312, %311 : vector<8x32xf32>
    %314 = arith.divf %312, %313 : vector<8x32xf32>
    %315 = arith.mulf %309, %314 : vector<8x32xf32>
    %c840 = arith.constant 840 : index
    %c0_127 = arith.constant 0 : index
    %316 = vector.load %arg3[%c840, %c0_127] : memref<976x32xf32, #tpu.memory_space<vmem>>, vector<32x32xf32>
    %cst_128 = arith.constant dense<0.000000e+00> : vector<8x32xf32>
    %317 = tpu.matmul %315, %316, %cst_128 {dimension_numbers = #tpu.dot_dimension_numbers<[1], [0], [0], [1], [0, 0, 1, 1], [], []>} : vector<8x32xf32>, vector<32x32xf32>, vector<8x32xf32> -> vector<8x32xf32>
    %c872 = arith.constant 872 : index
    %c0_129 = arith.constant 0 : index
    %318 = vector.load %arg3[%c872, %c0_129] : memref<976x32xf32, #tpu.memory_space<vmem>>, vector<1x32xf32>
    %319 = vector.broadcast %318 : vector<1x32xf32> to vector<8x32xf32>
    %320 = arith.addf %317, %319 : vector<8x32xf32>
    %321 = math.absf %301 : vector<8x32xf32>
    %cst_130 = arith.constant dense<0.000000e+00> : vector<8xf32>
    %322 = vector.multi_reduction <add>, %321, %cst_130 [1] : vector<8x32xf32> to vector<8xf32>
    %323 = vector.shape_cast %322 : vector<8xf32> to vector<8x1xf32>
    %cst_131 = arith.constant 0.000000e+00 : f32
    %324 = vector.broadcast %cst_131 : f32 to vector<8x1xf32>
    %325 = arith.cmpf ogt, %323, %324 : vector<8x1xf32>
    %326 = vector.shape_cast %325 : vector<8x1xi1> to vector<8x1xi1>
    %327 = vector.broadcast %326 : vector<8x1xi1> to vector<8x32xi1>
    %328 = arith.select %327, %320, %249 : vector<8x32xi1>, vector<8x32xf32>
    %329 = math.absf %328 : vector<8x32xf32>
    %cst_132 = arith.constant dense<0.000000e+00> : vector<8xf32>
    %330 = vector.multi_reduction <add>, %329, %cst_132 [1] : vector<8x32xf32> to vector<8xf32>
    %331 = vector.shape_cast %330 : vector<8xf32> to vector<8x1xf32>
    %cst_133 = arith.constant 0.000000e+00 : f32
    %332 = vector.broadcast %cst_133 : f32 to vector<8x1xf32>
    %333 = arith.cmpf oeq, %331, %332 : vector<8x1xf32>
    %334 = arith.addf %328, %249 : vector<8x32xf32>
    %335 = vector.shape_cast %333 : vector<8x1xi1> to vector<8x1xi1>
    %336 = vector.broadcast %335 : vector<8x1xi1> to vector<8x32xi1>
    %337 = arith.select %336, %334, %328 : vector<8x32xi1>, vector<8x32xf32>
    %c880 = arith.constant 880 : index
    %c0_134 = arith.constant 0 : index
    %338 = vector.load %arg3[%c880, %c0_134] : memref<976x32xf32, #tpu.memory_space<vmem>>, vector<32x32xf32>
    %cst_135 = arith.constant dense<0.000000e+00> : vector<8x32xf32>
    %339 = tpu.matmul %337, %338, %cst_135 {dimension_numbers = #tpu.dot_dimension_numbers<[1], [0], [0], [1], [0, 0, 1, 1], [], []>} : vector<8x32xf32>, vector<32x32xf32>, vector<8x32xf32> -> vector<8x32xf32>
    %c912 = arith.constant 912 : index
    %c0_136 = arith.constant 0 : index
    %340 = vector.load %arg3[%c912, %c0_136] : memref<976x32xf32, #tpu.memory_space<vmem>>, vector<1x32xf32>
    %341 = vector.broadcast %340 : vector<1x32xf32> to vector<8x32xf32>
    %342 = arith.addf %339, %341 : vector<8x32xf32>
    %343 = arith.negf %342 : vector<8x32xf32>
    %344 = math.exp %343 : vector<8x32xf32>
    %cst_137 = arith.constant 1.000000e+00 : f32
    %345 = vector.broadcast %cst_137 : f32 to vector<8x32xf32>
    %346 = arith.addf %345, %344 : vector<8x32xf32>
    %347 = arith.divf %345, %346 : vector<8x32xf32>
    %348 = arith.mulf %342, %347 : vector<8x32xf32>
    %c920 = arith.constant 920 : index
    %c0_138 = arith.constant 0 : index
    %349 = vector.load %arg3[%c920, %c0_138] : memref<976x32xf32, #tpu.memory_space<vmem>>, vector<32x32xf32>
    %cst_139 = arith.constant dense<0.000000e+00> : vector<8x32xf32>
    %350 = tpu.matmul %348, %349, %cst_139 {dimension_numbers = #tpu.dot_dimension_numbers<[1], [0], [0], [1], [0, 0, 1, 1], [], []>} : vector<8x32xf32>, vector<32x32xf32>, vector<8x32xf32> -> vector<8x32xf32>
    %c952 = arith.constant 952 : index
    %c0_140 = arith.constant 0 : index
    %351 = vector.load %arg3[%c952, %c0_140] : memref<976x32xf32, #tpu.memory_space<vmem>>, vector<1x32xf32>
    %352 = vector.broadcast %351 : vector<1x32xf32> to vector<8x32xf32>
    %353 = arith.addf %350, %352 : vector<8x32xf32>
    %354 = arith.negf %353 : vector<8x32xf32>
    %355 = math.exp %354 : vector<8x32xf32>
    %cst_141 = arith.constant 1.000000e+00 : f32
    %356 = vector.broadcast %cst_141 : f32 to vector<8x32xf32>
    %357 = arith.addf %356, %355 : vector<8x32xf32>
    %358 = arith.divf %356, %357 : vector<8x32xf32>
    %359 = arith.mulf %353, %358 : vector<8x32xf32>
    %c960 = arith.constant 960 : index
    %c0_142 = arith.constant 0 : index
    %360 = vector.load %arg3[%c960, %c0_142] : memref<976x32xf32, #tpu.memory_space<vmem>>, vector<1x32xf32>
    %361 = vector.broadcast %360 : vector<1x32xf32> to vector<8x32xf32>
    %362 = arith.mulf %359, %361 : vector<8x32xf32>
    %cst_143 = arith.constant dense<0.000000e+00> : vector<8xf32>
    %363 = vector.multi_reduction <add>, %362, %cst_143 [1] : vector<8x32xf32> to vector<8xf32>
    %364 = vector.shape_cast %363 : vector<8xf32> to vector<8x1xf32>
    %c968 = arith.constant 968 : index
    %c0_144 = arith.constant 0 : index
    %365 = vector.load %arg3[%c968, %c0_144] : memref<976x32xf32, #tpu.memory_space<vmem>>, vector<1x32xf32>
    %366 = vector.extract_strided_slice %365 {offsets = [0, 0], sizes = [1, 1], strides = [1, 1]} : vector<1x32xf32> to vector<1x1xf32>
    %367 = vector.broadcast %366 : vector<1x1xf32> to vector<8x1xf32>
    %368 = arith.addf %364, %367 : vector<8x1xf32>
    %369 = tpu.iota {dimensions = array<i32: 1>} : vector<8x1xi32>
    %c2_i32 = arith.constant 2 : i32
    %370 = vector.broadcast %c2_i32 : i32 to vector<8x1xi32>
    %371 = arith.muli %369, %370 : vector<8x1xi32>
    %c0_145 = arith.constant 0 : index
    %c0_146 = arith.constant 0 : index
    %372 = vector.load %arg2[%c0_145, %c0_146] : memref<8x1xi32, #tpu.memory_space<vmem>>, vector<8x1xi32>
    %373 = arith.cmpi eq, %371, %372 : vector<8x1xi32>
    %cst_147 = arith.constant 1.000000e+00 : f32
    %cst_148 = arith.constant 0.000000e+00 : f32
    %374 = vector.broadcast %cst_147 : f32 to vector<8x1xf32>
    %375 = vector.broadcast %cst_148 : f32 to vector<8x1xf32>
    %376 = arith.select %373, %374, %375 : vector<8x1xi1>, vector<8x1xf32>
    %377 = arith.mulf %368, %376 : vector<8x1xf32>
    %cst_149 = arith.constant dense<0.000000e+00> : vector<1xf32>
    %378 = vector.multi_reduction <add>, %377, %cst_149 [0] : vector<8x1xf32> to vector<1xf32>
    %379 = vector.shape_cast %378 : vector<1xf32> to vector<1x1xf32>
    %c0_150 = arith.constant 0 : index
    %c0_151 = arith.constant 0 : index
    %380 = vector.load %arg4[%c0_150, %c0_151] : memref<1x1xf32, #tpu.memory_space<vmem>>, vector<1x1xf32>
    tpu.vector_store %arg4[%c0_150, %c0_151], %379 {strides = array<i32>} : memref<1x1xf32, #tpu.memory_space<vmem>>, vector<1x1xf32>,
    return
  }
}

</mosaic_0001>

<bundles_post_ra>
// kernel: egnn_forward.1
= control target key start
LH: loop header
LB: loop body
LE: loop exit
PB: predicated region body
PF: predicated region fallthrough
CT: control target
= control target key end

     0   :  { %vm19_vm0 = vcmask 7168   ;;  %v6872_v1 = vmov 0   ;;  %v6873_v3 = vmov 0.0   ;;  %s8390_s0 = inlined_call_operand.vmem [shape: f32[8,4], index: 0, kind: input, shape index: {}]   ;;  %s8391_s1 = inlined_call_operand.vmem [shape: s32[6,56,1], index: 1, kind: input, shape index: {}]   ;;  %s8392_s2 = inlined_call_operand.vmem [shape: s32[8,1], index: 2, kind: input, shape index: {}]   ;;  %s8393_s3 = inlined_call_operand.vmem [shape: f32[976,32], index: 3, kind: input, shape index: {}]   ;;  %s8394_s4 = inlined_call_operand.hbm [shape: f32[1,1], index: 4, kind: output, shape index: {}]  }
   0x1   :  { %v65_v0 = vld [vmem:[%s8391_s1] sm:$0xff]  ;;  %6572 = vset.pattern.permute.xlu1 %v6872_v1  ;;  %6571 = vset.pattern.permute.xlu0 %v6872_v1  ;;  %v5090_v4 = vld [vmem:[%s8391_s1 + $0x38] sm:$0xff] }
   0x2   :  { %81 = vperm.xlu1 %6572, %v65_v0   ;;  %v18_v2 = vld [vmem:[%s8390_s0] sm:$0xff]  ;;  %5655 = vmatprep.subr.mxu0 %v6873_v3 }
   0x3   :  { %v20_v5 = vsel %vm19_vm0, %v18_v2, -inf  ;;  %5678 = vmatprep.subr.mxu1 %v6873_v3 }
   0x4   :  { %v21_v6 = vrot.slane %v20_v5, 4 }
   0x5   :  { %9 = vsyncpa [#allocation3], 0  ;;  %v5091_v8 = vld [vmem:[%s8391_s1 + $0x40] sm:$0xff]  ;;  %v5092_v11 = vld [vmem:[%s8391_s1 + $0x48] sm:$0xff]  ;;  %vm6874_vm1 = vmmov 0   ;;  %s6875_s19 = smov 127   ;;  %v35_v27 = vlaneseq }
   0x6   :  { %116 = vperm.xlu1 %6572, %v5090_v4   ;;  %v22_v7 = vmax.f32 %v20_v5, %v21_v6  ;;  %v5093_v14 = vld [vmem:[%s8391_s1 + $0x50] sm:$0xff]  ;;  %v5094_v15 = vld [vmem:[%s8391_s1 + $0x58] sm:$0xff]  ;;  %v5095_v16 = vld [vmem:[%s8391_s1 + $0x60] sm:$0xff]  ;;  %5657 = vmatprep.mubr.msk.f32.mxu0 %vm6874_vm1, %v6873_v3  ;;  %vm150_vm4 = vcmask 64512   ;;  %v6876_v59 = vmov 0.0|0.0   ;;  %s6877_s24 = smov 1  }
   0x7   :  { %v5096_v19 = vld [vmem:[%s8391_s1 + $0x68] sm:$0xff]  ;;  %v67_v22 = vld [vmem:[%s8391_s1 + $0x10] sm:$0xff]  ;;  %5680 = vmatprep.mubr.msk.f32.mxu1 %vm6874_vm1, %v6873_v3  ;;  %v68_v23 = vld [vmem:[%s8391_s1 + $0x18] sm:$0xff]  ;;  %v36_v29 = vshrl.u32 %v35_v27, 7  ;;  %v6960_v41 = vand.u32 127, %v35_v27 }
   0x8   :  { %v23_v9 = vrot.slane %v22_v7, 2  ;;  %v66_v21 = vld [vmem:[%s8391_s1 + $0x8] sm:$0xff]  ;;  %v69_v24 = vld [vmem:[%s8391_s1 + $0x20] sm:$0xff]  ;;  %v71_v26 = vld [vmem:[%s8391_s1 + $0x30] sm:$0xff] }
   0x9   :  { %v70_v25 = vld [vmem:[%s8391_s1 + $0x28] sm:$0xff]  ;;  %v37_v31 = vsub.s32 1, %v36_v29  ;;  %v29_v32 = vld [vmem:[%s8393_s3] sm:$0x7]  ;;  %v42_v34 = vsub.s32 0, %v36_v29  ;;  %v53_v35 = vsub.s32 2, %v36_v29 }
   0xa   :  { %119 = vperm.xlu1 %6572, %v5091_v8   ;;  %v24_v10 = vmax.f32 %v22_v7, %v23_v9  ;;  %v5089_v46 = vld [vmem:[%s8393_s3 + $0x8] ss:$0 sm:$0xff]  ;;  %v558_v49 = vld [vmem:[%s8393_s3 + $0x30] sm:$0xff]  ;;  %v559_v50 = vld [vmem:[%s8393_s3 + $0x38] sm:$0xff] }
   0xb   :  { %v38_v33 = vrot.slane %v29_v32, %v37_v31  ;;  %v43_v38 = vrot.slane %v29_v32, %v42_v34  ;;  %v54_v40 = vrot.slane %v29_v32, %v53_v35  ;;  %v6388_v55 = vpack.c.bf16 %v559_v50, %v558_v49  ;;  %v560_v57 = vld [vmem:[%s8393_s3 + $0x40] sm:$0xff]  ;;  %v561_v58 = vld [vmem:[%s8393_s3 + $0x48] sm:$0xff] }
   0xc   :  { %v25_v12 = vrot.slane %v24_v10, 1  ;;  %v6391_v62 = vpack.c.bf16 %v561_v58, %v560_v57 }
   0xe   :  { %122 = vperm.xlu1 %6572, %v5092_v11   ;;  %v26_v13 = vmax.f32 %v24_v10, %v25_v12 }
  0x10   :  { %6573 = vrcp.f32 %v26_v13 }
  0x12   :  { %125 = vperm.xlu1 %6572, %v5093_v14  }
  0x16   :  { %128 = vperm.xlu1 %6572, %v5094_v15  }
  0x1a   :  { %v6574_v17 = vpop.eup %6573  ;;  %131 = vperm.xlu1 %6572, %v5095_v16   ;;  %v554_v16 = vld [vmem:[%s8393_s3 + $0x10] sm:$0xff] }
  0x1b   :  { %v28_v18 = vmul.f32 %v6574_v17, %v18_v2  ;;  %v555_v17 = vld [vmem:[%s8393_s3 + $0x18] sm:$0xff] }
  0x1d   :  { %32 = vperm.xlu0 %6571, %v28_v18   ;;  %v45_v20 = vmul.f32 %v28_v18, %v28_v18 }
  0x1e   :  { %134 = vperm.xlu1 %6572, %v5096_v19  }
  0x21   :  { %48 = vperm.xlu0 %6571, %v45_v20   ;;  %v6394_v20 = vpack.c.bf16 %v555_v17, %v554_v16 }
  0x25   :  { %84 = vperm.xlu0 %6571, %v66_v21  }
  0x29   :  { %87 = vperm.xlu0 %6571, %v67_v22   ;;  %v556_v22 = vld [vmem:[%s8393_s3 + $0x20] sm:$0xff] }
  0x2d   :  { %90 = vperm.xlu0 %6571, %v68_v23   ;;  %v557_v23 = vld [vmem:[%s8393_s3 + $0x28] sm:$0xff] }
  0x31   :  { %93 = vperm.xlu0 %6571, %v69_v24   ;;  %v6397_v24 = vpack.c.bf16 %v557_v23, %v556_v22 }
  0x35   :  { %96 = vperm.xlu0 %6571, %v70_v25  }
  0x39   :  { %99 = vperm.xlu0 %6571, %v71_v26  }
  0x3d   :  { %401 = vrot.lane.b32.xlu0 %v18_v2, %s6875_s19 }
  0x81   :  { %v82_v28 = vpop.permute.xlu1 %81 }
  0x82   :  { %vm101_vm2 = vcmp.eq.s32.totalorder %v6960_v41, %v82_v28 }
  0x83   :  { %v6976_v52 = vsel %vm101_vm2, 1.0, %v6873_v3 }
  0x85   :  { %v117_v30 = vpop.permute.xlu1 %116 }
  0x86   :  { %vm136_vm3 = vcmp.eq.s32.totalorder %v6960_v41, %v117_v30 }
  0x87   :  { %v6979_v53 = vsel %vm136_vm3, 1.0, %v6873_v3  ;;  %vm562_vm3 = vcmask 261120  }
  0x88   :  { %v393_v21 = vsub.f32 %v6976_v52, %v6979_v53 }
  0x89   :  { %v120_v36 = vpop.permute.xlu1 %119 }
  0x8a   :  { %vm137_vm5 = vcmp.eq.s32.totalorder %v6960_v41, %v120_v36 }
  0x8b   :  { %v7002_v60 = vsel %vm137_vm5, 1.0, %v6873_v3  ;;  %vm532_vm5 = vcmask 23552  }
  0x8d   :  { %v123_v43 = vpop.permute.xlu1 %122 }
  0x8e   :  { %vm138_vm7 = vcmp.eq.s32.totalorder %v6960_v41, %v123_v43 }
  0x8f   :  { %v7019_v1 = vsel %vm138_vm7, 1.0, %v6873_v3 }
  0x91   :  { %v126_v54 = vpop.permute.xlu1 %125 }
  0x92   :  { %vm139_vm9 = vcmp.eq.s32.totalorder %v6960_v41, %v126_v54 }
  0x93   :  { %v7036_v5 = vsel %vm139_vm9, 1.0, %v6873_v3 }
  0x95   :  { %v129_v0 = vpop.permute.xlu1 %128 }
  0x96   :  { %vm140_vm11 = vcmp.eq.s32.totalorder %v6960_v41, %v129_v0 }
  0x97   :  { %v7049_v9 = vsel %vm140_vm11, 1.0, %v6873_v3 }
  0x99   :  { %v132_v6 = vpop.permute.xlu1 %131 }
  0x9a   :  { %vm141_vm13 = vcmp.eq.s32.totalorder %v6960_v41, %v132_v6 }
  0x9b   :  { %v7062_v13 = vsel %vm141_vm13, 1.0, %v6873_v3 }
  0x9c   :  { %v33_v37 = vpop.permute.xlu0 %32 }
  0x9d   :  { %v39_v39 = vmul.f32 %v38_v33, %v33_v37  ;;  %v135_v12 = vpop.permute.xlu1 %134 }
  0x9e   :  { %vm142_vm15 = vcmp.eq.s32.totalorder %v6960_v41, %v135_v12 }
  0x9f   :  { %v44_v44 = vadd.f32 %v43_v38, %v39_v39  ;;  %v7081_v18 = vsel %vm142_vm15, 1.0, %v6873_v3 }
  0xa0   :  { %v49_v42 = vpop.permute.xlu0 %48 }
  0xa1   :  { %v55_v45 = vmul.f32 %v54_v40, %v49_v42 }
  0xa3   :  { %v56_v47 = vadd.f32 %v55_v45, %v44_v44 }
  0xa4   :  { %v85_v48 = vpop.permute.xlu0 %84 }
  0xa5   :  { %v6973_v51 = vadd.f32 %v5089_v46, %v56_v47  ;;  %vm102_vm6 = vcmp.eq.s32.totalorder %v6960_v41, %v85_v48 }
  0xa6   :  { %v7005_v61 = vsel %vm102_vm6, 1.0, %v6873_v3  ;;  %vm1369_vm6 = vcmask 457728  }
  0xa7   :  { %5656 = vmatpush3.msra.mxu0 %v6973_v51  ;;  %5679 = vmatpush3.msra.mxu1 %v6973_v51  ;;  %v394_v25 = vsub.f32 %v7005_v61, %v7002_v60 }
  0xa8   :  { %5658 = vmatmul.mubr.msk.f32.vlgmr.msra.gmra.mrb[0].mxu0 %vm150_vm4, %v6976_v52  ;;  %5681 = vmatmul.mubr.msk.f32.vlgmr.msra.gmra.mrb[0].mxu1 %vm150_vm4, %v6979_v53  ;;  %v88_v56 = vpop.permute.xlu0 %87 }
  0xa9   :  { %5660 = vmatprep.mubr.msk.f32.mxu0 %vm6874_vm1, %v6873_v3  ;;  %5683 = vmatprep.mubr.msk.f32.mxu1 %vm6874_vm1, %v6873_v3  ;;  %vm103_vm8 = vcmp.eq.s32.totalorder %v6960_v41, %v88_v56 }
  0xaa   :  { %5701 = vmatprep.subr.mxu0 %v6873_v3  ;;  %6387 = vmatprep.subr.bf16.mxu1 %v6876_v59  ;;  %v7022_v2 = vsel %vm103_vm8, 1.0, %v6873_v3 }
  0xab   :  { %6389 = vmatpush3.bf16.msra.mxu1 %v6388_v55  ;;  %v395_v26 = vsub.f32 %v7022_v2, %v7019_v1 }
  0xac   :  { %5661 = vmatmul.mubr.msk.f32.gmra.mrb[2].mxu0 %vm150_vm4, %v7005_v61  ;;  %5684 = vmatmul.mubr.msk.f32.gmra.mrb[2].mxu1 %vm150_vm4, %v7002_v60  ;;  %v91_v63 = vpop.permute.xlu0 %90 }
  0xad   :  { %5663 = vmatprep.mubr.msk.f32.mxu0 %vm6874_vm1, %v6873_v3  ;;  %5686 = vmatprep.mubr.msk.f32.mxu1 %vm6874_vm1, %v6873_v3  ;;  %vm104_vm10 = vcmp.eq.s32.totalorder %v6960_v41, %v91_v63 }
  0xae   :  { %6390 = vmatprep.subr.bf16.mxu1 %v6876_v59  ;;  %v111_v7 = vsel %vm104_vm10, 1.0, %v6873_v3 }
  0xaf   :  { %6392 = vmatpush3.bf16.msra.mxu1 %v6391_v62  ;;  %v396_v27 = vsub.f32 %v111_v7, %v7036_v5 }
  0xb0   :  { %5664 = vmatmul.mubr.msk.f32.gmra.mrb[4].mxu0 %vm150_vm4, %v7022_v2  ;;  %5687 = vmatmul.mubr.msk.f32.gmra.mrb[4].mxu1 %vm150_vm4, %v7019_v1  ;;  %v94_v4 = vpop.permute.xlu0 %93 }
  0xb1   :  { %5666 = vmatprep.mubr.msk.f32.mxu0 %vm6874_vm1, %v6873_v3  ;;  %5689 = vmatprep.mubr.msk.f32.mxu1 %vm6874_vm1, %v6873_v3  ;;  %vm105_vm12 = vcmp.eq.s32.totalorder %v6960_v41, %v94_v4 }
  0xb2   :  { %6399 = vmatprep.subr.bf16.mxu1 %v6876_v59  ;;  %v112_v10 = vsel %vm105_vm12, 1.0, %v6873_v3 }
  0xb3   :  { %v397_v28 = vsub.f32 %v112_v10, %v7049_v9 }
  0xb4   :  { %5667 = vmatmul.mubr.msk.f32.gmra.mrb[6].mxu0 %vm150_vm4, %v111_v7  ;;  %5690 = vmatmul.mubr.msk.f32.gmra.mrb[6].mxu1 %vm150_vm4, %v7036_v5  ;;  %v97_v8 = vpop.permute.xlu0 %96 }
  0xb5   :  { %5669 = vmatprep.mubr.msk.f32.mxu0 %vm6874_vm1, %v6873_v3  ;;  %5692 = vmatprep.mubr.msk.f32.mxu1 %vm6874_vm1, %v6873_v3  ;;  %vm106_vm14 = vcmp.eq.s32.totalorder %v6960_v41, %v97_v8 }
  0xb6   :  { %v113_v14 = vsel %vm106_vm14, 1.0, %v6873_v3 }
  0xb7   :  { %v398_v29 = vsub.f32 %v113_v14, %v7062_v13 }
  0xb8   :  { %5670 = vmatmul.mubr.msk.f32.gmra.mrb[8].mxu0 %vm150_vm4, %v112_v10  ;;  %5693 = vmatmul.mubr.msk.f32.gmra.mrb[8].mxu1 %vm150_vm4, %v7049_v9  ;;  %v100_v11 = vpop.permute.xlu0 %99 }
  0xb9   :  { %5672 = vmatprep.mubr.msk.f32.mxu0 %vm6874_vm1, %v6873_v3  ;;  %5695 = vmatprep.mubr.msk.f32.mxu1 %vm6874_vm1, %v6873_v3  ;;  %vm107_vm2 = vcmp.eq.s32.totalorder %v6960_v41, %v100_v11 }
  0xba   :  { %v114_v19 = vsel %vm107_vm2, 1.0, %v6873_v3 }
  0xbb   :  { %v399_v30 = vsub.f32 %v114_v19, %v7081_v18 }
  0xbc   :  { %5673 = vmatmul.mubr.msk.f32.gmra.mrb[10].mxu0 %vm150_vm4, %v113_v14  ;;  %5696 = vmatmul.mubr.msk.f32.gmra.mrb[10].mxu1 %vm150_vm4, %v7062_v13  ;;  %v402_v15 = vpop.permute.xlu0 %401 }
  0xbd   :  { %5675 = vmatprep.mubr.msk.f32.mxu0 %vm6874_vm1, %v6873_v3  ;;  %5698 = vmatprep.mubr.msk.f32.mxu1 %vm6874_vm1, %v6873_v3 }
  0xbe   :  { %5702 = vmatpush3.msra.mxu0 %v402_v15 }
  0xbf   :  { %6393 = vmatprep.subr.bf16.mxu0 %v6876_v59 }
  0xc0   :  { %5676 = vmatmul.mubr.msk.f32.gmra.mrb[12].mxu0 %vm150_vm4, %v114_v19  ;;  %5699 = vmatmul.mubr.msk.f32.gmra.mrb[12].mxu1 %vm150_vm4, %v7081_v18 }
  0xc1   :  { %5703 = vmatprep.mubr.msk.f32.mxu0 %vm6874_vm1, %v6873_v3  ;;  %5732 = vmatprep.mubr.msk.f32.mxu1 %vm6874_vm1, %v6873_v3 }
  0xc4   :  { %5704 = vmatmul.mubr.msk.f32.vlgmr.msra.gmra.mrb[14].mxu0 %vm150_vm4, %v393_v21 }
  0xc5   :  { %5706 = vmatprep.mubr.msk.f32.mxu0 %vm6874_vm1, %v6873_v3  ;;  %6395 = vmatpush3.bf16.msra.mxu0 %v6394_v20 }
  0xc6   :  { %6396 = vmatprep.subr.bf16.mxu0 %v6876_v59 }
  0xc8   :  { %5707 = vmatmul.mubr.msk.f32.gmra.mrb[16].mxu0 %vm150_vm4, %v394_v25 }
  0xc9   :  { %5709 = vmatprep.mubr.msk.f32.mxu0 %vm6874_vm1, %v6873_v3  ;;  %6398 = vmatpush3.bf16.msra.mxu0 %v6397_v24 }
  0xca   :  { %6405 = vmatprep.subr.bf16.mxu0 %v6876_v59 }
  0xcc   :  { %5710 = vmatmul.mubr.msk.f32.gmra.mrb[18].mxu0 %vm150_vm4, %v395_v26 }
  0xcd   :  { %5712 = vmatprep.mubr.msk.f32.mxu0 %vm6874_vm1, %v6873_v3 }
  0xd0   :  { %5713 = vmatmul.mubr.msk.f32.gmra.mrb[20].mxu0 %vm150_vm4, %v396_v27 }
  0xd1   :  { %5715 = vmatprep.mubr.msk.f32.mxu0 %vm6874_vm1, %v6873_v3 }
  0xd4   :  { %5716 = vmatmul.mubr.msk.f32.gmra.mrb[22].mxu0 %vm150_vm4, %v397_v28 }
  0xd5   :  { %5718 = vmatprep.mubr.msk.f32.mxu0 %vm6874_vm1, %v6873_v3 }
  0xd8   :  { %5719 = vmatmul.mubr.msk.f32.gmra.mrb[24].mxu0 %vm150_vm4, %v398_v29 }
  0xd9   :  { %5721 = vmatprep.mubr.msk.f32.mxu0 %vm6874_vm1, %v6873_v3 }
  0xdc   :  { %5722 = vmatmul.mubr.msk.f32.gmra.mrb[26].mxu0 %vm150_vm4, %v399_v30 }
  0xdd   :  { %5761 = vmatprep.mubr.msk.f32.mxu0 %vm6874_vm1, %v6873_v3 }
 0x17b   :  { %v238_v31 = vpop.f32.mrb[0].mxu0  ;;  %v359_v32 = vpop.f32.mrb[0].mxu1 }
 0x17c   :  { %v5659_v33 = vpop.f32.mrb[1].mxu0  ;;  %v5682_v34 = vpop.f32.mrb[1].mxu1  ;;  %5733 = vmatmul.mubr.msk.f32.vlgmr.msra.gmra.mrb[14].mxu1 %vm562_vm3, %v238_v31  ;;  %5762 = vmatmul.mubr.msk.f32.vlgmr.msra.gmra.mrb[28].mxu0 %vm562_vm3, %v359_v32 }
 0x17d   :  { %5735 = vmatprep.mubr.msk.f32.mxu1 %vm6874_vm1, %v6873_v3  ;;  %5764 = vmatprep.mubr.msk.f32.mxu0 %vm6874_vm1, %v6873_v3  ;;  %v885_v34 = vld [vmem:[%s8393_s3 + $0x60] sm:$0xff] }
 0x17f   :  { %v243_v35 = vpop.f32.mrb[2].mxu0  ;;  %v364_v36 = vpop.f32.mrb[2].mxu1 }
 0x180   :  { %v5662_v37 = vpop.f32.mrb[3].mxu0  ;;  %v5685_v38 = vpop.f32.mrb[3].mxu1  ;;  %5736 = vmatmul.mubr.msk.f32.gmra.mrb[16].mxu1 %vm562_vm3, %v243_v35  ;;  %5765 = vmatmul.mubr.msk.f32.gmra.mrb[30].mxu0 %vm562_vm3, %v364_v36  ;;  %v886_v35 = vld [vmem:[%s8393_s3 + $0x68] sm:$0xff] }
 0x181   :  { %5738 = vmatprep.mubr.msk.f32.mxu1 %vm6874_vm1, %v6873_v3  ;;  %5767 = vmatprep.mubr.msk.f32.mxu0 %vm6874_vm1, %v6873_v3  ;;  %v6400_v36 = vpack.c.bf16 %v886_v35, %v885_v34 }
 0x183   :  { %v248_v39 = vpop.f32.mrb[4].mxu0  ;;  %v369_v40 = vpop.f32.mrb[4].mxu1  ;;  %6401 = vmatpush3.bf16.msra.mxu1 %v6400_v36 }
 0x184   :  { %v5665_v42 = vpop.f32.mrb[5].mxu0  ;;  %v5688_v43 = vpop.f32.mrb[5].mxu1  ;;  %5739 = vmatmul.mubr.msk.f32.gmra.mrb[18].mxu1 %vm562_vm3, %v248_v39  ;;  %5768 = vmatmul.mubr.msk.f32.gmra.mrb[32].mxu0 %vm562_vm3, %v369_v40 }
 0x185   :  { %5741 = vmatprep.mubr.msk.f32.mxu1 %vm6874_vm1, %v6873_v3  ;;  %5770 = vmatprep.mubr.msk.f32.mxu0 %vm6874_vm1, %v6873_v3 }
 0x186   :  { %6402 = vmatprep.subr.bf16.mxu1 %v6876_v59 }
 0x187   :  { %v253_v44 = vpop.f32.mrb[6].mxu0  ;;  %v374_v45 = vpop.f32.mrb[6].mxu1 }
 0x188   :  { %v5668_v46 = vpop.f32.mrb[7].mxu0  ;;  %v5691_v47 = vpop.f32.mrb[7].mxu1  ;;  %5742 = vmatmul.mubr.msk.f32.gmra.mrb[20].mxu1 %vm562_vm3, %v253_v44  ;;  %5771 = vmatmul.mubr.msk.f32.gmra.mrb[34].mxu0 %vm562_vm3, %v374_v45 }
 0x189   :  { %5744 = vmatprep.mubr.msk.f32.mxu1 %vm6874_vm1, %v6873_v3  ;;  %5773 = vmatprep.mubr.msk.f32.mxu0 %vm6874_vm1, %v6873_v3 }
 0x18b   :  { %v258_v48 = vpop.f32.mrb[8].mxu0  ;;  %v379_v49 = vpop.f32.mrb[8].mxu1 }
 0x18c   :  { %v5671_v50 = vpop.f32.mrb[9].mxu0  ;;  %v5694_v52 = vpop.f32.mrb[9].mxu1  ;;  %5745 = vmatmul.mubr.msk.f32.gmra.mrb[22].mxu1 %vm562_vm3, %v258_v48  ;;  %5774 = vmatmul.mubr.msk.f32.gmra.mrb[36].mxu0 %vm562_vm3, %v379_v49 }
 0x18d   :  { %5747 = vmatprep.mubr.msk.f32.mxu1 %vm6874_vm1, %v6873_v3  ;;  %5776 = vmatprep.mubr.msk.f32.mxu0 %vm6874_vm1, %v6873_v3 }
 0x18f   :  { %v263_v54 = vpop.f32.mrb[10].mxu0  ;;  %v384_v55 = vpop.f32.mrb[10].mxu1 }
 0x190   :  { %v5674_v56 = vpop.f32.mrb[11].mxu0  ;;  %v5697_v57 = vpop.f32.mrb[11].mxu1  ;;  %5748 = vmatmul.mubr.msk.f32.gmra.mrb[24].mxu1 %vm562_vm3, %v263_v54  ;;  %5777 = vmatmul.mubr.msk.f32.gmra.mrb[38].mxu0 %vm562_vm3, %v384_v55 }
 0x191   :  { %5750 = vmatprep.mubr.msk.f32.mxu1 %vm6874_vm1, %v6873_v3  ;;  %5779 = vmatprep.mubr.msk.f32.mxu0 %vm6874_vm1, %v6873_v3 }
 0x193   :  { %v268_v58 = vpop.f32.mrb[12].mxu0  ;;  %v389_v61 = vpop.f32.mrb[12].mxu1 }
 0x194   :  { %v5677_v62 = vpop.f32.mrb[13].mxu0  ;;  %v5700_v63 = vpop.f32.mrb[13].mxu1  ;;  %5751 = vmatmul.mubr.msk.f32.gmra.mrb[26].mxu1 %vm562_vm3, %v268_v58  ;;  %5780 = vmatmul.mubr.msk.f32.gmra.mrb[40].mxu0 %vm562_vm3, %v389_v61 }
 0x195   :  { %5790 = vmatprep.mubr.msk.f32.mxu1 %vm6874_vm1, %v6873_v3  ;;  %5819 = vmatprep.mubr.msk.f32.mxu0 %vm6874_vm1, %v6873_v3 }
 0x197   :  { %v7173_v0 = vpop.f32.mrb[14].mxu0 }
 0x198   :  { %v525_v2 = vmul.f32 %v7173_v0, %v7173_v0  ;;  %v5705_v4 = vpop.f32.mrb[15].mxu0 }
 0x19a   :  { %v533_v6 = vsel %vm532_vm5, %v525_v2, 0.0 }
 0x19b   :  { %534 = vadd.xlane.f32.xlu1 %v533_v6  ;;  %v7178_v7 = vpop.f32.mrb[16].mxu0 }
 0x19c   :  { %v526_v8 = vmul.f32 %v7178_v7, %v7178_v7  ;;  %v5708_v10 = vpop.f32.mrb[17].mxu0 }
 0x19e   :  { %v536_v11 = vsel %vm532_vm5, %v526_v8, 0.0 }
 0x19f   :  { %537 = vadd.xlane.f32.xlu0 %v536_v11  ;;  %v7183_v12 = vpop.f32.mrb[18].mxu0 }
 0x1a0   :  { %v527_v14 = vmul.f32 %v7183_v12, %v7183_v12  ;;  %v5711_v15 = vpop.f32.mrb[19].mxu0 }
 0x1a2   :  { %v539_v16 = vsel %vm532_vm5, %v527_v14, 0.0 }
 0x1a3   :  { %540 = vadd.xlane.f32.xlu0 %v539_v16  ;;  %v7188_v17 = vpop.f32.mrb[20].mxu0 }
 0x1a4   :  { %v528_v19 = vmul.f32 %v7188_v17, %v7188_v17  ;;  %v5714_v20 = vpop.f32.mrb[21].mxu0 }
 0x1a6   :  { %v542_v21 = vsel %vm532_vm5, %v528_v19, 0.0 }
 0x1a7   :  { %543 = vadd.xlane.f32.xlu1 %v542_v21  ;;  %v7193_v22 = vpop.f32.mrb[22].mxu0 }
 0x1a8   :  { %v529_v23 = vmul.f32 %v7193_v22, %v7193_v22  ;;  %v5717_v24 = vpop.f32.mrb[23].mxu0 }
 0x1aa   :  { %v545_v25 = vsel %vm532_vm5, %v529_v23, 0.0 }
 0x1ab   :  { %546 = vadd.xlane.f32.xlu0 %v545_v25  ;;  %v7198_v26 = vpop.f32.mrb[24].mxu0 }
 0x1ac   :  { %v530_v27 = vmul.f32 %v7198_v26, %v7198_v26  ;;  %v5720_v28 = vpop.f32.mrb[25].mxu0 }
 0x1ae   :  { %v548_v29 = vsel %vm532_vm5, %v530_v27, 0.0 }
 0x1af   :  { %549 = vadd.xlane.f32.xlu1 %v548_v29  ;;  %v7203_v30 = vpop.f32.mrb[26].mxu0 }
 0x1b0   :  { %v531_v31 = vmul.f32 %v7203_v30, %v7203_v30  ;;  %v5723_v32 = vpop.f32.mrb[27].mxu0 }
 0x1b2   :  { %v551_v33 = vsel %vm532_vm5, %v531_v31, 0.0 }
 0x1b3   :  { %552 = vadd.xlane.f32.xlu0 %v551_v33 }
 0x1e2   :  { %1337 = vxpose.xlu1.b32.start [1/7] (short) (narrow) %v6979_v53, 8  ;;  %v887_v53 = vld [vmem:[%s8393_s3 + $0x70] sm:$0xff] }
 0x1e6   :  { %1338 = vxpose.xlu1.b32.cont [2/7] (short) (narrow) %v7002_v60, 8  ;;  %v888_v60 = vld [vmem:[%s8393_s3 + $0x78] sm:$0xff] }
 0x1e7   :  { %v6403_v37 = vpack.c.bf16 %v888_v60, %v887_v53 }
 0x1e9   :  { %6404 = vmatpush3.bf16.msra.mxu1 %v6403_v37 }
 0x1ea   :  { %1339 = vxpose.xlu1.b32.cont [3/7] (short) (narrow) %v7019_v1, 8  ;;  %6411 = vmatprep.subr.bf16.mxu1 %v6876_v59  ;;  %v7232_v1 = vld [vmem:[%s8393_s3 + $0x50] ss:$0 sm:$0xff] }
 0x1ee   :  { %1340 = vxpose.xlu1.b32.cont [4/7] (short) (narrow) %v7036_v5, 8 }
 0x1f2   :  { %1341 = vxpose.xlu1.b32.cont [5/7] (short) (narrow) %v7049_v9, 8  ;;  %v7238_v9 = vld [vmem:[%s8393_s3 + $0x58] ss:$0 sm:$0xff] }
 0x1f6   :  { %1342 = vxpose.xlu1.b32.cont [6/7] (short) (narrow) %v7062_v13, 8 }
 0x1fa   :  { %1343 = vxpose.xlu1.b32.end [7/7] (short) (narrow) %v7081_v18, 8 }
 0x228   :  { %v535_v38 = vpop.xlane.xlu1 %534 }
 0x229   :  { %v810_v5 = vmul.f32 %v7232_v1, %v535_v38 }
 0x22c   :  { %v538_v39 = vpop.xlane.xlu0 %537 }
 0x22d   :  { %v811_v47 = vmul.f32 %v7232_v1, %v538_v39 }
 0x230   :  { %v541_v54 = vpop.xlane.xlu0 %540 }
 0x231   :  { %v812_v61 = vmul.f32 %v7232_v1, %v541_v54 }
 0x234   :  { %v544_v6 = vpop.xlane.xlu1 %543 }
 0x235   :  { %v813_v15 = vmul.f32 %v7232_v1, %v544_v6 }
 0x238   :  { %v547_v23 = vpop.xlane.xlu0 %546 }
 0x239   :  { %v814_v29 = vmul.f32 %v7232_v1, %v547_v23 }
 0x23c   :  { %v550_v35 = vpop.xlane.xlu1 %549 }
 0x24f   :  { %v650_v40 = vpop.f32.mrb[14].mxu1  ;;  %v771_v42 = vpop.f32.mrb[28].mxu0 }
 0x250   :  { %v772_v43 = vadd.f32 %v771_v42, %v650_v40  ;;  %v5734_v44 = vpop.f32.mrb[15].mxu1  ;;  %v5763_v45 = vpop.f32.mrb[29].mxu0  ;;  %v815_v40 = vmul.f32 %v7232_v1, %v550_v35  ;;  %v1065_v35 = vld [vmem:[%s8393_s3 + $0x90] sm:$0xff] }
 0x251   :  { %v553_v45 = vpop.xlane.xlu0 %552 }
 0x252   :  { %v817_v13 = vadd.f32 %v810_v5, %v772_v43 }
 0x253   :  { %v655_v18 = vpop.f32.mrb[16].mxu1  ;;  %v776_v46 = vpop.f32.mrb[30].mxu0 }
 0x254   :  { %v7242_v48 = vadd.f32 %v7238_v9, %v817_v13  ;;  %v777_v49 = vadd.f32 %v776_v46, %v655_v18  ;;  %v5737_v50 = vpop.f32.mrb[17].mxu1  ;;  %v5766_v52 = vpop.f32.mrb[31].mxu0 }
 0x255   :  { %v816_v52 = vmul.f32 %v7232_v1, %v553_v45 }
 0x256   :  { %v5134_v55 = vmul.f32 -1.442695, %v7242_v48  ;;  %v818_v56 = vadd.f32 %v811_v47, %v777_v49 }
 0x257   :  { %v660_v57 = vpop.f32.mrb[18].mxu1  ;;  %v781_v58 = vpop.f32.mrb[32].mxu0 }
 0x258   :  { %6575 = vpow2.f32 %v5134_v55  ;;  %v7247_v62 = vadd.f32 %v7238_v9, %v818_v56  ;;  %v782_v63 = vadd.f32 %v781_v58, %v660_v57  ;;  %v5740_v2 = vpop.f32.mrb[19].mxu1  ;;  %v5769_v4 = vpop.f32.mrb[33].mxu0 }
 0x25a   :  { %v5135_v8 = vmul.f32 -1.442695, %v7247_v62  ;;  %v819_v10 = vadd.f32 %v812_v61, %v782_v63 }
 0x25b   :  { %v665_v11 = vpop.f32.mrb[20].mxu1  ;;  %v786_v14 = vpop.f32.mrb[34].mxu0 }
 0x25c   :  { %6577 = vpow2.f32 %v5135_v8  ;;  %v7252_v16 = vadd.f32 %v7238_v9, %v819_v10  ;;  %v787_v19 = vadd.f32 %v786_v14, %v665_v11  ;;  %v5743_v20 = vpop.f32.mrb[21].mxu1  ;;  %v5772_v21 = vpop.f32.mrb[35].mxu0 }
 0x25e   :  { %v5136_v24 = vmul.f32 -1.442695, %v7252_v16  ;;  %v820_v25 = vadd.f32 %v813_v15, %v787_v19 }
 0x25f   :  { %v670_v27 = vpop.f32.mrb[22].mxu1  ;;  %v791_v28 = vpop.f32.mrb[36].mxu0 }
 0x260   :  { %6579 = vpow2.f32 %v5136_v24  ;;  %v7257_v31 = vadd.f32 %v7238_v9, %v820_v25  ;;  %v792_v32 = vadd.f32 %v791_v28, %v670_v27  ;;  %v5746_v33 = vpop.f32.mrb[23].mxu1  ;;  %v5775_v34 = vpop.f32.mrb[37].mxu0 }
 0x261   :  { %v1064_v34 = vld [vmem:[%s8393_s3 + $0x88] sm:$0xff] }
 0x262   :  { %v6576_v36 = vpop.eup %6575  ;;  %v5137_v53 = vmul.f32 -1.442695, %v7257_v31  ;;  %v821_v60 = vadd.f32 %v814_v29, %v792_v32 }
 0x263   :  { %v857_v37 = vadd.f32 1.0, %v6576_v36  ;;  %v675_v38 = vpop.f32.mrb[24].mxu1  ;;  %v796_v39 = vpop.f32.mrb[38].mxu0  ;;  %v6406_v36 = vpack.c.bf16 %v1065_v35, %v1064_v34 }
 0x264   :  { %6581 = vpow2.f32 %v5137_v53  ;;  %v833_v42 = vadd.f32 %v7238_v9, %v821_v60  ;;  %v797_v5 = vadd.f32 %v796_v39, %v675_v38  ;;  %v5749_v43 = vpop.f32.mrb[25].mxu1  ;;  %v5778_v44 = vpop.f32.mrb[39].mxu0  ;;  %v1066_v53 = vld [vmem:[%s8393_s3 + $0x98] sm:$0xff]  ;;  %v1067_v60 = vld [vmem:[%s8393_s3 + $0xa0] sm:$0xff] }
 0x265   :  { %6583 = vrcp.f32 %v857_v37  ;;  %6407 = vmatpush3.bf16.msra.mxu0 %v6406_v36  ;;  %v6409_v37 = vpack.c.bf16 %v1067_v60, %v1066_v53  ;;  %v5141_v38 = vld [vmem:[%s8393_s3 + $0x80] ss:$0 sm:$0xff] }
 0x266   :  { %v6578_v13 = vpop.eup %6577  ;;  %v5138_v18 = vmul.f32 -1.442695, %v833_v42  ;;  %v822_v46 = vadd.f32 %v815_v40, %v797_v5  ;;  %6408 = vmatprep.subr.bf16.mxu0 %v6876_v59 }
 0x267   :  { %v858_v47 = vadd.f32 1.0, %v6578_v13  ;;  %v680_v49 = vpop.f32.mrb[26].mxu1  ;;  %v801_v50 = vpop.f32.mrb[40].mxu0 }
 0x268   :  { %6585 = vpow2.f32 %v5138_v18  ;;  %v834_v54 = vadd.f32 %v7238_v9, %v822_v46  ;;  %v802_v55 = vadd.f32 %v801_v50, %v680_v49  ;;  %v5752_v56 = vpop.f32.mrb[27].mxu1  ;;  %v5781_v57 = vpop.f32.mrb[41].mxu0 }
 0x269   :  { %6587 = vrcp.f32 %v858_v47  ;;  %6410 = vmatpush3.bf16.msra.mxu0 %v6409_v37 }
 0x26a   :  { %v6580_v58 = vpop.eup %6579  ;;  %v5139_v61 = vmul.f32 -1.442695, %v834_v54  ;;  %v823_v63 = vadd.f32 %v816_v52, %v802_v55  ;;  %6435 = vmatprep.subr.bf16.mxu0 %v6876_v59 }
 0x26b   :  { %v859_v2 = vadd.f32 1.0, %v6580_v58 }
 0x26c   :  { %6589 = vpow2.f32 %v5139_v61  ;;  %v835_v4 = vadd.f32 %v7238_v9, %v823_v63 }
 0x26d   :  { %6591 = vrcp.f32 %v859_v2 }
 0x26e   :  { %v6582_v6 = vpop.eup %6581  ;;  %v5140_v8 = vmul.f32 -1.442695, %v835_v4 }
 0x26f   :  { %v6584_v10 = vpop.eup %6583  ;;  %v860_v11 = vadd.f32 1.0, %v6582_v6 }
 0x270   :  { %v878_v1 = vmul.f32 %v6584_v10, %v7242_v48  ;;  %6593 = vpow2.f32 %v5140_v8 }
 0x271   :  { %6595 = vrcp.f32 %v860_v11 }
 0x272   :  { %v6586_v14 = vpop.eup %6585  ;;  %5791 = vmatmul.mubr.msk.f32.vlgmr.msra.gmra.mrb[28].mxu1 %vm562_vm3, %v878_v1 }
 0x273   :  { %v6588_v15 = vpop.eup %6587  ;;  %v861_v19 = vadd.f32 1.0, %v6586_v14  ;;  %5793 = vmatprep.mubr.msk.f32.mxu1 %vm6874_vm1, %v6873_v3 }
 0x274   :  { %v879_v20 = vmul.f32 %v6588_v15, %v7247_v62 }
 0x275   :  { %6597 = vrcp.f32 %v861_v19 }
 0x276   :  { %v6590_v9 = vpop.eup %6589  ;;  %5794 = vmatmul.mubr.msk.f32.gmra.mrb[30].mxu1 %vm562_vm3, %v879_v20 }
 0x277   :  { %v6592_v21 = vpop.eup %6591  ;;  %v862_v23 = vadd.f32 1.0, %v6590_v9  ;;  %5796 = vmatprep.mubr.msk.f32.mxu1 %vm6874_vm1, %v6873_v3 }
 0x278   :  { %v880_v48 = vmul.f32 %v6592_v21, %v7252_v16  ;;  %v1518_v21 = vld [vmem:[%s8393_s3 + $0xc0] sm:$0xff] }
 0x279   :  { %6599 = vrcp.f32 %v862_v23  ;;  %v1519_v23 = vld [vmem:[%s8393_s3 + $0xc8] sm:$0xff] }
 0x27a   :  { %v6594_v24 = vpop.eup %6593  ;;  %5797 = vmatmul.mubr.msk.f32.gmra.mrb[32].mxu1 %vm562_vm3, %v880_v48 }
 0x27b   :  { %v6596_v25 = vpop.eup %6595  ;;  %v863_v27 = vadd.f32 1.0, %v6594_v24  ;;  %5799 = vmatprep.mubr.msk.f32.mxu1 %vm6874_vm1, %v6873_v3 }
 0x27c   :  { %v881_v62 = vmul.f32 %v6596_v25, %v7257_v31 }
 0x27d   :  { %6601 = vrcp.f32 %v863_v27 }
 0x27e   :  { %5800 = vmatmul.mubr.msk.f32.gmra.mrb[34].mxu1 %vm562_vm3, %v881_v62  ;;  %v6436_v62 = vpack.c.bf16 %v1519_v23, %v1518_v21 }
 0x27f   :  { %v6598_v28 = vpop.eup %6597  ;;  %5802 = vmatprep.mubr.msk.f32.mxu1 %vm6874_vm1, %v6873_v3 }
 0x280   :  { %v882_v29 = vmul.f32 %v6598_v28, %v833_v42 }
 0x282   :  { %5803 = vmatmul.mubr.msk.f32.gmra.mrb[36].mxu1 %vm562_vm3, %v882_v29  ;;  %v1520_v29 = vld [vmem:[%s8393_s3 + $0xd0] sm:$0xff] }
 0x283   :  { %v6600_v16 = vpop.eup %6599  ;;  %5805 = vmatprep.mubr.msk.f32.mxu1 %vm6874_vm1, %v6873_v3 }
 0x284   :  { %v883_v32 = vmul.f32 %v6600_v16, %v834_v54  ;;  %v1521_v16 = vld [vmem:[%s8393_s3 + $0xd8] sm:$0xff] }
 0x285   :  { %v6439_v34 = vpack.c.bf16 %v1521_v16, %v1520_v29 }
 0x286   :  { %5806 = vmatmul.mubr.msk.f32.gmra.mrb[38].mxu1 %vm562_vm3, %v883_v32 }
 0x287   :  { %v6602_v33 = vpop.eup %6601  ;;  %5808 = vmatprep.mubr.msk.f32.mxu1 %vm6874_vm1, %v6873_v3 }
 0x288   :  { %v884_v31 = vmul.f32 %v6602_v33, %v835_v4 }
 0x28a   :  { %5809 = vmatmul.mubr.msk.f32.gmra.mrb[40].mxu1 %vm562_vm3, %v884_v31 }
 0x28b   :  { %5854 = vmatprep.mubr.msk.f32.mxu1 %vm6874_vm1, %v6873_v3 }
 0x345   :  { %v981_v39 = vpop.f32.mrb[28].mxu1 }
 0x346   :  { %v982_v40 = vadd.f32 %v5141_v38, %v981_v39  ;;  %v5792_v42 = vpop.f32.mrb[29].mxu1 }
 0x348   :  { %v5149_v5 = vmul.f32 -1.442695, %v982_v40 }
 0x349   :  { %v986_v43 = vpop.f32.mrb[30].mxu1 }
 0x34a   :  { %6603 = vpow2.f32 %v5149_v5  ;;  %v987_v44 = vadd.f32 %v5141_v38, %v986_v43  ;;  %v5795_v45 = vpop.f32.mrb[31].mxu1 }
 0x34c   :  { %v5150_v13 = vmul.f32 -1.442695, %v987_v44 }
 0x34d   :  { %v991_v18 = vpop.f32.mrb[32].mxu1 }
 0x34e   :  { %6605 = vpow2.f32 %v5150_v13  ;;  %v992_v46 = vadd.f32 %v5141_v38, %v991_v18  ;;  %v5798_v47 = vpop.f32.mrb[33].mxu1 }
 0x350   :  { %v5151_v49 = vmul.f32 -1.442695, %v992_v46 }
 0x351   :  { %v996_v50 = vpop.f32.mrb[34].mxu1 }
 0x352   :  { %6607 = vpow2.f32 %v5151_v49  ;;  %v7307_v52 = vadd.f32 %v5141_v38, %v996_v50  ;;  %v5801_v54 = vpop.f32.mrb[35].mxu1  ;;  %v7351_v50 = vpop.trf.xlu1 }
 0x354   :  { %v6604_v55 = vpop.eup %6603  ;;  %v5152_v56 = vmul.f32 -1.442695, %v7307_v52 }
 0x355   :  { %v1036_v57 = vadd.f32 1.0, %v6604_v55  ;;  %v1001_v58 = vpop.f32.mrb[36].mxu1 }
 0x356   :  { %6609 = vpow2.f32 %v5152_v56  ;;  %v7310_v61 = vadd.f32 %v5141_v38, %v1001_v58  ;;  %v5804_v63 = vpop.f32.mrb[37].mxu1 }
 0x357   :  { %6611 = vrcp.f32 %v1036_v57 }
 0x358   :  { %v6606_v2 = vpop.eup %6605  ;;  %v5153_v4 = vmul.f32 -1.442695, %v7310_v61 }
 0x359   :  { %v1037_v6 = vadd.f32 1.0, %v6606_v2  ;;  %v1006_v8 = vpop.f32.mrb[38].mxu1 }
 0x35a   :  { %6613 = vpow2.f32 %v5153_v4  ;;  %v1007_v10 = vadd.f32 %v5141_v38, %v1006_v8  ;;  %v5807_v11 = vpop.f32.mrb[39].mxu1 }
 0x35b   :  { %6615 = vrcp.f32 %v1037_v6 }
 0x35c   :  { %v6608_v1 = vpop.eup %6607  ;;  %v5154_v14 = vmul.f32 -1.442695, %v1007_v10 }
 0x35d   :  { %v1038_v15 = vadd.f32 1.0, %v6608_v1  ;;  %v1011_v19 = vpop.f32.mrb[40].mxu1 }
 0x35e   :  { %6617 = vpow2.f32 %v5154_v14  ;;  %v1012_v20 = vadd.f32 %v5141_v38, %v1011_v19  ;;  %v5810_v9 = vpop.f32.mrb[41].mxu1 }
 0x35f   :  { %6619 = vrcp.f32 %v1038_v15 }
 0x360   :  { %v6610_v48 = vpop.eup %6609  ;;  %v5155_v24 = vmul.f32 -1.442695, %v1012_v20 }
 0x361   :  { %v6612_v25 = vpop.eup %6611  ;;  %v1039_v27 = vadd.f32 1.0, %v6610_v48 }
 0x362   :  { %v1057_v28 = vmul.f32 %v6612_v25, %v982_v40  ;;  %6621 = vpow2.f32 %v5155_v24 }
 0x363   :  { %6623 = vrcp.f32 %v1039_v27 }
 0x364   :  { %v6614_v32 = vpop.eup %6613  ;;  %5820 = vmatmul.mubr.msk.f32.vlgmr.msra.gmra.mrb[42].mxu0 %vm562_vm3, %v1057_v28 }
 0x365   :  { %v6616_v33 = vpop.eup %6615  ;;  %v1040_v31 = vadd.f32 1.0, %v6614_v32  ;;  %5822 = vmatprep.mubr.msk.f32.mxu0 %vm6874_vm1, %v6873_v3  ;;  %6437 = vmatpush3.bf16.msra.mxu0 %v6436_v62 }
 0x366   :  { %v1058_v35 = vmul.f32 %v6616_v33, %v987_v44  ;;  %6438 = vmatprep.subr.bf16.mxu0 %v6876_v59 }
 0x367   :  { %6625 = vrcp.f32 %v1040_v31 }
 0x368   :  { %v6618_v36 = vpop.eup %6617  ;;  %v6412_v53 = vpack.c.bf16 %v1058_v35, %v1057_v28  ;;  %5823 = vmatmul.mubr.msk.f32.gmra.mrb[44].mxu0 %vm562_vm3, %v1058_v35 }
 0x369   :  { %v6620_v60 = vpop.eup %6619  ;;  %v1041_v37 = vadd.f32 1.0, %v6618_v36  ;;  %5825 = vmatprep.mubr.msk.f32.mxu0 %vm6874_vm1, %v6873_v3  ;;  %6440 = vmatpush3.bf16.msra.mxu0 %v6439_v34 }
 0x36a   :  { %v1059_v38 = vmul.f32 %v6620_v60, %v992_v46  ;;  %6413 = vmatpush3.bf16.msra.mxu1 %v6412_v53  ;;  %5907 = vmatprep.subr.mxu0 %v6873_v3  ;;  %v5171_v60 = vld [vmem:[%s8393_s3 + $0xb0] ss:$0 sm:$0xff] }
 0x36b   :  { %6627 = vrcp.f32 %v1041_v37  ;;  %6414 = vmatprep.subr.bf16.mxu1 %v6876_v59 }
 0x36c   :  { %v6622_v39 = vpop.eup %6621  ;;  %5826 = vmatmul.mubr.msk.f32.gmra.mrb[46].mxu0 %vm562_vm3, %v1059_v38 }
 0x36d   :  { %v6624_v40 = vpop.eup %6623  ;;  %v1042_v42 = vadd.f32 1.0, %v6622_v39  ;;  %5828 = vmatprep.mubr.msk.f32.mxu0 %vm6874_vm1, %v6873_v3 }
 0x36e   :  { %v1060_v5 = vmul.f32 %v6624_v40, %v7307_v52  ;;  %v5156_v52 = vld [vmem:[%s8393_s3 + $0xa8] ss:$0 sm:$0xff] }
 0x36f   :  { %6629 = vrcp.f32 %v1042_v42 }
 0x370   :  { %v6415_v43 = vpack.c.bf16 %v1060_v5, %v1059_v38  ;;  %5829 = vmatmul.mubr.msk.f32.gmra.mrb[48].mxu0 %vm562_vm3, %v1060_v5 }
 0x371   :  { %v6626_v44 = vpop.eup %6625  ;;  %5831 = vmatprep.mubr.msk.f32.mxu0 %vm6874_vm1, %v6873_v3 }
 0x372   :  { %v1061_v45 = vmul.f32 %v6626_v44, %v7310_v61  ;;  %6416 = vmatpush3.bf16.msra.mxu1 %v6415_v43 }
 0x373   :  { %6417 = vmatprep.subr.bf16.mxu1 %v6876_v59 }
 0x374   :  { %5832 = vmatmul.mubr.msk.f32.gmra.mrb[50].mxu0 %vm562_vm3, %v1061_v45 }
 0x375   :  { %v6628_v13 = vpop.eup %6627  ;;  %5834 = vmatprep.mubr.msk.f32.mxu0 %vm6874_vm1, %v6873_v3 }
 0x376   :  { %v1062_v18 = vmul.f32 %v6628_v13, %v1007_v10 }
 0x378   :  { %v6418_v46 = vpack.c.bf16 %v1062_v18, %v1061_v45  ;;  %5835 = vmatmul.mubr.msk.f32.gmra.mrb[52].mxu0 %vm562_vm3, %v1062_v18 }
 0x379   :  { %v6630_v47 = vpop.eup %6629  ;;  %5837 = vmatprep.mubr.msk.f32.mxu0 %vm6874_vm1, %v6873_v3 }
 0x37a   :  { %v1063_v49 = vmul.f32 %v6630_v47, %v1012_v20  ;;  %6419 = vmatpush3.bf16.msra.mxu1 %v6418_v46 }
 0x37b   :  { %5852 = vmatprep.subr.mxu1 %v6873_v3 }
 0x37c   :  { %5838 = vmatmul.mubr.msk.f32.gmra.mrb[54].mxu0 %vm562_vm3, %v1063_v49 }
 0x37d   :  { %5893 = vmatprep.mubr.msk.f32.mxu0 %vm6874_vm1, %v6873_v3 }
 0x37e   :  { %5853 = vmatpush3.msra.mxu1 %v1063_v49 }
 0x37f   :  { %5855 = vmatmul.mubr.msk.f32.vlgmr.msra.gmra.mrb[42].mxu1 %vm1369_vm6, %v7351_v50  ;;  %6420 = vmatprep.subr.bf16.mxu1 %v6876_v59 }
 0x380   :  { %5894 = vmatmul.mubr.msk.f32.vlgmr.msra.gmra.mrb[56].mxu0 %vm562_vm3, %v6973_v51  ;;  %5871 = vmatprep.mubr.msk.f32.mxu1 %vm6874_vm1, %v6873_v3 }
 0x381   :  { %5909 = vmatprep.mubr.msk.f32.mxu0 %vm6874_vm1, %v6873_v3 }
 0x437   :  { %v1160_v54 = vpop.f32.mrb[42].mxu0 }
 0x438   :  { %v1161_v55 = vadd.f32 %v5156_v52, %v1160_v54  ;;  %v5821_v56 = vpop.f32.mrb[43].mxu0 }
 0x43a   :  { %v5164_v57 = vmul.f32 -1.442695, %v1161_v55 }
 0x43b   :  { %v1165_v58 = vpop.f32.mrb[44].mxu0 }
 0x43c   :  { %6631 = vpow2.f32 %v5164_v57  ;;  %v1166_v61 = vadd.f32 %v5156_v52, %v1165_v58  ;;  %v5824_v63 = vpop.f32.mrb[45].mxu0 }
 0x43e   :  { %v5165_v2 = vmul.f32 -1.442695, %v1166_v61 }
 0x43f   :  { %v1170_v4 = vpop.f32.mrb[46].mxu0 }
 0x440   :  { %6633 = vpow2.f32 %v5165_v2  ;;  %v1171_v6 = vadd.f32 %v5156_v52, %v1170_v4  ;;  %v5827_v8 = vpop.f32.mrb[47].mxu0 }
 0x442   :  { %v5166_v10 = vmul.f32 -1.442695, %v1171_v6 }
 0x443   :  { %v1175_v11 = vpop.f32.mrb[48].mxu0 }
 0x444   :  { %6635 = vpow2.f32 %v5166_v10  ;;  %v1176_v1 = vadd.f32 %v5156_v52, %v1175_v11  ;;  %v5830_v14 = vpop.f32.mrb[49].mxu0 }
 0x446   :  { %v6632_v15 = vpop.eup %6631  ;;  %v5167_v19 = vmul.f32 -1.442695, %v1176_v1 }
 0x447   :  { %v1215_v20 = vadd.f32 1.0, %v6632_v15  ;;  %v1180_v9 = vpop.f32.mrb[50].mxu0 }
 0x448   :  { %6637 = vpow2.f32 %v5167_v19  ;;  %v1181_v21 = vadd.f32 %v5156_v52, %v1180_v9  ;;  %v5833_v23 = vpop.f32.mrb[51].mxu0 }
 0x449   :  { %6639 = vrcp.f32 %v1215_v20 }
 0x44a   :  { %v6634_v48 = vpop.eup %6633  ;;  %v5168_v24 = vmul.f32 -1.442695, %v1181_v21 }
 0x44b   :  { %v1216_v25 = vadd.f32 1.0, %v6634_v48  ;;  %v1185_v27 = vpop.f32.mrb[52].mxu0  ;;  %v5189_v48 = vld [vmem:[%s8391_s1 + $0xb0] sm:$0xff] }
 0x44c   :  { %6641 = vpow2.f32 %v5168_v24  ;;  %v1186_v62 = vadd.f32 %v5156_v52, %v1185_v27  ;;  %v5836_v28 = vpop.f32.mrb[53].mxu0 }
 0x44d   :  { %6643 = vrcp.f32 %v1216_v25  ;;  %v5190_v28 = vld [vmem:[%s8391_s1 + $0xb8] sm:$0xff] }
 0x44e   :  { %v6636_v29 = vpop.eup %6635  ;;  %v5169_v16 = vmul.f32 -1.442695, %v1186_v62 }
 0x44f   :  { %v1217_v32 = vadd.f32 1.0, %v6636_v29  ;;  %v1190_v33 = vpop.f32.mrb[54].mxu0 }
 0x450   :  { %6645 = vpow2.f32 %v5169_v16  ;;  %v1191_v31 = vadd.f32 %v5156_v52, %v1190_v33  ;;  %v5839_v34 = vpop.f32.mrb[55].mxu0  ;;  %v5191_v16 = vld [vmem:[%s8391_s1 + $0xc0] sm:$0xff]  ;;  %v5193_v33 = vld [vmem:[%s8391_s1 + $0xd0] sm:$0xff] }
 0x451   :  { %6647 = vrcp.f32 %v1217_v32  ;;  %v5192_v32 = vld [vmem:[%s8391_s1 + $0xc8] sm:$0xff]  ;;  %v5172_v34 = vld [vmem:[%s8393_s3 + $0xb8] ss:$0 sm:$0xff] }
 0x452   :  { %v6638_v35 = vpop.eup %6637  ;;  %v5170_v36 = vmul.f32 -1.442695, %v1191_v31  ;;  %v7367_v53 = vpop.f32.mrb[42].mxu1 }
 0x453   :  { %v6640_v37 = vpop.eup %6639  ;;  %v1218_v38 = vadd.f32 1.0, %v6638_v35  ;;  %v1767_v39 = vand.u32 2147483647, %v7367_v53  ;;  %v7373_v40 = vpop.f32.mrb[56].mxu0 }
 0x454   :  { %v5856_v42 = vpop.f32.mrb[43].mxu1  ;;  %v1236_v5 = vmul.f32 %v6640_v37, %v1161_v55  ;;  %6649 = vpow2.f32 %v5170_v36  ;;  %v5895_v43 = vpop.f32.mrb[57].mxu0 }
 0x455   :  { %6651 = vrcp.f32 %v1218_v38  ;;  %v1768_v44 = vsel %vm562_vm3, %v1767_v39, 0.0 }
 0x456   :  { %v6642_v45 = vpop.eup %6641  ;;  %1769 = vadd.xlane.f32.xlu1 %v1768_v44  ;;  %v1248_v13 = vmul.f32 %v5171_v60, %v1236_v5 }
 0x457   :  { %v6644_v18 = vpop.eup %6643  ;;  %v1219_v46 = vadd.f32 1.0, %v6642_v45 }
 0x458   :  { %v1237_v47 = vmul.f32 %v6644_v18, %v1166_v61  ;;  %v1255_v49 = vsel %vm562_vm3, %v1248_v13, 0.0 }
 0x459   :  { %6653 = vrcp.f32 %v1219_v46  ;;  %1256 = vadd.xlane.f32.xlu0 %v1255_v49 }
 0x45a   :  { %v6646_v52 = vpop.eup %6645  ;;  %v1249_v54 = vmul.f32 %v5171_v60, %v1237_v47 }
 0x45b   :  { %v6648_v56 = vpop.eup %6647  ;;  %v1220_v57 = vadd.f32 1.0, %v6646_v52 }
 0x45c   :  { %v1238_v55 = vmul.f32 %v6648_v56, %v1171_v6  ;;  %v1258_v58 = vsel %vm562_vm3, %v1249_v54, 0.0  ;;  %v5188_v6 = vld [vmem:[%s8391_s1 + $0xa8] sm:$0xff] }
 0x45d   :  { %6655 = vrcp.f32 %v1220_v57  ;;  %1259 = vadd.xlane.f32.xlu0 %v1258_v58  ;;  %v5181_v58 = vld [vmem:[%s8391_s1 + $0x70] sm:$0xff] }
 0x45e   :  { %v6650_v63 = vpop.eup %6649  ;;  %v1250_v2 = vmul.f32 %v5171_v60, %v1238_v55 }
 0x45f   :  { %v6652_v4 = vpop.eup %6651  ;;  %v1221_v8 = vadd.f32 1.0, %v6650_v63  ;;  %v5182_v63 = vld [vmem:[%s8391_s1 + $0x78] sm:$0xff] }
 0x460   :  { %v1239_v10 = vmul.f32 %v6652_v4, %v1176_v1  ;;  %v1261_v61 = vsel %vm562_vm3, %v1250_v2, 0.0  ;;  %v5183_v2 = vld [vmem:[%s8391_s1 + $0x80] sm:$0xff]  ;;  %v5184_v4 = vld [vmem:[%s8391_s1 + $0x88] sm:$0xff] }
 0x461   :  { %6657 = vrcp.f32 %v1221_v8  ;;  %1262 = vadd.xlane.f32.xlu0 %v1261_v61  ;;  %v5185_v8 = vld [vmem:[%s8391_s1 + $0x90] sm:$0xff] }
 0x462   :  { %v1251_v11 = vmul.f32 %v5171_v60, %v1239_v10 }
 0x463   :  { %v6654_v14 = vpop.eup %6653 }
 0x464   :  { %v1240_v15 = vmul.f32 %v6654_v14, %v1181_v21  ;;  %v1264_v19 = vsel %vm562_vm3, %v1251_v11, 0.0 }
 0x465   :  { %1265 = vadd.xlane.f32.xlu0 %v1264_v19 }
 0x466   :  { %v1252_v20 = vmul.f32 %v5171_v60, %v1240_v15 }
 0x467   :  { %v6656_v9 = vpop.eup %6655  ;;  %1836 = vperm.xlu1 %6572, %v5188_v6  }
 0x468   :  { %v1241_v23 = vmul.f32 %v6656_v9, %v1186_v62  ;;  %v1267_v1 = vsel %vm562_vm3, %v1252_v20, 0.0 }
 0x469   :  { %1268 = vadd.xlane.f32.xlu0 %v1267_v1 }
 0x46a   :  { %v1253_v24 = vmul.f32 %v5171_v60, %v1241_v23 }
 0x46b   :  { %v6658_v21 = vpop.eup %6657  ;;  %1839 = vperm.xlu1 %6572, %v5189_v48  }
 0x46c   :  { %v1242_v25 = vmul.f32 %v6658_v21, %v1191_v31  ;;  %v1270_v27 = vsel %vm562_vm3, %v1253_v24, 0.0  ;;  %v5194_v31 = vld [vmem:[%s8391_s1 + $0xd8] sm:$0xff] }
 0x46d   :  { %1271 = vadd.xlane.f32.xlu0 %v1270_v27 }
 0x46e   :  { %v1254_v29 = vmul.f32 %v5171_v60, %v1242_v25  ;;  %v1522_v25 = vld [vmem:[%s8393_s3 + $0xe0] sm:$0xff] }
 0x46f   :  { %1842 = vperm.xlu1 %6572, %v5190_v28  }
 0x470   :  { %v1273_v62 = vsel %vm562_vm3, %v1254_v29, 0.0 }
 0x471   :  { %1274 = vadd.xlane.f32.xlu0 %v1273_v62  ;;  %v1687_v62 = vld [vmem:[%s8393_s3 + $0x118] sm:$0xff] }
 0x473   :  { %1845 = vperm.xlu1 %6572, %v5191_v16  }
 0x477   :  { %1848 = vperm.xlu1 %6572, %v5192_v32  }
 0x47b   :  { %1851 = vperm.xlu1 %6572, %v5193_v33  }
 0x47f   :  { %1854 = vperm.xlu1 %6572, %v5194_v31  }
 0x4e6   :  { %v1257_v35 = vpop.xlane.xlu0 %1256 }
 0x4e7   :  { %v1281_v36 = vadd.f32 %v5172_v34, %v1257_v35 }
 0x4e9   :  { %6659 = vtanh.f32 %v1281_v36 }
 0x4ea   :  { %v1260_v60 = vpop.xlane.xlu0 %1259 }
 0x4eb   :  { %v1282_v37 = vadd.f32 %v5172_v34, %v1260_v60 }
 0x4ed   :  { %6661 = vtanh.f32 %v1282_v37 }
 0x4ee   :  { %v1263_v38 = vpop.xlane.xlu0 %1262 }
 0x4ef   :  { %v1283_v39 = vadd.f32 %v5172_v34, %v1263_v38 }
 0x4f1   :  { %6663 = vtanh.f32 %v1283_v39 }
 0x4f2   :  { %v1266_v42 = vpop.xlane.xlu0 %1265 }
 0x4f3   :  { %v6660_v5 = vpop.eup %6659  ;;  %v1284_v43 = vadd.f32 %v5172_v34, %v1266_v42 }
 0x4f4   :  { %1297 = vperm.xlu0 %6571, %v6660_v5  }
 0x4f5   :  { %6665 = vtanh.f32 %v1284_v43  ;;  %v5179_v43 = vld [vmem:[%s8393_s3 + $0x128] ss:$0 sm:$0xff] }
 0x4f6   :  { %v1269_v44 = vpop.xlane.xlu0 %1268 }
 0x4f7   :  { %v6662_v45 = vpop.eup %6661  ;;  %v1285_v13 = vadd.f32 %v5172_v34, %v1269_v44 }
 0x4f8   :  { %1302 = vperm.xlu0 %6571, %v6662_v45  }
 0x4f9   :  { %6667 = vtanh.f32 %v1285_v13 }
 0x4fa   :  { %v1272_v18 = vpop.xlane.xlu0 %1271 }
 0x4fb   :  { %v6664_v46 = vpop.eup %6663  ;;  %v1286_v47 = vadd.f32 %v5172_v34, %v1272_v18 }
 0x4fc   :  { %1307 = vperm.xlu0 %6571, %v6664_v46  }
 0x4fd   :  { %6669 = vtanh.f32 %v1286_v47 }
 0x4fe   :  { %v1275_v49 = vpop.xlane.xlu0 %1274 }
 0x4ff   :  { %v6666_v52 = vpop.eup %6665  ;;  %v1287_v54 = vadd.f32 %v5172_v34, %v1275_v49  ;;  %v5177_v34 = vld [vmem:[%s8393_s3 + $0x100] ss:$0 sm:$0xff]  ;;  %v5186_v49 = vld [vmem:[%s8391_s1 + $0x98] sm:$0xff] }
 0x500   :  { %1312 = vperm.xlu0 %6571, %v6666_v52   ;;  %v5187_v52 = vld [vmem:[%s8391_s1 + $0xa0] sm:$0xff] }
 0x501   :  { %6671 = vtanh.f32 %v1287_v54 }
 0x503   :  { %v6668_v56 = vpop.eup %6667 }
 0x504   :  { %1317 = vperm.xlu0 %6571, %v6668_v56  }
 0x507   :  { %v6670_v57 = vpop.eup %6669 }
 0x508   :  { %1322 = vperm.xlu0 %6571, %v6670_v57  }
 0x50b   :  { %v6672_v55 = vpop.eup %6671 }
 0x50c   :  { %1327 = vperm.xlu0 %6571, %v6672_v55  }
 0x510   :  { %1801 = vperm.xlu0 %6571, %v5181_v58  }
 0x514   :  { %1804 = vperm.xlu0 %6571, %v5182_v63  }
 0x518   :  { %1807 = vperm.xlu0 %6571, %v5183_v2  }
 0x51c   :  { %1810 = vperm.xlu0 %6571, %v5184_v4  }
 0x520   :  { %1813 = vperm.xlu0 %6571, %v5185_v8  }
 0x573   :  { %v1298_v10 = vpop.permute.xlu0 %1297 }
 0x574   :  { %v1330_v11 = vmul.f32 %v1298_v10, %v7173_v0 }
 0x577   :  { %v1303_v61 = vpop.permute.xlu0 %1302 }
 0x578   :  { %v1331_v14 = vmul.f32 %v1303_v61, %v7178_v7 }
 0x57a   :  { %v6421_v15 = vpack.c.bf16 %v1331_v14, %v1330_v11 }
 0x57b   :  { %v1308_v19 = vpop.permute.xlu0 %1307 }
 0x57c   :  { %6422 = vmatpush3.bf16.msra.mxu1 %v6421_v15  ;;  %v1332_v20 = vmul.f32 %v1308_v19, %v7183_v12  ;;  %v1523_v12 = vld [vmem:[%s8393_s3 + $0xe8] sm:$0xff] }
 0x57d   :  { %6423 = vmatprep.subr.bf16.mxu1 %v6876_v59  ;;  %v6430_v27 = vpack.c.bf16 %v1523_v12, %v1522_v25 }
 0x57f   :  { %v1313_v6 = vpop.permute.xlu0 %1312 }
 0x580   :  { %v1333_v9 = vmul.f32 %v1313_v6, %v7188_v17 }
 0x582   :  { %v6424_v23 = vpack.c.bf16 %v1333_v9, %v1332_v20 }
 0x583   :  { %v1318_v1 = vpop.permute.xlu0 %1317 }
 0x584   :  { %6425 = vmatpush3.bf16.msra.mxu1 %v6424_v23  ;;  %v1334_v0 = vmul.f32 %v1318_v1, %v7193_v22  ;;  %v1524_v22 = vld [vmem:[%s8393_s3 + $0xf0] sm:$0xff] }
 0x585   :  { %6426 = vmatprep.subr.bf16.mxu1 %v6876_v59 }
 0x587   :  { %v1323_v48 = vpop.permute.xlu0 %1322 }
 0x588   :  { %v1335_v7 = vmul.f32 %v1323_v48, %v7198_v26  ;;  %v1525_v26 = vld [vmem:[%s8393_s3 + $0xf8] sm:$0xff] }
 0x589   :  { %v6433_v28 = vpack.c.bf16 %v1525_v26, %v1524_v22 }
 0x58a   :  { %v6427_v24 = vpack.c.bf16 %v1335_v7, %v1334_v0 }
 0x58b   :  { %v1328_v21 = vpop.permute.xlu0 %1327 }
 0x58c   :  { %6428 = vmatpush3.bf16.msra.mxu1 %v6427_v24  ;;  %v1336_v17 = vmul.f32 %v1328_v21, %v7203_v30  ;;  %v1685_v30 = vld [vmem:[%s8393_s3 + $0x108] sm:$0xff]  ;;  %v6847_v21 = vld [vmem:[%s8390_s0] sm:$0xff] }
 0x58d   :  { %5869 = vmatprep.subr.mxu1 %v6873_v3 }
 0x58f   :  { %v1802_v54 = vpop.permute.xlu0 %1801 }
 0x590   :  { %5870 = vmatpush3.msra.mxu1 %v1336_v17  ;;  %vm1821_vm9 = vcmp.eq.s32.totalorder %v6960_v41, %v1802_v54 }
 0x591   :  { %5872 = vmatmul.mubr.msk.f32.vlgmr.msra.gmra.mrb[44].mxu1 %vm1369_vm6, %v7351_v50  ;;  %6429 = vmatprep.subr.bf16.mxu1 %v6876_v59  ;;  %v1686_v50 = vld [vmem:[%s8393_s3 + $0x110] sm:$0xff]  ;;  %v7497_v15 = vsel %vm1821_vm9, 1.0, %v6873_v3 }
 0x592   :  { %6431 = vmatpush3.bf16.msra.mxu1 %v6430_v27  ;;  %5882 = vmatprep.mubr.msk.f32.mxu1 %vm6874_vm1, %v6873_v3  ;;  %v6442_v29 = vpack.c.bf16 %v1686_v50, %v1685_v30  ;;  %v2276_v50 = vld [vmem:[%s8393_s3 + $0x150] sm:$0xff] }
 0x593   :  { %6432 = vmatprep.subr.bf16.mxu1 %v6876_v59  ;;  %v1805_v56 = vpop.permute.xlu0 %1804 }
 0x594   :  { %vm1822_vm12 = vcmp.eq.s32.totalorder %v6960_v41, %v1805_v56 }
 0x595   :  { %v7517_v19 = vsel %vm1822_vm12, 1.0, %v6873_v3 }
 0x596   :  { %6434 = vmatpush3.bf16.msra.mxu1 %v6433_v28 }
 0x597   :  { %6441 = vmatprep.subr.bf16.mxu1 %v6876_v59  ;;  %v1808_v57 = vpop.permute.xlu0 %1807 }
 0x598   :  { %vm1823_vm14 = vcmp.eq.s32.totalorder %v6960_v41, %v1808_v57 }
 0x599   :  { %5883 = vmatmul.mubr.msk.f32.vlgmr.msra.gmra.mrb[46].mxu1 %vm562_vm3, %v7367_v53  ;;  %v1688_v53 = vld [vmem:[%s8393_s3 + $0x120] sm:$0xff]  ;;  %v7533_v23 = vsel %vm1823_vm14, 1.0, %v6873_v3 }
 0x59a   :  { %5904 = vmatprep.mubr.msk.f32.mxu1 %vm6874_vm1, %v6873_v3  ;;  %6443 = vmatpush3.bf16.msra.mxu1 %v6442_v29  ;;  %v6445_v16 = vpack.c.bf16 %v1688_v53, %v1687_v62  ;;  %v2277_v29 = vld [vmem:[%s8393_s3 + $0x158] sm:$0xff]  ;;  %v2278_v53 = vld [vmem:[%s8393_s3 + $0x160] sm:$0xff] }
 0x59b   :  { %6444 = vmatprep.subr.bf16.mxu1 %v6876_v59  ;;  %v1811_v58 = vpop.permute.xlu0 %1810  ;;  %v6448_v62 = vpack.c.bf16 %v2277_v29, %v2276_v50 }
 0x59c   :  { %vm1824_vm2 = vcmp.eq.s32.totalorder %v6960_v41, %v1811_v58 }
 0x59d   :  { %v7549_v7 = vsel %vm1824_vm2, 1.0, %v6873_v3 }
 0x59e   :  { %6446 = vmatpush3.bf16.msra.mxu1 %v6445_v16  ;;  %v2279_v16 = vld [vmem:[%s8393_s3 + $0x168] sm:$0xff] }
 0x59f   :  { %5930 = vmatprep.subr.mxu1 %v6873_v3  ;;  %v1814_v2 = vpop.permute.xlu0 %1813 }
 0x664   :  { %v1509_v32 = vpop.f32.mrb[44].mxu1 }
 0x665   :  { %v5873_v33 = vpop.f32.mrb[45].mxu1 }
 0x666   :  { %v2272_v33 = vld [vmem:[%s8393_s3 + $0x130] sm:$0xff] }
 0x66c   :  { %v1595_v31 = vpop.f32.mrb[46].mxu1 }
 0x66d   :  { %v1669_v35 = vadd.f32 %v7373_v40, %v1595_v31  ;;  %v5884_v36 = vpop.f32.mrb[47].mxu1  ;;  %v1770_v40 = vpop.xlane.xlu1 %1769  ;;  %v2273_v31 = vld [vmem:[%s8393_s3 + $0x138] sm:$0xff] }
 0x66e   :  { %vm1771_vm7 = vcmp.gt.f32.partialorder %v1770_v40, 0.0 }
 0x66f   :  { %v1677_v60 = vadd.f32 %v5177_v34, %v1669_v35  ;;  %v6454_v34 = vpack.c.bf16 %v2273_v31, %v2272_v33 }
 0x671   :  { %v5178_v37 = vmul.f32 -1.442695, %v1677_v60  ;;  %v1837_v55 = vpop.permute.xlu1 %1836 }
 0x672   :  { %vm1856_vm8 = vcmp.eq.s32.totalorder %v6960_v41, %v1837_v55 }
 0x673   :  { %6673 = vpow2.f32 %v5178_v37  ;;  %v7494_v11 = vsel %vm1856_vm8, 1.0, %v6873_v3  ;;  %vm1825_vm8 = vcmp.eq.s32.totalorder %v6960_v41, %v1814_v2  ;;  %v2275_v37 = vld [vmem:[%s8393_s3 + $0x148] sm:$0xff] }
 0x674   :  { %v1832_v17 = vsel %vm1825_vm8, 1.0, %v6873_v3  ;;  %v2112_v35 = vsub.f32 %v7497_v15, %v7494_v11 }
 0x675   :  { %v1840_v63 = vpop.permute.xlu1 %1839 }
 0x676   :  { %vm1857_vm11 = vcmp.eq.s32.totalorder %v6960_v41, %v1840_v63 }
 0x679   :  { %v1843_v4 = vpop.permute.xlu1 %1842 }
 0x67a   :  { %vm1858_vm13 = vcmp.eq.s32.totalorder %v6960_v41, %v1843_v4 }
 0x67b   :  { %v7530_v9 = vsel %vm1858_vm13, 1.0, %v6873_v3 }
 0x67d   :  { %v6674_v38 = vpop.eup %6673  ;;  %v1846_v14 = vpop.permute.xlu1 %1845 }
 0x67e   :  { %v1681_v39 = vadd.f32 1.0, %v6674_v38  ;;  %vm1859_vm15 = vcmp.eq.s32.totalorder %v6960_v41, %v1846_v14 }
 0x67f   :  { %v7546_v48 = vsel %vm1859_vm15, 1.0, %v6873_v3 }
 0x680   :  { %6675 = vrcp.f32 %v1681_v39 }
 0x681   :  { %v1849_v20 = vpop.permute.xlu1 %1848 }
 0x685   :  { %v1852_v0 = vpop.permute.xlu1 %1851 }
 0x686   :  { %vm1861_vm9 = vcmp.eq.s32.totalorder %v6960_v41, %v1852_v0 }
 0x687   :  { %v7582_v22 = vsel %vm1861_vm9, 1.0, %v6873_v3 }
 0x689   :  { %v1855_v27 = vpop.permute.xlu1 %1854 }
 0x68a   :  { %v6676_v42 = vpop.eup %6675 }
 0x68b   :  { %v1684_v5 = vmul.f32 %v6676_v42, %v1677_v60  ;;  %v2274_v60 = vld [vmem:[%s8393_s3 + $0x140] sm:$0xff]  ;;  %v2114_v42 = vsub.f32 %v7533_v23, %v7530_v9 }
 0x68c   :  { %v6457_v38 = vpack.c.bf16 %v2275_v37, %v2274_v60 }
 0x68d   :  { %5905 = vmatmul.mubr.msk.f32.vlgmr.msra.gmra.mrb[48].mxu1 %vm562_vm3, %v1684_v5  ;;  %v2115_v5 = vsub.f32 %v7549_v7, %v7546_v48 }
 0x68e   :  { %5932 = vmatprep.mubr.msk.f32.mxu1 %vm6874_vm1, %v6873_v3 }
 0x760   :  { %v1763_v44 = vpop.f32.mrb[48].mxu1 }
 0x761   :  { %v1764_v45 = vadd.f32 %v5179_v43, %v1763_v44  ;;  %v5906_v13 = vpop.f32.mrb[49].mxu1 }
 0x763   :  { %v1774_v18 = vsel %vm1771_vm7, %v1764_v45, %v6973_v51  ;;  %vm1860_vm7 = vcmp.eq.s32.totalorder %v6960_v41, %v1849_v20 }
 0x764   :  { %v1775_v46 = vand.u32 2147483647, %v1774_v18  ;;  %v1780_v8 = vadd.f32 %v1774_v18, %v6973_v51  ;;  %v7514_v51 = vsel %vm1857_vm11, 1.0, %v6873_v3  ;;  %v7567_v12 = vsel %vm1860_vm7, 1.0, %v6873_v3 }
 0x765   :  { %vm1862_vm11 = vcmp.eq.s32.totalorder %v6960_v41, %v1855_v27  ;;  %v2113_v39 = vsub.f32 %v7517_v19, %v7514_v51  ;;  %v2116_v43 = vsub.f32 %v1832_v17, %v7567_v12 }
 0x766   :  { %v1776_v47 = vsel %vm562_vm3, %v1775_v46, 0.0  ;;  %v7595_v28 = vsel %vm1862_vm11, 1.0, %v6873_v3 }
 0x767   :  { %1777 = vadd.xlane.f32.xlu0 %v1776_v47 }
 0x77d   :  { %1816 = vperm.xlu0 %6571, %v5186_v49  }
 0x781   :  { %1819 = vperm.xlu0 %6571, %v5187_v52  }
 0x785   :  { %1514 = vrot.lane.b32.xlu0 %v1509_v32, %s6877_s24  ;;  %v6451_v32 = vpack.c.bf16 %v2279_v16, %v2278_v53 }
 0x7f4   :  { %v1778_v10 = vpop.xlane.xlu0 %1777 }
 0x7f5   :  { %vm1779_vm10 = vcmp.eq.f32.partialorder %v1778_v10, 0.0 }
 0x7f6   :  { %v7491_v61 = vsel %vm1779_vm10, %v1780_v8, %v1774_v18 }
 0x7f7   :  { %5908 = vmatpush3.msra.mxu0 %v7491_v61  ;;  %5931 = vmatpush3.msra.mxu1 %v7491_v61 }
 0x7f8   :  { %5910 = vmatmul.mubr.msk.f32.vlgmr.msra.gmra.mrb[58].mxu0 %vm150_vm4, %v7497_v15  ;;  %5933 = vmatmul.mubr.msk.f32.vlgmr.msra.gmra.mrb[50].mxu1 %vm150_vm4, %v7494_v11 }
 0x7f9   :  { %5912 = vmatprep.mubr.msk.f32.mxu0 %vm6874_vm1, %v6873_v3  ;;  %5935 = vmatprep.mubr.msk.f32.mxu1 %vm6874_vm1, %v6873_v3 }
 0x7fa   :  { %5953 = vmatprep.subr.mxu0 %v6873_v3  ;;  %6447 = vmatprep.subr.bf16.mxu1 %v6876_v59 }
 0x7fb   :  { %6449 = vmatpush3.bf16.msra.mxu1 %v6448_v62 }
 0x7fc   :  { %5913 = vmatmul.mubr.msk.f32.gmra.mrb[60].mxu0 %vm150_vm4, %v7517_v19  ;;  %5936 = vmatmul.mubr.msk.f32.gmra.mrb[52].mxu1 %vm150_vm4, %v7514_v51  ;;  %v1817_v6 = vpop.permute.xlu0 %1816 }
 0x7fd   :  { %5915 = vmatprep.mubr.msk.f32.mxu0 %vm6874_vm1, %v6873_v3  ;;  %5938 = vmatprep.mubr.msk.f32.mxu1 %vm6874_vm1, %v6873_v3  ;;  %vm1826_vm10 = vcmp.eq.s32.totalorder %v6960_v41, %v1817_v6 }
 0x7fe   :  { %v1833_v26 = vsel %vm1826_vm10, 1.0, %v6873_v3  ;;  %6450 = vmatprep.subr.bf16.mxu1 %v6876_v59 }
 0x7ff   :  { %6452 = vmatpush3.bf16.msra.mxu1 %v6451_v32  ;;  %v2117_v44 = vsub.f32 %v1833_v26, %v7582_v22 }
 0x800   :  { %5916 = vmatmul.mubr.msk.f32.gmra.mrb[62].mxu0 %vm150_vm4, %v7533_v23  ;;  %5939 = vmatmul.mubr.msk.f32.gmra.mrb[54].mxu1 %vm150_vm4, %v7530_v9  ;;  %v1820_v1 = vpop.permute.xlu0 %1819 }
 0x801   :  { %5918 = vmatprep.mubr.msk.f32.mxu0 %vm6874_vm1, %v6873_v3  ;;  %5941 = vmatprep.mubr.msk.f32.mxu1 %vm6874_vm1, %v6873_v3  ;;  %vm1827_vm12 = vcmp.eq.s32.totalorder %v6960_v41, %v1820_v1 }
 0x802   :  { %v1834_v30 = vsel %vm1827_vm12, 1.0, %v6873_v3  ;;  %6459 = vmatprep.subr.bf16.mxu1 %v6876_v59 }
 0x803   :  { %v2118_v40 = vsub.f32 %v1834_v30, %v7595_v28 }
 0x804   :  { %5919 = vmatmul.mubr.msk.f32.gmra.mrb[64].mxu0 %vm150_vm4, %v7549_v7  ;;  %5942 = vmatmul.mubr.msk.f32.gmra.mrb[56].mxu1 %vm150_vm4, %v7546_v48  ;;  %v1515_v24 = vpop.permute.xlu0 %1514 }
 0x805   :  { %v7560_v25 = vadd.f32 %v6847_v21, %v1515_v24  ;;  %5921 = vmatprep.mubr.msk.f32.mxu0 %vm6874_vm1, %v6873_v3  ;;  %5944 = vmatprep.mubr.msk.f32.mxu1 %vm6874_vm1, %v6873_v3 }
 0x807   :  { %2120 = vrot.lane.b32.xlu1 %v7560_v25, %s6875_s19 }
 0x808   :  { %5922 = vmatmul.mubr.msk.f32.gmra.mrb[66].mxu0 %vm150_vm4, %v1832_v17  ;;  %5945 = vmatmul.mubr.msk.f32.gmra.mrb[58].mxu1 %vm150_vm4, %v7567_v12 }
 0x809   :  { %5924 = vmatprep.mubr.msk.f32.mxu0 %vm6874_vm1, %v6873_v3  ;;  %5947 = vmatprep.mubr.msk.f32.mxu1 %vm6874_vm1, %v6873_v3 }
 0x80c   :  { %5925 = vmatmul.mubr.msk.f32.gmra.mrb[68].mxu0 %vm150_vm4, %v1833_v26  ;;  %5948 = vmatmul.mubr.msk.f32.gmra.mrb[60].mxu1 %vm150_vm4, %v7582_v22 }
 0x80d   :  { %5927 = vmatprep.mubr.msk.f32.mxu0 %vm6874_vm1, %v6873_v3  ;;  %5950 = vmatprep.mubr.msk.f32.mxu1 %vm6874_vm1, %v6873_v3 }
 0x810   :  { %5928 = vmatmul.mubr.msk.f32.gmra.mrb[70].mxu0 %vm150_vm4, %v1834_v30  ;;  %5951 = vmatmul.mubr.msk.f32.gmra.mrb[62].mxu1 %vm150_vm4, %v7595_v28 }
 0x811   :  { %5955 = vmatprep.mubr.msk.f32.mxu0 %vm6874_vm1, %v6873_v3  ;;  %5984 = vmatprep.mubr.msk.f32.mxu1 %vm6874_vm1, %v6873_v3 }
 0x879   :  { %v2121_v36 = vpop.permute.xlu1 %2120 }
 0x87a   :  { %5954 = vmatpush3.msra.mxu0 %v2121_v36 }
 0x87b   :  { %5956 = vmatmul.mubr.msk.f32.vlgmr.msra.gmra.mrb[72].mxu0 %vm150_vm4, %v2112_v35  ;;  %6453 = vmatprep.subr.bf16.mxu0 %v6876_v59 }
 0x87c   :  { %5958 = vmatprep.mubr.msk.f32.mxu0 %vm6874_vm1, %v6873_v3  ;;  %6455 = vmatpush3.bf16.msra.mxu0 %v6454_v34 }
 0x87d   :  { %6456 = vmatprep.subr.bf16.mxu0 %v6876_v59 }
 0x87f   :  { %5959 = vmatmul.mubr.msk.f32.gmra.mrb[74].mxu0 %vm150_vm4, %v2113_v39 }
 0x880   :  { %5961 = vmatprep.mubr.msk.f32.mxu0 %vm6874_vm1, %v6873_v3  ;;  %6458 = vmatpush3.bf16.msra.mxu0 %v6457_v38 }
 0x881   :  { %6465 = vmatprep.subr.bf16.mxu0 %v6876_v59 }
 0x883   :  { %5962 = vmatmul.mubr.msk.f32.gmra.mrb[76].mxu0 %vm150_vm4, %v2114_v42 }
 0x884   :  { %5964 = vmatprep.mubr.msk.f32.mxu0 %vm6874_vm1, %v6873_v3 }
 0x887   :  { %5965 = vmatmul.mubr.msk.f32.gmra.mrb[78].mxu0 %vm150_vm4, %v2115_v5 }
 0x888   :  { %5967 = vmatprep.mubr.msk.f32.mxu0 %vm6874_vm1, %v6873_v3 }
 0x88b   :  { %5968 = vmatmul.mubr.msk.f32.gmra.mrb[80].mxu0 %vm150_vm4, %v2116_v43 }
 0x88c   :  { %5970 = vmatprep.mubr.msk.f32.mxu0 %vm6874_vm1, %v6873_v3 }
 0x88f   :  { %5971 = vmatmul.mubr.msk.f32.gmra.mrb[82].mxu0 %vm150_vm4, %v2117_v44 }
 0x890   :  { %5973 = vmatprep.mubr.msk.f32.mxu0 %vm6874_vm1, %v6873_v3 }
 0x893   :  { %5974 = vmatmul.mubr.msk.f32.gmra.mrb[84].mxu0 %vm150_vm4, %v2118_v40 }
 0x894   :  { %6013 = vmatprep.mubr.msk.f32.mxu0 %vm6874_vm1, %v6873_v3 }
 0x8cb   :  { %v1957_v45 = vpop.f32.mrb[58].mxu0  ;;  %v2078_v13 = vpop.f32.mrb[50].mxu1 }
 0x8cc   :  { %v5911_v18 = vpop.f32.mrb[59].mxu0  ;;  %v5934_v46 = vpop.f32.mrb[51].mxu1  ;;  %5985 = vmatmul.mubr.msk.f32.vlgmr.msra.gmra.mrb[64].mxu1 %vm562_vm3, %v1957_v45  ;;  %6014 = vmatmul.mubr.msk.f32.vlgmr.msra.gmra.mrb[86].mxu0 %vm562_vm3, %v2078_v13 }
 0x8cd   :  { %5987 = vmatprep.mubr.msk.f32.mxu1 %vm6874_vm1, %v6873_v3  ;;  %6016 = vmatprep.mubr.msk.f32.mxu0 %vm6874_vm1, %v6873_v3 }
 0x8cf   :  { %v1962_v47 = vpop.f32.mrb[60].mxu0  ;;  %v2083_v49 = vpop.f32.mrb[52].mxu1 }
 0x8d0   :  { %v5914_v52 = vpop.f32.mrb[61].mxu0  ;;  %v5937_v54 = vpop.f32.mrb[53].mxu1  ;;  %5988 = vmatmul.mubr.msk.f32.gmra.mrb[66].mxu1 %vm562_vm3, %v1962_v47  ;;  %6017 = vmatmul.mubr.msk.f32.gmra.mrb[88].mxu0 %vm562_vm3, %v2083_v49  ;;  %v2602_v47 = vld [vmem:[%s8393_s3 + $0x180] sm:$0xff]  ;;  %v2603_v49 = vld [vmem:[%s8393_s3 + $0x188] sm:$0xff] }
 0x8d1   :  { %5990 = vmatprep.mubr.msk.f32.mxu1 %vm6874_vm1, %v6873_v3  ;;  %6019 = vmatprep.mubr.msk.f32.mxu0 %vm6874_vm1, %v6873_v3  ;;  %v6460_v52 = vpack.c.bf16 %v2603_v49, %v2602_v47  ;;  %v2604_v54 = vld [vmem:[%s8393_s3 + $0x190] sm:$0xff] }
 0x8d3   :  { %v1967_v56 = vpop.f32.mrb[62].mxu0  ;;  %v2088_v57 = vpop.f32.mrb[54].mxu1  ;;  %6461 = vmatpush3.bf16.msra.mxu1 %v6460_v52 }
 0x8d4   :  { %v5917_v55 = vpop.f32.mrb[63].mxu0  ;;  %v5940_v58 = vpop.f32.mrb[55].mxu1  ;;  %5991 = vmatmul.mubr.msk.f32.gmra.mrb[68].mxu1 %vm562_vm3, %v1967_v56  ;;  %6020 = vmatmul.mubr.msk.f32.gmra.mrb[90].mxu0 %vm562_vm3, %v2088_v57  ;;  %v2605_v56 = vld [vmem:[%s8393_s3 + $0x198] sm:$0xff] }
 0x8d5   :  { %5993 = vmatprep.mubr.msk.f32.mxu1 %vm6874_vm1, %v6873_v3  ;;  %6022 = vmatprep.mubr.msk.f32.mxu0 %vm6874_vm1, %v6873_v3  ;;  %v6463_v57 = vpack.c.bf16 %v2605_v56, %v2604_v54 }
 0x8d6   :  { %6462 = vmatprep.subr.bf16.mxu1 %v6876_v59 }
 0x8d7   :  { %v1972_v63 = vpop.f32.mrb[64].mxu0  ;;  %v2093_v2 = vpop.f32.mrb[56].mxu1  ;;  %6464 = vmatpush3.bf16.msra.mxu1 %v6463_v57 }
 0x8d8   :  { %v5920_v4 = vpop.f32.mrb[65].mxu0  ;;  %v5943_v8 = vpop.f32.mrb[57].mxu1  ;;  %5994 = vmatmul.mubr.msk.f32.gmra.mrb[70].mxu1 %vm562_vm3, %v1972_v63  ;;  %6023 = vmatmul.mubr.msk.f32.gmra.mrb[92].mxu0 %vm562_vm3, %v2093_v2 }
 0x8d9   :  { %5996 = vmatprep.mubr.msk.f32.mxu1 %vm6874_vm1, %v6873_v3  ;;  %6025 = vmatprep.mubr.msk.f32.mxu0 %vm6874_vm1, %v6873_v3 }
 0x8da   :  { %6471 = vmatprep.subr.bf16.mxu1 %v6876_v59 }
 0x8db   :  { %v1977_v10 = vpop.f32.mrb[66].mxu0  ;;  %v2098_v14 = vpop.f32.mrb[58].mxu1 }
 0x8dc   :  { %v5923_v15 = vpop.f32.mrb[67].mxu0  ;;  %v5946_v19 = vpop.f32.mrb[59].mxu1  ;;  %5997 = vmatmul.mubr.msk.f32.gmra.mrb[72].mxu1 %vm562_vm3, %v1977_v10  ;;  %6026 = vmatmul.mubr.msk.f32.gmra.mrb[94].mxu0 %vm562_vm3, %v2098_v14 }
 0x8dd   :  { %5999 = vmatprep.mubr.msk.f32.mxu1 %vm6874_vm1, %v6873_v3  ;;  %6028 = vmatprep.mubr.msk.f32.mxu0 %vm6874_vm1, %v6873_v3 }
 0x8df   :  { %v1982_v6 = vpop.f32.mrb[68].mxu0  ;;  %v2103_v20 = vpop.f32.mrb[60].mxu1 }
 0x8e0   :  { %v5926_v23 = vpop.f32.mrb[69].mxu0  ;;  %v5949_v1 = vpop.f32.mrb[61].mxu1  ;;  %6000 = vmatmul.mubr.msk.f32.gmra.mrb[74].mxu1 %vm562_vm3, %v1982_v6  ;;  %6029 = vmatmul.mubr.msk.f32.gmra.mrb[96].mxu0 %vm562_vm3, %v2103_v20 }
 0x8e1   :  { %6002 = vmatprep.mubr.msk.f32.mxu1 %vm6874_vm1, %v6873_v3  ;;  %6031 = vmatprep.mubr.msk.f32.mxu0 %vm6874_vm1, %v6873_v3 }
 0x8e3   :  { %v1987_v0 = vpop.f32.mrb[70].mxu0  ;;  %v2108_v7 = vpop.f32.mrb[62].mxu1 }
 0x8e4   :  { %v5929_v24 = vpop.f32.mrb[71].mxu0  ;;  %v5952_v21 = vpop.f32.mrb[63].mxu1  ;;  %6003 = vmatmul.mubr.msk.f32.gmra.mrb[76].mxu1 %vm562_vm3, %v1987_v0  ;;  %6032 = vmatmul.mubr.msk.f32.gmra.mrb[98].mxu0 %vm562_vm3, %v2108_v7 }
 0x8e5   :  { %6042 = vmatprep.mubr.msk.f32.mxu1 %vm6874_vm1, %v6873_v3  ;;  %6071 = vmatprep.mubr.msk.f32.mxu0 %vm6874_vm1, %v6873_v3 }
 0x94e   :  { %v7708_v17 = vpop.f32.mrb[72].mxu0 }
 0x94f   :  { %v2244_v27 = vmul.f32 %v7708_v17, %v7708_v17  ;;  %v5957_v26 = vpop.f32.mrb[73].mxu0 }
 0x951   :  { %v2251_v30 = vsel %vm532_vm5, %v2244_v27, 0.0 }
 0x952   :  { %2252 = vadd.xlane.f32.xlu0 %v2251_v30  ;;  %v7713_v50 = vpop.f32.mrb[74].mxu0 }
 0x953   :  { %v2245_v29 = vmul.f32 %v7713_v50, %v7713_v50  ;;  %v5960_v62 = vpop.f32.mrb[75].mxu0 }
 0x955   :  { %v2254_v53 = vsel %vm532_vm5, %v2245_v29, 0.0 }
 0x956   :  { %2255 = vadd.xlane.f32.xlu1 %v2254_v53  ;;  %v7718_v16 = vpop.f32.mrb[76].mxu0 }
 0x957   :  { %v2246_v32 = vmul.f32 %v7718_v16, %v7718_v16  ;;  %v5963_v33 = vpop.f32.mrb[77].mxu0 }
 0x959   :  { %v2257_v31 = vsel %vm532_vm5, %v2246_v32, 0.0 }
 0x95a   :  { %2258 = vadd.xlane.f32.xlu0 %v2257_v31  ;;  %v7723_v34 = vpop.f32.mrb[78].mxu0 }
 0x95b   :  { %v2247_v35 = vmul.f32 %v7723_v34, %v7723_v34  ;;  %v5966_v36 = vpop.f32.mrb[79].mxu0 }
 0x95d   :  { %v2260_v60 = vsel %vm532_vm5, %v2247_v35, 0.0 }
 0x95e   :  { %2261 = vadd.xlane.f32.xlu0 %v2260_v60  ;;  %v7728_v37 = vpop.f32.mrb[80].mxu0 }
 0x95f   :  { %v2248_v38 = vmul.f32 %v7728_v37, %v7728_v37  ;;  %v5969_v39 = vpop.f32.mrb[81].mxu0 }
 0x960   :  { %v5231_v39 = vld [vmem:[%s8393_s3 + $0x178] ss:$0 sm:$0xff] }
 0x961   :  { %v2263_v42 = vsel %vm532_vm5, %v2248_v38, 0.0 }
 0x962   :  { %2264 = vadd.xlane.f32.xlu1 %v2263_v42  ;;  %v7733_v5 = vpop.f32.mrb[82].mxu0 }
 0x963   :  { %v2249_v43 = vmul.f32 %v7733_v5, %v7733_v5  ;;  %v5972_v44 = vpop.f32.mrb[83].mxu0 }
 0x965   :  { %v2266_v40 = vsel %vm532_vm5, %v2249_v43, 0.0 }
 0x966   :  { %2267 = vadd.xlane.f32.xlu0 %v2266_v40  ;;  %v7738_v45 = vpop.f32.mrb[84].mxu0 }
 0x967   :  { %v2250_v13 = vmul.f32 %v7738_v45, %v7738_v45  ;;  %v5975_v18 = vpop.f32.mrb[85].mxu0 }
 0x969   :  { %v2269_v46 = vsel %vm532_vm5, %v2250_v13, 0.0 }
 0x96a   :  { %2270 = vadd.xlane.f32.xlu1 %v2269_v46 }
 0x993   :  { %3054 = vxpose.xlu0.b32.start [1/7] (short) (narrow) %v7494_v11, 8 }
 0x997   :  { %3055 = vxpose.xlu0.b32.cont [2/7] (short) (narrow) %v7514_v51, 8 }
 0x99b   :  { %3056 = vxpose.xlu0.b32.cont [3/7] (short) (narrow) %v7530_v9, 8 }
 0x99f   :  { %v2367_v55 = vpop.f32.mrb[64].mxu1  ;;  %3057 = vxpose.xlu0.b32.cont [4/7] (short) (narrow) %v7546_v48, 8  ;;  %v2488_v58 = vpop.f32.mrb[86].mxu0 }
 0x9a0   :  { %v2489_v63 = vadd.f32 %v2488_v58, %v2367_v55  ;;  %v5986_v2 = vpop.f32.mrb[65].mxu1  ;;  %v6015_v4 = vpop.f32.mrb[87].mxu0 }
 0x9a3   :  { %v2372_v8 = vpop.f32.mrb[66].mxu1  ;;  %3058 = vxpose.xlu0.b32.cont [5/7] (short) (narrow) %v7567_v12, 8  ;;  %v2493_v10 = vpop.f32.mrb[88].mxu0 }
 0x9a4   :  { %v2494_v14 = vadd.f32 %v2493_v10, %v2372_v8  ;;  %v5989_v15 = vpop.f32.mrb[67].mxu1  ;;  %v6018_v19 = vpop.f32.mrb[89].mxu0 }
 0x9a7   :  { %v2377_v6 = vpop.f32.mrb[68].mxu1  ;;  %3059 = vxpose.xlu0.b32.cont [6/7] (short) (narrow) %v7582_v22, 8  ;;  %v2498_v11 = vpop.f32.mrb[90].mxu0 }
 0x9a8   :  { %v2499_v51 = vadd.f32 %v2498_v11, %v2377_v6  ;;  %v5992_v9 = vpop.f32.mrb[69].mxu1  ;;  %v6021_v20 = vpop.f32.mrb[91].mxu0 }
 0x9ab   :  { %v2382_v23 = vpop.f32.mrb[70].mxu1  ;;  %3060 = vxpose.xlu0.b32.end [7/7] (short) (narrow) %v7595_v28, 8  ;;  %v2503_v48 = vpop.f32.mrb[92].mxu0  ;;  %v5230_v28 = vld [vmem:[%s8393_s3 + $0x170] ss:$0 sm:$0xff] }
 0x9ac   :  { %v2504_v1 = vadd.f32 %v2503_v48, %v2382_v23  ;;  %v5995_v0 = vpop.f32.mrb[71].mxu1  ;;  %v6024_v7 = vpop.f32.mrb[93].mxu0 }
 0x9af   :  { %v2387_v24 = vpop.f32.mrb[72].mxu1  ;;  %v2508_v12 = vpop.f32.mrb[94].mxu0 }
 0x9b0   :  { %v2509_v21 = vadd.f32 %v2508_v12, %v2387_v24  ;;  %v5998_v27 = vpop.f32.mrb[73].mxu1  ;;  %v6027_v26 = vpop.f32.mrb[95].mxu0 }
 0x9b3   :  { %v2392_v30 = vpop.f32.mrb[74].mxu1  ;;  %v2513_v29 = vpop.f32.mrb[96].mxu0 }
 0x9b4   :  { %v2514_v62 = vadd.f32 %v2513_v29, %v2392_v30  ;;  %v6001_v22 = vpop.f32.mrb[75].mxu1  ;;  %v6030_v53 = vpop.f32.mrb[97].mxu0 }
 0x9b7   :  { %v2397_v32 = vpop.f32.mrb[76].mxu1  ;;  %v2518_v33 = vpop.f32.mrb[98].mxu0 }
 0x9b8   :  { %v2519_v31 = vadd.f32 %v2518_v33, %v2397_v32  ;;  %v6004_v35 = vpop.f32.mrb[77].mxu1  ;;  %v6033_v36 = vpop.f32.mrb[99].mxu0 }
 0x9df   :  { %v2253_v60 = vpop.xlane.xlu0 %2252 }
 0x9e0   :  { %v2527_v38 = vmul.f32 %v5230_v28, %v2253_v60 }
 0x9e2   :  { %v2534_v42 = vadd.f32 %v2527_v38, %v2489_v63 }
 0x9e3   :  { %v2256_v43 = vpop.xlane.xlu1 %2255 }
 0x9e4   :  { %v2546_v44 = vadd.f32 %v5231_v39, %v2534_v42  ;;  %v2528_v40 = vmul.f32 %v5230_v28, %v2256_v43 }
 0x9e6   :  { %v5232_v13 = vmul.f32 -1.442695, %v2546_v44  ;;  %v2535_v18 = vadd.f32 %v2528_v40, %v2494_v14 }
 0x9e7   :  { %v2259_v46 = vpop.xlane.xlu0 %2258 }
 0x9e8   :  { %6677 = vpow2.f32 %v5232_v13  ;;  %v2547_v47 = vadd.f32 %v5231_v39, %v2535_v18  ;;  %v2529_v49 = vmul.f32 %v5230_v28, %v2259_v46 }
 0x9ea   :  { %v5233_v52 = vmul.f32 -1.442695, %v2547_v47  ;;  %v2536_v54 = vadd.f32 %v2529_v49, %v2499_v51 }
 0x9eb   :  { %v2262_v56 = vpop.xlane.xlu0 %2261 }
 0x9ec   :  { %6679 = vpow2.f32 %v5233_v52  ;;  %v2548_v57 = vadd.f32 %v5231_v39, %v2536_v54  ;;  %v2530_v55 = vmul.f32 %v5230_v28, %v2262_v56  ;;  %v2781_v52 = vld [vmem:[%s8393_s3 + $0x1a8] sm:$0xff]  ;;  %v2782_v54 = vld [vmem:[%s8393_s3 + $0x1b0] sm:$0xff] }
 0x9ed   :  { %v6466_v56 = vpack.c.bf16 %v2782_v54, %v2781_v52 }
 0x9ee   :  { %v5234_v58 = vmul.f32 -1.442695, %v2548_v57  ;;  %v2537_v2 = vadd.f32 %v2530_v55, %v2504_v1  ;;  %v2784_v55 = vld [vmem:[%s8393_s3 + $0x1c0] sm:$0xff] }
 0x9ef   :  { %v2265_v4 = vpop.xlane.xlu1 %2264  ;;  %6467 = vmatpush3.bf16.msra.mxu0 %v6466_v56 }
 0x9f0   :  { %6681 = vpow2.f32 %v5234_v58  ;;  %v2549_v63 = vadd.f32 %v5231_v39, %v2537_v2  ;;  %v2531_v8 = vmul.f32 %v5230_v28, %v2265_v4  ;;  %6468 = vmatprep.subr.bf16.mxu0 %v6876_v59  ;;  %v5239_v2 = vld [vmem:[%s8393_s3 + $0x1a0] ss:$0 sm:$0xff] }
 0x9f2   :  { %v6678_v10 = vpop.eup %6677  ;;  %v5235_v15 = vmul.f32 -1.442695, %v2549_v63  ;;  %v2538_v19 = vadd.f32 %v2531_v8, %v2509_v21 }
 0x9f3   :  { %v2574_v14 = vadd.f32 1.0, %v6678_v10  ;;  %v2268_v6 = vpop.xlane.xlu0 %2267 }
 0x9f4   :  { %6683 = vpow2.f32 %v5235_v15  ;;  %v2550_v11 = vadd.f32 %v5231_v39, %v2538_v19  ;;  %v2532_v9 = vmul.f32 %v5230_v28, %v2268_v6 }
 0x9f5   :  { %6685 = vrcp.f32 %v2574_v14 }
 0x9f6   :  { %v6680_v51 = vpop.eup %6679  ;;  %v5236_v20 = vmul.f32 -1.442695, %v2550_v11  ;;  %v2539_v23 = vadd.f32 %v2532_v9, %v2514_v62 }
 0x9f7   :  { %v2575_v48 = vadd.f32 1.0, %v6680_v51  ;;  %v2271_v0 = vpop.xlane.xlu1 %2270 }
 0x9f8   :  { %6687 = vpow2.f32 %v5236_v20  ;;  %v2551_v1 = vadd.f32 %v5231_v39, %v2539_v23  ;;  %v2533_v7 = vmul.f32 %v5230_v28, %v2271_v0 }
 0x9f9   :  { %6689 = vrcp.f32 %v2575_v48 }
 0x9fa   :  { %v6682_v24 = vpop.eup %6681  ;;  %v5237_v12 = vmul.f32 -1.442695, %v2551_v1  ;;  %v2540_v27 = vadd.f32 %v2533_v7, %v2519_v31 }
 0x9fb   :  { %v2576_v26 = vadd.f32 1.0, %v6682_v24 }
 0x9fc   :  { %6691 = vpow2.f32 %v5237_v12  ;;  %v2552_v21 = vadd.f32 %v5231_v39, %v2540_v27 }
 0x9fd   :  { %6693 = vrcp.f32 %v2576_v26 }
 0x9fe   :  { %v6684_v30 = vpop.eup %6683  ;;  %v5238_v29 = vmul.f32 -1.442695, %v2552_v21 }
 0x9ff   :  { %v6686_v22 = vpop.eup %6685  ;;  %v2577_v53 = vadd.f32 1.0, %v6684_v30 }
 0xa00   :  { %v2595_v32 = vmul.f32 %v6686_v22, %v2546_v44  ;;  %6695 = vpow2.f32 %v5238_v29 }
 0xa01   :  { %6697 = vrcp.f32 %v2577_v53 }
 0xa02   :  { %v6688_v62 = vpop.eup %6687  ;;  %6043 = vmatmul.mubr.msk.f32.vlgmr.msra.gmra.mrb[78].mxu1 %vm562_vm3, %v2595_v32 }
 0xa03   :  { %v6690_v33 = vpop.eup %6689  ;;  %v2578_v35 = vadd.f32 1.0, %v6688_v62  ;;  %6045 = vmatprep.mubr.msk.f32.mxu1 %vm6874_vm1, %v6873_v3 }
 0xa04   :  { %v2596_v31 = vmul.f32 %v6690_v33, %v2547_v47 }
 0xa05   :  { %6699 = vrcp.f32 %v2578_v35 }
 0xa06   :  { %v6692_v36 = vpop.eup %6691  ;;  %6046 = vmatmul.mubr.msk.f32.gmra.mrb[80].mxu1 %vm562_vm3, %v2596_v31 }
 0xa07   :  { %v6694_v28 = vpop.eup %6693  ;;  %v2579_v60 = vadd.f32 1.0, %v6692_v36  ;;  %6048 = vmatprep.mubr.msk.f32.mxu1 %vm6874_vm1, %v6873_v3 }
 0xa08   :  { %v2597_v38 = vmul.f32 %v6694_v28, %v2548_v57  ;;  %v2783_v57 = vld [vmem:[%s8393_s3 + $0x1b8] sm:$0xff] }
 0xa09   :  { %6701 = vrcp.f32 %v2579_v60  ;;  %v6469_v58 = vpack.c.bf16 %v2784_v55, %v2783_v57  ;;  %v3234_v60 = vld [vmem:[%s8393_s3 + $0x1e0] sm:$0xff] }
 0xa0a   :  { %v6696_v39 = vpop.eup %6695  ;;  %6049 = vmatmul.mubr.msk.f32.gmra.mrb[82].mxu1 %vm562_vm3, %v2597_v38  ;;  %v3235_v38 = vld [vmem:[%s8393_s3 + $0x1e8] sm:$0xff] }
 0xa0b   :  { %v6698_v42 = vpop.eup %6697  ;;  %v2580_v43 = vadd.f32 1.0, %v6696_v39  ;;  %6051 = vmatprep.mubr.msk.f32.mxu1 %vm6874_vm1, %v6873_v3  ;;  %6470 = vmatpush3.bf16.msra.mxu0 %v6469_v58 }
 0xa0c   :  { %v2598_v44 = vmul.f32 %v6698_v42, %v2549_v63  ;;  %6495 = vmatprep.subr.bf16.mxu0 %v6876_v59 }
 0xa0d   :  { %6703 = vrcp.f32 %v2580_v43 }
 0xa0e   :  { %6052 = vmatmul.mubr.msk.f32.gmra.mrb[84].mxu1 %vm562_vm3, %v2598_v44 }
 0xa0f   :  { %v6700_v40 = vpop.eup %6699  ;;  %6054 = vmatprep.mubr.msk.f32.mxu1 %vm6874_vm1, %v6873_v3 }
 0xa10   :  { %v2599_v13 = vmul.f32 %v6700_v40, %v2550_v11  ;;  %v6496_v40 = vpack.c.bf16 %v3235_v38, %v3234_v60 }
 0xa12   :  { %6055 = vmatmul.mubr.msk.f32.gmra.mrb[86].mxu1 %vm562_vm3, %v2599_v13 }
 0xa13   :  { %v6702_v18 = vpop.eup %6701  ;;  %6057 = vmatprep.mubr.msk.f32.mxu1 %vm6874_vm1, %v6873_v3 }
 0xa14   :  { %v2600_v46 = vmul.f32 %v6702_v18, %v2551_v1  ;;  %v3236_v18 = vld [vmem:[%s8393_s3 + $0x1f0] sm:$0xff] }
 0xa16   :  { %6058 = vmatmul.mubr.msk.f32.gmra.mrb[88].mxu1 %vm562_vm3, %v2600_v46  ;;  %v3237_v46 = vld [vmem:[%s8393_s3 + $0x1f8] sm:$0xff] }
 0xa17   :  { %v6704_v47 = vpop.eup %6703  ;;  %6060 = vmatprep.mubr.msk.f32.mxu1 %vm6874_vm1, %v6873_v3  ;;  %v6499_v54 = vpack.c.bf16 %v3237_v46, %v3236_v18 }
 0xa18   :  { %v2601_v49 = vmul.f32 %v6704_v47, %v2552_v21 }
 0xa1a   :  { %6061 = vmatmul.mubr.msk.f32.gmra.mrb[90].mxu1 %vm562_vm3, %v2601_v49 }
 0xa1b   :  { %6106 = vmatprep.mubr.msk.f32.mxu1 %vm6874_vm1, %v6873_v3 }
 0xad5   :  { %v2698_v4 = vpop.f32.mrb[78].mxu1 }
 0xad6   :  { %v2699_v63 = vadd.f32 %v5239_v2, %v2698_v4  ;;  %v6044_v8 = vpop.f32.mrb[79].mxu1 }
 0xad8   :  { %v5247_v10 = vmul.f32 -1.442695, %v2699_v63 }
 0xad9   :  { %v2703_v15 = vpop.f32.mrb[80].mxu1 }
 0xada   :  { %6705 = vpow2.f32 %v5247_v10  ;;  %v2704_v19 = vadd.f32 %v5239_v2, %v2703_v15  ;;  %v6047_v14 = vpop.f32.mrb[81].mxu1 }
 0xadc   :  { %v5248_v6 = vmul.f32 -1.442695, %v2704_v19 }
 0xadd   :  { %v2708_v11 = vpop.f32.mrb[82].mxu1 }
 0xade   :  { %6707 = vpow2.f32 %v5248_v6  ;;  %v2709_v9 = vadd.f32 %v5239_v2, %v2708_v11  ;;  %v6050_v51 = vpop.f32.mrb[83].mxu1 }
 0xae0   :  { %v5249_v20 = vmul.f32 -1.442695, %v2709_v9 }
 0xae1   :  { %v2713_v23 = vpop.f32.mrb[84].mxu1 }
 0xae2   :  { %6709 = vpow2.f32 %v5249_v20  ;;  %v7808_v48 = vadd.f32 %v5239_v2, %v2713_v23  ;;  %v6053_v0 = vpop.f32.mrb[85].mxu1 }
 0xae3   :  { %v5254_v0 = vld [vmem:[%s8393_s3 + $0x1c8] ss:$0 sm:$0xff] }
 0xae4   :  { %v6706_v1 = vpop.eup %6705  ;;  %v5250_v7 = vmul.f32 -1.442695, %v7808_v48 }
 0xae5   :  { %v2753_v24 = vadd.f32 1.0, %v6706_v1  ;;  %v2718_v12 = vpop.f32.mrb[86].mxu1 }
 0xae6   :  { %6711 = vpow2.f32 %v5250_v7  ;;  %v7811_v27 = vadd.f32 %v5239_v2, %v2718_v12  ;;  %v6056_v26 = vpop.f32.mrb[87].mxu1 }
 0xae7   :  { %6713 = vrcp.f32 %v2753_v24 }
 0xae8   :  { %v6708_v21 = vpop.eup %6707  ;;  %v5251_v30 = vmul.f32 -1.442695, %v7811_v27 }
 0xae9   :  { %v2754_v29 = vadd.f32 1.0, %v6708_v21  ;;  %v2723_v22 = vpop.f32.mrb[88].mxu1 }
 0xaea   :  { %6715 = vpow2.f32 %v5251_v30  ;;  %v2724_v53 = vadd.f32 %v5239_v2, %v2723_v22  ;;  %v6059_v32 = vpop.f32.mrb[89].mxu1 }
 0xaeb   :  { %6717 = vrcp.f32 %v2754_v29 }
 0xaec   :  { %v6710_v62 = vpop.eup %6709  ;;  %v5252_v33 = vmul.f32 -1.442695, %v2724_v53 }
 0xaed   :  { %v2755_v35 = vadd.f32 1.0, %v6710_v62  ;;  %v2728_v31 = vpop.f32.mrb[90].mxu1 }
 0xaee   :  { %6719 = vpow2.f32 %v5252_v33  ;;  %v2729_v36 = vadd.f32 %v5239_v2, %v2728_v31  ;;  %v6062_v28 = vpop.f32.mrb[91].mxu1 }
 0xaef   :  { %6721 = vrcp.f32 %v2755_v35 }
 0xaf0   :  { %v6712_v39 = vpop.eup %6711  ;;  %v5253_v42 = vmul.f32 -1.442695, %v2729_v36 }
 0xaf1   :  { %v6714_v43 = vpop.eup %6713  ;;  %v2756_v44 = vadd.f32 1.0, %v6712_v39 }
 0xaf2   :  { %v2774_v13 = vmul.f32 %v6714_v43, %v2699_v63  ;;  %6723 = vpow2.f32 %v5253_v42 }
 0xaf3   :  { %6725 = vrcp.f32 %v2756_v44 }
 0xaf4   :  { %v6716_v47 = vpop.eup %6715  ;;  %6072 = vmatmul.mubr.msk.f32.vlgmr.msra.gmra.mrb[100].mxu0 %vm562_vm3, %v2774_v13 }
 0xaf5   :  { %v6718_v49 = vpop.eup %6717  ;;  %v2757_v52 = vadd.f32 1.0, %v6716_v47  ;;  %6074 = vmatprep.mubr.msk.f32.mxu0 %vm6874_vm1, %v6873_v3  ;;  %6497 = vmatpush3.bf16.msra.mxu0 %v6496_v40 }
 0xaf6   :  { %v2775_v56 = vmul.f32 %v6718_v49, %v2704_v19  ;;  %6498 = vmatprep.subr.bf16.mxu0 %v6876_v59 }
 0xaf7   :  { %6727 = vrcp.f32 %v2757_v52 }
 0xaf8   :  { %v6720_v57 = vpop.eup %6719  ;;  %v6472_v55 = vpack.c.bf16 %v2775_v56, %v2774_v13  ;;  %6075 = vmatmul.mubr.msk.f32.gmra.mrb[102].mxu0 %vm562_vm3, %v2775_v56 }
 0xaf9   :  { %v6722_v58 = vpop.eup %6721  ;;  %v2758_v2 = vadd.f32 1.0, %v6720_v57  ;;  %6077 = vmatprep.mubr.msk.f32.mxu0 %vm6874_vm1, %v6873_v3  ;;  %6500 = vmatpush3.bf16.msra.mxu0 %v6499_v54 }
 0xafa   :  { %v2776_v4 = vmul.f32 %v6722_v58, %v2709_v9  ;;  %6473 = vmatpush3.bf16.msra.mxu1 %v6472_v55  ;;  %6159 = vmatprep.subr.mxu0 %v6873_v3 }
 0xafb   :  { %6729 = vrcp.f32 %v2758_v2  ;;  %6474 = vmatprep.subr.bf16.mxu1 %v6876_v59  ;;  %v5269_v2 = vld [vmem:[%s8393_s3 + $0x1d0] ss:$0 sm:$0xff] }
 0xafc   :  { %v6724_v63 = vpop.eup %6723  ;;  %6078 = vmatmul.mubr.msk.f32.gmra.mrb[104].mxu0 %vm562_vm3, %v2776_v4 }
 0xafd   :  { %v6726_v8 = vpop.eup %6725  ;;  %v2759_v10 = vadd.f32 1.0, %v6724_v63  ;;  %6080 = vmatprep.mubr.msk.f32.mxu0 %vm6874_vm1, %v6873_v3 }
 0xafe   :  { %v2777_v15 = vmul.f32 %v6726_v8, %v7808_v48  ;;  %v7852_v48 = vpop.trf.xlu0 }
 0xaff   :  { %6731 = vrcp.f32 %v2759_v10 }
 0xb00   :  { %v6475_v19 = vpack.c.bf16 %v2777_v15, %v2776_v4  ;;  %6081 = vmatmul.mubr.msk.f32.gmra.mrb[106].mxu0 %vm562_vm3, %v2777_v15 }
 0xb01   :  { %v6728_v14 = vpop.eup %6727  ;;  %6083 = vmatprep.mubr.msk.f32.mxu0 %vm6874_vm1, %v6873_v3 }
 0xb02   :  { %v2778_v6 = vmul.f32 %v6728_v14, %v7811_v27  ;;  %6476 = vmatpush3.bf16.msra.mxu1 %v6475_v19 }
 0xb03   :  { %6477 = vmatprep.subr.bf16.mxu1 %v6876_v59 }
 0xb04   :  { %6084 = vmatmul.mubr.msk.f32.gmra.mrb[108].mxu0 %vm562_vm3, %v2778_v6 }
 0xb05   :  { %v6730_v11 = vpop.eup %6729  ;;  %6086 = vmatprep.mubr.msk.f32.mxu0 %vm6874_vm1, %v6873_v3 }
 0xb06   :  { %v2779_v9 = vmul.f32 %v6730_v11, %v2724_v53 }
 0xb08   :  { %v6478_v51 = vpack.c.bf16 %v2779_v9, %v2778_v6  ;;  %6087 = vmatmul.mubr.msk.f32.gmra.mrb[110].mxu0 %vm562_vm3, %v2779_v9 }
 0xb09   :  { %v6732_v20 = vpop.eup %6731  ;;  %6089 = vmatprep.mubr.msk.f32.mxu0 %vm6874_vm1, %v6873_v3 }
 0xb0a   :  { %v2780_v23 = vmul.f32 %v6732_v20, %v2729_v36  ;;  %6479 = vmatpush3.bf16.msra.mxu1 %v6478_v51 }
 0xb0b   :  { %6104 = vmatprep.subr.mxu1 %v6873_v3 }
 0xb0c   :  { %6090 = vmatmul.mubr.msk.f32.gmra.mrb[112].mxu0 %vm562_vm3, %v2780_v23 }
 0xb0d   :  { %6145 = vmatprep.mubr.msk.f32.mxu0 %vm6874_vm1, %v6873_v3 }
 0xb0e   :  { %6105 = vmatpush3.msra.mxu1 %v2780_v23 }
 0xb0f   :  { %6107 = vmatmul.mubr.msk.f32.vlgmr.msra.gmra.mrb[92].mxu1 %vm1369_vm6, %v7852_v48  ;;  %6480 = vmatprep.subr.bf16.mxu1 %v6876_v59 }
 0xb10   :  { %6146 = vmatmul.mubr.msk.f32.vlgmr.msra.gmra.mrb[114].mxu0 %vm562_vm3, %v7491_v61  ;;  %6123 = vmatprep.mubr.msk.f32.mxu1 %vm6874_vm1, %v6873_v3 }
 0xb11   :  { %6161 = vmatprep.mubr.msk.f32.mxu0 %vm6874_vm1, %v6873_v3 }
 0xbc7   :  { %v2877_v1 = vpop.f32.mrb[100].mxu0 }
 0xbc8   :  { %v2878_v7 = vadd.f32 %v5254_v0, %v2877_v1  ;;  %v6073_v24 = vpop.f32.mrb[101].mxu0 }
 0xbca   :  { %v5262_v12 = vmul.f32 -1.442695, %v2878_v7 }
 0xbcb   :  { %v2882_v27 = vpop.f32.mrb[102].mxu0 }
 0xbcc   :  { %6733 = vpow2.f32 %v5262_v12  ;;  %v2883_v26 = vadd.f32 %v5254_v0, %v2882_v27  ;;  %v6076_v21 = vpop.f32.mrb[103].mxu0 }
 0xbce   :  { %v5263_v30 = vmul.f32 -1.442695, %v2883_v26 }
 0xbcf   :  { %v2887_v29 = vpop.f32.mrb[104].mxu0 }
 0xbd0   :  { %6735 = vpow2.f32 %v5263_v30  ;;  %v2888_v22 = vadd.f32 %v5254_v0, %v2887_v29  ;;  %v6079_v53 = vpop.f32.mrb[105].mxu0 }
 0xbd2   :  { %v5264_v32 = vmul.f32 -1.442695, %v2888_v22 }
 0xbd3   :  { %v2892_v62 = vpop.f32.mrb[106].mxu0 }
 0xbd4   :  { %6737 = vpow2.f32 %v5264_v32  ;;  %v2893_v33 = vadd.f32 %v5254_v0, %v2892_v62  ;;  %v6082_v35 = vpop.f32.mrb[107].mxu0 }
 0xbd6   :  { %v6734_v31 = vpop.eup %6733  ;;  %v5265_v36 = vmul.f32 -1.442695, %v2893_v33 }
 0xbd7   :  { %v2932_v28 = vadd.f32 1.0, %v6734_v31  ;;  %v2897_v60 = vpop.f32.mrb[108].mxu0 }
 0xbd8   :  { %6739 = vpow2.f32 %v5265_v36  ;;  %v2898_v38 = vadd.f32 %v5254_v0, %v2897_v60  ;;  %v6085_v39 = vpop.f32.mrb[109].mxu0 }
 0xbd9   :  { %6741 = vrcp.f32 %v2932_v28 }
 0xbda   :  { %v6736_v42 = vpop.eup %6735  ;;  %v5266_v43 = vmul.f32 -1.442695, %v2898_v38 }
 0xbdb   :  { %v2933_v44 = vadd.f32 1.0, %v6736_v42  ;;  %v2902_v40 = vpop.f32.mrb[110].mxu0 }
 0xbdc   :  { %6743 = vpow2.f32 %v5266_v43  ;;  %v2903_v13 = vadd.f32 %v5254_v0, %v2902_v40  ;;  %v6088_v18 = vpop.f32.mrb[111].mxu0 }
 0xbdd   :  { %6745 = vrcp.f32 %v2933_v44 }
 0xbde   :  { %v6738_v46 = vpop.eup %6737  ;;  %v5267_v47 = vmul.f32 -1.442695, %v2903_v13 }
 0xbdf   :  { %v2934_v49 = vadd.f32 1.0, %v6738_v46  ;;  %v2907_v52 = vpop.f32.mrb[112].mxu0 }
 0xbe0   :  { %6747 = vpow2.f32 %v5267_v47  ;;  %v2908_v54 = vadd.f32 %v5254_v0, %v2907_v52  ;;  %v6091_v56 = vpop.f32.mrb[113].mxu0  ;;  %v5289_v47 = vld [vmem:[%s8391_s1 + $0x130] sm:$0xff]  ;;  %v5291_v52 = vld [vmem:[%s8391_s1 + $0x140] sm:$0xff] }
 0xbe1   :  { %6749 = vrcp.f32 %v2934_v49  ;;  %v5290_v49 = vld [vmem:[%s8391_s1 + $0x138] sm:$0xff] }
 0xbe2   :  { %v6740_v57 = vpop.eup %6739  ;;  %v5268_v55 = vmul.f32 -1.442695, %v2908_v54  ;;  %v7868_v58 = vpop.f32.mrb[92].mxu1  ;;  %v5270_v56 = vld [vmem:[%s8393_s3 + $0x1d8] ss:$0 sm:$0xff] }
 0xbe3   :  { %v6742_v4 = vpop.eup %6741  ;;  %v2935_v63 = vadd.f32 1.0, %v6740_v57  ;;  %v3483_v8 = vand.u32 2147483647, %v7868_v58  ;;  %v7874_v10 = vpop.f32.mrb[114].mxu0 }
 0xbe4   :  { %v6108_v15 = vpop.f32.mrb[93].mxu1  ;;  %v2953_v19 = vmul.f32 %v6742_v4, %v2878_v7  ;;  %6751 = vpow2.f32 %v5268_v55  ;;  %v6147_v14 = vpop.f32.mrb[115].mxu0 }
 0xbe5   :  { %6753 = vrcp.f32 %v2935_v63  ;;  %v3484_v6 = vsel %vm562_vm3, %v3483_v8, 0.0 }
 0xbe6   :  { %v6744_v11 = vpop.eup %6743  ;;  %3485 = vadd.xlane.f32.xlu0 %v3484_v6  ;;  %v2965_v9 = vmul.f32 %v5269_v2, %v2953_v19 }
 0xbe7   :  { %v6746_v51 = vpop.eup %6745  ;;  %v2936_v20 = vadd.f32 1.0, %v6744_v11 }
 0xbe8   :  { %v2954_v23 = vmul.f32 %v6746_v51, %v2883_v26  ;;  %v2972_v0 = vsel %vm562_vm3, %v2965_v9, 0.0 }
 0xbe9   :  { %6755 = vrcp.f32 %v2936_v20  ;;  %2973 = vadd.xlane.f32.xlu1 %v2972_v0 }
 0xbea   :  { %v6748_v1 = vpop.eup %6747  ;;  %v2966_v24 = vmul.f32 %v5269_v2, %v2954_v23 }
 0xbeb   :  { %v6750_v12 = vpop.eup %6749  ;;  %v2937_v27 = vadd.f32 1.0, %v6748_v1 }
 0xbec   :  { %v2955_v7 = vmul.f32 %v6750_v12, %v2888_v22  ;;  %v2975_v21 = vsel %vm562_vm3, %v2966_v24, 0.0 }
 0xbed   :  { %6757 = vrcp.f32 %v2937_v27  ;;  %2976 = vadd.xlane.f32.xlu1 %v2975_v21  ;;  %v5279_v21 = vld [vmem:[%s8391_s1 + $0xe0] sm:$0xff] }
 0xbee   :  { %v6752_v30 = vpop.eup %6751  ;;  %v2967_v29 = vmul.f32 %v5269_v2, %v2955_v7 }
 0xbef   :  { %v6754_v53 = vpop.eup %6753  ;;  %v2938_v32 = vadd.f32 1.0, %v6752_v30  ;;  %v5280_v30 = vld [vmem:[%s8391_s1 + $0xe8] sm:$0xff] }
 0xbf0   :  { %v2956_v62 = vmul.f32 %v6754_v53, %v2893_v33  ;;  %v2978_v26 = vsel %vm562_vm3, %v2967_v29, 0.0  ;;  %v5286_v33 = vld [vmem:[%s8391_s1 + $0x118] sm:$0xff]  ;;  %v5287_v29 = vld [vmem:[%s8391_s1 + $0x120] sm:$0xff]  ;;  %v5281_v53 = vld [vmem:[%s8391_s1 + $0xf0] sm:$0xff] }
 0xbf1   :  { %6759 = vrcp.f32 %v2938_v32  ;;  %2979 = vadd.xlane.f32.xlu1 %v2978_v26  ;;  %v5282_v32 = vld [vmem:[%s8391_s1 + $0xf8] sm:$0xff]  ;;  %v5284_v26 = vld [vmem:[%s8391_s1 + $0x108] sm:$0xff] }
 0xbf2   :  { %v2968_v35 = vmul.f32 %v5269_v2, %v2956_v62  ;;  %v5283_v62 = vld [vmem:[%s8391_s1 + $0x100] sm:$0xff] }
 0xbf3   :  { %v6756_v31 = vpop.eup %6755 }
 0xbf4   :  { %v2957_v36 = vmul.f32 %v6756_v31, %v2898_v38  ;;  %v2981_v28 = vsel %vm562_vm3, %v2968_v35, 0.0  ;;  %v5288_v38 = vld [vmem:[%s8391_s1 + $0x128] sm:$0xff] }
 0xbf5   :  { %2982 = vadd.xlane.f32.xlu1 %v2981_v28 }
 0xbf6   :  { %v2969_v22 = vmul.f32 %v5269_v2, %v2957_v36 }
 0xbf7   :  { %v6758_v60 = vpop.eup %6757 }
 0xbf8   :  { %v2958_v39 = vmul.f32 %v6758_v60, %v2903_v13  ;;  %v2984_v42 = vsel %vm562_vm3, %v2969_v22, 0.0 }
 0xbf9   :  { %2985 = vadd.xlane.f32.xlu1 %v2984_v42 }
 0xbfa   :  { %v2970_v43 = vmul.f32 %v5269_v2, %v2958_v39 }
 0xbfb   :  { %v6760_v44 = vpop.eup %6759 }
 0xbfc   :  { %v2959_v40 = vmul.f32 %v6760_v44, %v2908_v54  ;;  %3552 = vperm.xlu0 %6571, %v5286_v33   ;;  %v2987_v18 = vsel %vm562_vm3, %v2970_v43, 0.0  ;;  %v5292_v54 = vld [vmem:[%s8391_s1 + $0x148] sm:$0xff] }
 0xbfd   :  { %2988 = vadd.xlane.f32.xlu1 %v2987_v18 }
 0xbfe   :  { %v2971_v46 = vmul.f32 %v5269_v2, %v2959_v40 }
 0xc00   :  { %3558 = vperm.xlu0 %6571, %v5288_v38   ;;  %v2990_v13 = vsel %vm562_vm3, %v2971_v46, 0.0  ;;  %v3238_v46 = vld [vmem:[%s8393_s3 + $0x200] sm:$0xff] }
 0xc01   :  { %2991 = vadd.xlane.f32.xlu1 %v2990_v13 }
 0xc04   :  { %3561 = vperm.xlu0 %6571, %v5289_v47  }
 0xc08   :  { %3564 = vperm.xlu0 %6571, %v5290_v49  }
 0xc0c   :  { %3567 = vperm.xlu0 %6571, %v5291_v52   ;;  %v3403_v52 = vld [vmem:[%s8393_s3 + $0x238] sm:$0xff] }
 0xc10   :  { %3570 = vperm.xlu0 %6571, %v5292_v54  }
 0xc76   :  { %v2974_v57 = vpop.xlane.xlu1 %2973 }
 0xc77   :  { %v2998_v55 = vadd.f32 %v5270_v56, %v2974_v57 }
 0xc79   :  { %6761 = vtanh.f32 %v2998_v55 }
 0xc7a   :  { %v2977_v2 = vpop.xlane.xlu1 %2976 }
 0xc7b   :  { %v2999_v4 = vadd.f32 %v5270_v56, %v2977_v2  ;;  %v5275_v2 = vld [vmem:[%s8393_s3 + $0x220] ss:$0 sm:$0xff] }
 0xc7d   :  { %6763 = vtanh.f32 %v2999_v4 }
 0xc7e   :  { %v2980_v63 = vpop.xlane.xlu1 %2979 }
 0xc7f   :  { %v3000_v8 = vadd.f32 %v5270_v56, %v2980_v63 }
 0xc81   :  { %6765 = vtanh.f32 %v3000_v8 }
 0xc82   :  { %v2983_v15 = vpop.xlane.xlu1 %2982 }
 0xc83   :  { %v6762_v19 = vpop.eup %6761  ;;  %v3001_v14 = vadd.f32 %v5270_v56, %v2983_v15 }
 0xc84   :  { %3014 = vperm.xlu1 %6572, %v6762_v19  }
 0xc85   :  { %6767 = vtanh.f32 %v3001_v14 }
 0xc86   :  { %v2986_v6 = vpop.xlane.xlu1 %2985 }
 0xc87   :  { %v6764_v11 = vpop.eup %6763  ;;  %v3002_v9 = vadd.f32 %v5270_v56, %v2986_v6 }
 0xc88   :  { %3019 = vperm.xlu1 %6572, %v6764_v11  }
 0xc89   :  { %6769 = vtanh.f32 %v3002_v9  ;;  %v5277_v9 = vld [vmem:[%s8393_s3 + $0x248] ss:$0 sm:$0xff] }
 0xc8a   :  { %v2989_v51 = vpop.xlane.xlu1 %2988 }
 0xc8b   :  { %v6766_v20 = vpop.eup %6765  ;;  %v3003_v23 = vadd.f32 %v5270_v56, %v2989_v51 }
 0xc8c   :  { %3024 = vperm.xlu1 %6572, %v6766_v20  }
 0xc8d   :  { %6771 = vtanh.f32 %v3003_v23 }
 0xc8e   :  { %v2992_v0 = vpop.xlane.xlu1 %2991 }
 0xc8f   :  { %v6768_v1 = vpop.eup %6767  ;;  %v3004_v24 = vadd.f32 %v5270_v56, %v2992_v0 }
 0xc90   :  { %3029 = vperm.xlu1 %6572, %v6768_v1  }
 0xc91   :  { %6773 = vtanh.f32 %v3004_v24 }
 0xc93   :  { %v6770_v12 = vpop.eup %6769 }
 0xc94   :  { %3034 = vperm.xlu1 %6572, %v6770_v12   ;;  %v5285_v12 = vld [vmem:[%s8391_s1 + $0x110] sm:$0xff]  ;;  %s6878_s1 = smov [#allocation2]  }
 0xc97   :  { %v6772_v27 = vpop.eup %6771 }
 0xc98   :  { %3039 = vperm.xlu1 %6572, %v6772_v27  }
 0xc9b   :  { %v6774_v7 = vpop.eup %6773 }
 0xc9c   :  { %3044 = vperm.xlu1 %6572, %v6774_v7  }
 0xca0   :  { %3517 = vperm.xlu1 %6572, %v5279_v21  }
 0xca4   :  { %3520 = vperm.xlu1 %6572, %v5280_v30  }
 0xca8   :  { %3555 = vperm.xlu1 %6572, %v5287_v29  }
 0xcac   :  { %3523 = vperm.xlu1 %6572, %v5281_v53  }
 0xcb0   :  { %3526 = vperm.xlu1 %6572, %v5282_v32  }
 0xcb4   :  { %3529 = vperm.xlu1 %6572, %v5283_v62  }
 0xcb8   :  { %3532 = vperm.xlu1 %6572, %v5284_v26  }
 0xd03   :  { %v3015_v35 = vpop.permute.xlu1 %3014 }
 0xd04   :  { %v3047_v36 = vmul.f32 %v3015_v35, %v7708_v17 }
 0xd07   :  { %v3020_v31 = vpop.permute.xlu1 %3019 }
 0xd08   :  { %v3048_v28 = vmul.f32 %v3020_v31, %v7713_v50 }
 0xd0a   :  { %v6481_v22 = vpack.c.bf16 %v3048_v28, %v3047_v36 }
 0xd0b   :  { %v3025_v60 = vpop.permute.xlu1 %3024 }
 0xd0c   :  { %6482 = vmatpush3.bf16.msra.mxu1 %v6481_v22  ;;  %v3049_v42 = vmul.f32 %v3025_v60, %v7718_v16  ;;  %v3239_v16 = vld [vmem:[%s8393_s3 + $0x208] sm:$0xff] }
 0xd0d   :  { %6483 = vmatprep.subr.bf16.mxu1 %v6876_v59  ;;  %v6490_v13 = vpack.c.bf16 %v3239_v16, %v3238_v46 }
 0xd0f   :  { %v3030_v39 = vpop.permute.xlu1 %3029 }
 0xd10   :  { %v3050_v33 = vmul.f32 %v3030_v39, %v7723_v34 }
 0xd12   :  { %v6484_v43 = vpack.c.bf16 %v3050_v33, %v3049_v42 }
 0xd13   :  { %v3035_v44 = vpop.permute.xlu1 %3034 }
 0xd14   :  { %6485 = vmatpush3.bf16.msra.mxu1 %v6484_v43  ;;  %v3051_v17 = vmul.f32 %v3035_v44, %v7728_v37  ;;  %v3240_v37 = vld [vmem:[%s8393_s3 + $0x210] sm:$0xff] }
 0xd15   :  { %6486 = vmatprep.subr.bf16.mxu1 %v6876_v59 }
 0xd17   :  { %v3040_v40 = vpop.permute.xlu1 %3039 }
 0xd18   :  { %v3052_v50 = vmul.f32 %v3040_v40, %v7733_v5  ;;  %v3241_v5 = vld [vmem:[%s8393_s3 + $0x218] sm:$0xff] }
 0xd19   :  { %v6493_v47 = vpack.c.bf16 %v3241_v5, %v3240_v37  ;;  %v3992_v37 = vld [vmem:[%s8393_s3 + $0x270] sm:$0xff]  ;;  %v3993_v5 = vld [vmem:[%s8393_s3 + $0x278] sm:$0xff] }
 0xd1a   :  { %v6487_v18 = vpack.c.bf16 %v3052_v50, %v3051_v17 }
 0xd1b   :  { %v3045_v38 = vpop.permute.xlu1 %3044 }
 0xd1c   :  { %6488 = vmatpush3.bf16.msra.mxu1 %v6487_v18  ;;  %v3053_v34 = vmul.f32 %v3045_v38, %v7738_v45  ;;  %v3401_v45 = vld [vmem:[%s8393_s3 + $0x228] sm:$0xff] }
 0xd1d   :  { %6121 = vmatprep.subr.mxu1 %v6873_v3 }
 0xd1f   :  { %v3518_v27 = vpop.permute.xlu1 %3517 }
 0xd20   :  { %6122 = vmatpush3.msra.mxu1 %v3053_v34  ;;  %vm3537_vm15 = vcmp.eq.s32.totalorder %v6960_v41, %v3518_v27 }
 0xd21   :  { %6124 = vmatmul.mubr.msk.f32.vlgmr.msra.gmra.mrb[94].mxu1 %vm1369_vm6, %v7852_v48  ;;  %6489 = vmatprep.subr.bf16.mxu1 %v6876_v59  ;;  %v3402_v48 = vld [vmem:[%s8393_s3 + $0x230] sm:$0xff]  ;;  %v7998_v60 = vsel %vm3537_vm15, 1.0, %v6873_v3 }
 0xd22   :  { %6491 = vmatpush3.bf16.msra.mxu1 %v6490_v13  ;;  %6134 = vmatprep.mubr.msk.f32.mxu1 %vm6874_vm1, %v6873_v3  ;;  %v6502_v49 = vpack.c.bf16 %v3402_v48, %v3401_v45  ;;  %v3994_v45 = vld [vmem:[%s8393_s3 + $0x280] sm:$0xff]  ;;  %v3995_v48 = vld [vmem:[%s8393_s3 + $0x288] sm:$0xff] }
 0xd23   :  { %6492 = vmatprep.subr.bf16.mxu1 %v6876_v59  ;;  %v3521_v7 = vpop.permute.xlu1 %3520 }
 0xd24   :  { %vm3538_vm7 = vcmp.eq.s32.totalorder %v6960_v41, %v3521_v7 }
 0xd25   :  { %v8015_v39 = vsel %vm3538_vm7, 1.0, %v6873_v3 }
 0xd26   :  { %6494 = vmatpush3.bf16.msra.mxu1 %v6493_v47  ;;  %v6508_v47 = vpack.c.bf16 %v3993_v5, %v3992_v37 }
 0xd27   :  { %6501 = vmatprep.subr.bf16.mxu1 %v6876_v59  ;;  %v3556_v21 = vpop.permute.xlu1 %3555 }
 0xd28   :  { %vm3573_vm8 = vcmp.eq.s32.totalorder %v6960_v41, %v3556_v21 }
 0xd29   :  { %6135 = vmatmul.mubr.msk.f32.vlgmr.msra.gmra.mrb[96].mxu1 %vm562_vm3, %v7868_v58  ;;  %v3404_v58 = vld [vmem:[%s8393_s3 + $0x240] sm:$0xff]  ;;  %v8018_v42 = vsel %vm3573_vm8, 1.0, %v6873_v3 }
 0xd2a   :  { %6156 = vmatprep.mubr.msk.f32.mxu1 %vm6874_vm1, %v6873_v3  ;;  %6503 = vmatpush3.bf16.msra.mxu1 %v6502_v49  ;;  %v6505_v54 = vpack.c.bf16 %v3404_v58, %v3403_v52  ;;  %v6511_v49 = vpack.c.bf16 %v3995_v48, %v3994_v45 }
 0xd2b   :  { %6504 = vmatprep.subr.bf16.mxu1 %v6876_v59  ;;  %v3524_v30 = vpop.permute.xlu1 %3523 }
 0xd2c   :  { %vm3539_vm10 = vcmp.eq.s32.totalorder %v6960_v41, %v3524_v30 }
 0xd2d   :  { %v8035_v17 = vsel %vm3539_vm10, 1.0, %v6873_v3 }
 0xd2e   :  { %6506 = vmatpush3.bf16.msra.mxu1 %v6505_v54  ;;  %v3988_v54 = vld [vmem:[%s8393_s3 + $0x250] sm:$0xff] }
 0xd2f   :  { %6182 = vmatprep.subr.mxu1 %v6873_v3  ;;  %v3527_v29 = vpop.permute.xlu1 %3526 }
 0xd30   :  { %vm3540_vm12 = vcmp.eq.s32.totalorder %v6960_v41, %v3527_v29 }
 0xd31   :  { %v8052_v18 = vsel %vm3540_vm12, 1.0, %v6873_v3 }
 0xd33   :  { %v3530_v53 = vpop.permute.xlu1 %3529 }
 0xd37   :  { %v3533_v62 = vpop.permute.xlu1 %3532 }
 0xdf4   :  { %v3225_v56 = vpop.f32.mrb[94].mxu1 }
 0xdf5   :  { %v6125_v57 = vpop.f32.mrb[95].mxu1 }
 0xdfc   :  { %v3311_v55 = vpop.f32.mrb[96].mxu1 }
 0xdfd   :  { %v3385_v4 = vadd.f32 %v7874_v10, %v3311_v55  ;;  %v6136_v63 = vpop.f32.mrb[97].mxu1  ;;  %v3486_v10 = vpop.xlane.xlu0 %3485 }
 0xdfe   :  { %vm3487_vm13 = vcmp.gt.f32.partialorder %v3486_v10, 0.0  ;;  %v3991_v63 = vld [vmem:[%s8393_s3 + $0x268] sm:$0xff] }
 0xdff   :  { %v3393_v8 = vadd.f32 %v5275_v2, %v3385_v4  ;;  %v3990_v4 = vld [vmem:[%s8393_s3 + $0x260] sm:$0xff] }
 0xe01   :  { %v5276_v15 = vmul.f32 -1.442695, %v3393_v8  ;;  %v3553_v32 = vpop.permute.xlu0 %3552 }
 0xe02   :  { %vm3572_vm14 = vcmp.eq.s32.totalorder %v6960_v41, %v3553_v32 }
 0xe03   :  { %6775 = vpow2.f32 %v5276_v15  ;;  %v7995_v28 = vsel %vm3572_vm14, 1.0, %v6873_v3  ;;  %vm3541_vm14 = vcmp.eq.s32.totalorder %v6960_v41, %v3530_v53  ;;  %v3829_v15 = vsub.f32 %v8015_v39, %v8018_v42 }
 0xe04   :  { %v3548_v46 = vsel %vm3541_vm14, 1.0, %v6873_v3  ;;  %v3828_v55 = vsub.f32 %v7998_v60, %v7995_v28 }
 0xe05   :  { %v3559_v26 = vpop.permute.xlu0 %3558 }
 0xe06   :  { %vm3574_vm9 = vcmp.eq.s32.totalorder %v6960_v41, %v3559_v26 }
 0xe07   :  { %v8032_v40 = vsel %vm3574_vm9, 1.0, %v6873_v3 }
 0xe09   :  { %v3562_v22 = vpop.permute.xlu0 %3561 }
 0xe0a   :  { %vm3575_vm11 = vcmp.eq.s32.totalorder %v6960_v41, %v3562_v22 }
 0xe0d   :  { %v6776_v19 = vpop.eup %6775  ;;  %v3565_v43 = vpop.permute.xlu0 %3564 }
 0xe0e   :  { %v3397_v14 = vadd.f32 1.0, %v6776_v19  ;;  %v3830_v19 = vsub.f32 %v8035_v17, %v8032_v40 }
 0xe10   :  { %6777 = vrcp.f32 %v3397_v14 }
 0xe11   :  { %v3568_v50 = vpop.permute.xlu0 %3567 }
 0xe12   :  { %vm3577_vm15 = vcmp.eq.s32.totalorder %v6960_v41, %v3568_v50 }
 0xe13   :  { %v8078_v34 = vsel %vm3577_vm15, 1.0, %v6873_v3 }
 0xe15   :  { %v3571_v16 = vpop.permute.xlu0 %3570 }
 0xe16   :  { %vm3578_vm7 = vcmp.eq.s32.totalorder %v6960_v41, %v3571_v16 }
 0xe17   :  { %v8103_v52 = vsel %vm3578_vm7, 1.0, %v6873_v3 }
 0xe1a   :  { %v6778_v6 = vpop.eup %6777 }
 0xe1b   :  { %v3400_v11 = vmul.f32 %v6778_v6, %v3393_v8  ;;  %v6517_v8 = vpack.c.bf16 %v3991_v63, %v3990_v4 }
 0xe1d   :  { %6157 = vmatmul.mubr.msk.f32.vlgmr.msra.gmra.mrb[98].mxu1 %vm562_vm3, %v3400_v11 }
 0xe1e   :  { %6184 = vmatprep.mubr.msk.f32.mxu1 %vm6874_vm1, %v6873_v3 }
 0xef0   :  { %v3479_v51 = vpop.f32.mrb[98].mxu1 }
 0xef1   :  { %v3480_v20 = vadd.f32 %v5277_v9, %v3479_v51  ;;  %v6158_v23 = vpop.f32.mrb[99].mxu1 }
 0xef3   :  { %v3490_v0 = vsel %vm3487_vm13, %v3480_v20, %v7491_v61  ;;  %vm3576_vm13 = vcmp.eq.s32.totalorder %v6960_v41, %v3565_v43 }
 0xef4   :  { %v3491_v1 = vand.u32 2147483647, %v3490_v0  ;;  %v3496_v35 = vadd.f32 %v3490_v0, %v7491_v61  ;;  %v8065_v38 = vsel %vm3576_vm13, 1.0, %v6873_v3 }
 0xef5   :  { %v3832_v6 = vsub.f32 %v3548_v46, %v8065_v38 }
 0xef6   :  { %v3492_v24 = vsel %vm562_vm3, %v3491_v1, 0.0 }
 0xef7   :  { %3493 = vadd.xlane.f32.xlu1 %v3492_v24 }
 0xf08   :  { %3535 = vperm.xlu1 %6572, %v5285_v12  }
 0xf0c   :  { %3230 = vrot.lane.b32.xlu1 %v3225_v56, %s6877_s24  ;;  %v3989_v56 = vld [vmem:[%s8393_s3 + $0x258] sm:$0xff] }
 0xf0d   :  { %v6514_v57 = vpack.c.bf16 %v3989_v56, %v3988_v54 }
 0xf84   :  { %v3494_v31 = vpop.xlane.xlu1 %3493 }
 0xf85   :  { %vm3495_vm2 = vcmp.eq.f32.partialorder %v3494_v31, 0.0 }
 0xf86   :  { %v7992_v36 = vsel %vm3495_vm2, %v3496_v35, %v3490_v0  ;;  %vm3542_vm2 = vcmp.eq.s32.totalorder %v6960_v41, %v3533_v62 }
 0xf87   :  { %6160 = vmatpush3.msra.mxu0 %v7992_v36  ;;  %6183 = vmatpush3.msra.mxu1 %v7992_v36  ;;  %v3549_v13 = vsel %vm3542_vm2, 1.0, %v6873_v3 }
 0xf88   :  { %6162 = vmatmul.mubr.msk.f32.vlgmr.msra.gmra.mrb[116].mxu0 %vm150_vm4, %v7998_v60  ;;  %6185 = vmatmul.mubr.msk.f32.vlgmr.msra.gmra.mrb[100].mxu1 %vm150_vm4, %v7995_v28  ;;  %v3536_v61 = vpop.permute.xlu1 %3535  ;;  %v3833_v11 = vsub.f32 %v3549_v13, %v8078_v34 }
 0xf89   :  { %6164 = vmatprep.mubr.msk.f32.mxu0 %vm6874_vm1, %v6873_v3  ;;  %6187 = vmatprep.mubr.msk.f32.mxu1 %vm6874_vm1, %v6873_v3  ;;  %vm3543_vm8 = vcmp.eq.s32.totalorder %v6960_v41, %v3536_v61 }
 0xf8a   :  { %6205 = vmatprep.subr.mxu0 %v6873_v3  ;;  %6507 = vmatprep.subr.bf16.mxu1 %v6876_v59  ;;  %v3550_v58 = vsel %vm3543_vm8, 1.0, %v6873_v3 }
 0xf8b   :  { %6509 = vmatpush3.bf16.msra.mxu1 %v6508_v47  ;;  %v3834_v9 = vsub.f32 %v3550_v58, %v8103_v52 }
 0xf8c   :  { %6165 = vmatmul.mubr.msk.f32.gmra.mrb[118].mxu0 %vm150_vm4, %v8015_v39  ;;  %6188 = vmatmul.mubr.msk.f32.gmra.mrb[102].mxu1 %vm150_vm4, %v8018_v42  ;;  %v3231_v33 = vpop.permute.xlu1 %3230 }
 0xf8d   :  { %v3233_v44 = vadd.f32 %v3231_v33, %v7560_v25  ;;  %6167 = vmatprep.mubr.msk.f32.mxu0 %vm6874_vm1, %v6873_v3  ;;  %6190 = vmatprep.mubr.msk.f32.mxu1 %vm6874_vm1, %v6873_v3  ;;  %v8049_v25 = vsel %vm3575_vm11, 1.0, %v6873_v3 }
 0xf8e   :  { %6510 = vmatprep.subr.bf16.mxu1 %v6876_v59  ;;  %v3831_v14 = vsub.f32 %v8052_v18, %v8049_v25 }
 0xf8f   :  { %3836 = vrot.lane.b32.xlu0 %v3233_v44, %s6875_s19  ;;  %6512 = vmatpush3.bf16.msra.mxu1 %v6511_v49  ;;  %s5081_s19 = sshll.u32 %s6878_s1, 4  ;;  %s5082_s19 = int_to_ptr.vmem [resolvable:$true] %s5081_s19 }
 0xf90   :  { %6168 = vmatmul.mubr.msk.f32.gmra.mrb[120].mxu0 %vm150_vm4, %v8035_v17  ;;  %6191 = vmatmul.mubr.msk.f32.gmra.mrb[104].mxu1 %vm150_vm4, %v8032_v40  ;;  %p6853_p1 = scmp.lt.s32.totalorder %s5082_s19, %s5082_s19 }
 0xf91   :  { %6170 = vmatprep.mubr.msk.f32.mxu0 %vm6874_vm1, %v6873_v3  ;;  %6193 = vmatprep.mubr.msk.f32.mxu1 %vm6874_vm1, %v6873_v3 }
 0xf92   :  { %6519 = vmatprep.subr.bf16.mxu1 %v6876_v59 }
 0xf94   :  { %6171 = vmatmul.mubr.msk.f32.gmra.mrb[122].mxu0 %vm150_vm4, %v8052_v18  ;;  %6194 = vmatmul.mubr.msk.f32.gmra.mrb[106].mxu1 %vm150_vm4, %v8049_v25 }
 0xf95   :  { %6173 = vmatprep.mubr.msk.f32.mxu0 %vm6874_vm1, %v6873_v3  ;;  %6196 = vmatprep.mubr.msk.f32.mxu1 %vm6874_vm1, %v6873_v3 }
 0xf98   :  { %6174 = vmatmul.mubr.msk.f32.gmra.mrb[124].mxu0 %vm150_vm4, %v3548_v46  ;;  %6197 = vmatmul.mubr.msk.f32.gmra.mrb[108].mxu1 %vm150_vm4, %v8065_v38 }
 0xf99   :  { %6176 = vmatprep.mubr.msk.f32.mxu0 %vm6874_vm1, %v6873_v3  ;;  %6199 = vmatprep.mubr.msk.f32.mxu1 %vm6874_vm1, %v6873_v3 }
 0xf9c   :  { %6177 = vmatmul.mubr.msk.f32.gmra.mrb[126].mxu0 %vm150_vm4, %v3549_v13  ;;  %6200 = vmatmul.mubr.msk.f32.gmra.mrb[110].mxu1 %vm150_vm4, %v8078_v34 }
 0xf9d   :  { %6179 = vmatprep.mubr.msk.f32.mxu0 %vm6874_vm1, %v6873_v3  ;;  %6202 = vmatprep.mubr.msk.f32.mxu1 %vm6874_vm1, %v6873_v3 }
 0xfa0   :  { %6180 = vmatmul.mubr.msk.f32.gmra.mrb[128].mxu0 %vm150_vm4, %v3550_v58  ;;  %6203 = vmatmul.mubr.msk.f32.gmra.mrb[112].mxu1 %vm150_vm4, %v8103_v52 }
 0xfa1   :  { %6207 = vmatprep.mubr.msk.f32.mxu0 %vm6874_vm1, %v6873_v3  ;;  %6236 = vmatprep.mubr.msk.f32.mxu1 %vm6874_vm1, %v6873_v3 }
0x1001   :  { %v3837_v2 = vpop.permute.xlu0 %3836 }
0x1002   :  { %6206 = vmatpush3.msra.mxu0 %v3837_v2 }
0x1003   :  { %6208 = vmatmul.mubr.msk.f32.vlgmr.msra.gmra.mrb[130].mxu0 %vm150_vm4, %v3828_v55  ;;  %6513 = vmatprep.subr.bf16.mxu0 %v6876_v59 }
0x1004   :  { %6210 = vmatprep.mubr.msk.f32.mxu0 %vm6874_vm1, %v6873_v3  ;;  %6515 = vmatpush3.bf16.msra.mxu0 %v6514_v57 }
0x1005   :  { %6516 = vmatprep.subr.bf16.mxu0 %v6876_v59 }
0x1007   :  { %6211 = vmatmul.mubr.msk.f32.gmra.mrb[132].mxu0 %vm150_vm4, %v3829_v15 }
0x1008   :  { %6213 = vmatprep.mubr.msk.f32.mxu0 %vm6874_vm1, %v6873_v3  ;;  %6518 = vmatpush3.bf16.msra.mxu0 %v6517_v8 }
0x1009   :  { %6525 = vmatprep.subr.bf16.mxu0 %v6876_v59 }
0x100b   :  { %6214 = vmatmul.mubr.msk.f32.gmra.mrb[134].mxu0 %vm150_vm4, %v3830_v19 }
0x100c   :  { %6216 = vmatprep.mubr.msk.f32.mxu0 %vm6874_vm1, %v6873_v3 }
0x100f   :  { %6217 = vmatmul.mubr.msk.f32.gmra.mrb[136].mxu0 %vm150_vm4, %v3831_v14 }
0x1010   :  { %6219 = vmatprep.mubr.msk.f32.mxu0 %vm6874_vm1, %v6873_v3 }
0x1013   :  { %6220 = vmatmul.mubr.msk.f32.gmra.mrb[138].mxu0 %vm150_vm4, %v3832_v6 }
0x1014   :  { %6222 = vmatprep.mubr.msk.f32.mxu0 %vm6874_vm1, %v6873_v3 }
0x1017   :  { %6223 = vmatmul.mubr.msk.f32.gmra.mrb[140].mxu0 %vm150_vm4, %v3833_v11 }
0x1018   :  { %6225 = vmatprep.mubr.msk.f32.mxu0 %vm6874_vm1, %v6873_v3 }
0x101b   :  { %6226 = vmatmul.mubr.msk.f32.gmra.mrb[142].mxu0 %vm150_vm4, %v3834_v9 }
0x101c   :  { %6265 = vmatprep.mubr.msk.f32.mxu0 %vm6874_vm1, %v6873_v3 }
0x105b   :  { %v3673_v51 = vpop.f32.mrb[116].mxu0  ;;  %v3794_v10 = vpop.f32.mrb[100].mxu1 }
0x105c   :  { %v6163_v20 = vpop.f32.mrb[117].mxu0  ;;  %v6186_v23 = vpop.f32.mrb[101].mxu1  ;;  %6237 = vmatmul.mubr.msk.f32.vlgmr.msra.gmra.mrb[114].mxu1 %vm562_vm3, %v3673_v51  ;;  %6266 = vmatmul.mubr.msk.f32.vlgmr.msra.gmra.mrb[144].mxu0 %vm562_vm3, %v3794_v10 }
0x105d   :  { %6239 = vmatprep.mubr.msk.f32.mxu1 %vm6874_vm1, %v6873_v3  ;;  %6268 = vmatprep.mubr.msk.f32.mxu0 %vm6874_vm1, %v6873_v3  ;;  %v4318_v23 = vld [vmem:[%s8393_s3 + $0x2a0] sm:$0xff] }
0x105f   :  { %v3678_v0 = vpop.f32.mrb[118].mxu0  ;;  %v3799_v1 = vpop.f32.mrb[102].mxu1 }
0x1060   :  { %v6166_v24 = vpop.f32.mrb[119].mxu0  ;;  %v6189_v12 = vpop.f32.mrb[103].mxu1  ;;  %6240 = vmatmul.mubr.msk.f32.gmra.mrb[116].mxu1 %vm562_vm3, %v3678_v0  ;;  %6269 = vmatmul.mubr.msk.f32.gmra.mrb[146].mxu0 %vm562_vm3, %v3799_v1  ;;  %v4319_v0 = vld [vmem:[%s8393_s3 + $0x2a8] sm:$0xff] }
0x1061   :  { %6242 = vmatprep.mubr.msk.f32.mxu1 %vm6874_vm1, %v6873_v3  ;;  %6271 = vmatprep.mubr.msk.f32.mxu0 %vm6874_vm1, %v6873_v3  ;;  %v6520_v1 = vpack.c.bf16 %v4319_v0, %v4318_v23  ;;  %v4320_v24 = vld [vmem:[%s8393_s3 + $0x2b0] sm:$0xff]  ;;  %v4321_v12 = vld [vmem:[%s8393_s3 + $0x2b8] sm:$0xff] }
0x1063   :  { %v3683_v27 = vpop.f32.mrb[120].mxu0  ;;  %v3804_v7 = vpop.f32.mrb[104].mxu1  ;;  %6521 = vmatpush3.bf16.msra.mxu1 %v6520_v1 }
0x1064   :  { %v6169_v21 = vpop.f32.mrb[121].mxu0  ;;  %v6192_v30 = vpop.f32.mrb[105].mxu1  ;;  %6243 = vmatmul.mubr.msk.f32.gmra.mrb[118].mxu1 %vm562_vm3, %v3683_v27  ;;  %6272 = vmatmul.mubr.msk.f32.gmra.mrb[148].mxu0 %vm562_vm3, %v3804_v7  ;;  %v6523_v27 = vpack.c.bf16 %v4321_v12, %v4320_v24 }
0x1065   :  { %6245 = vmatprep.mubr.msk.f32.mxu1 %vm6874_vm1, %v6873_v3  ;;  %6274 = vmatprep.mubr.msk.f32.mxu0 %vm6874_vm1, %v6873_v3 }
0x1066   :  { %6522 = vmatprep.subr.bf16.mxu1 %v6876_v59 }
0x1067   :  { %v3688_v29 = vpop.f32.mrb[122].mxu0  ;;  %v3809_v53 = vpop.f32.mrb[106].mxu1  ;;  %6524 = vmatpush3.bf16.msra.mxu1 %v6523_v27 }
0x1068   :  { %v6172_v32 = vpop.f32.mrb[123].mxu0  ;;  %v6195_v62 = vpop.f32.mrb[107].mxu1  ;;  %6246 = vmatmul.mubr.msk.f32.gmra.mrb[120].mxu1 %vm562_vm3, %v3688_v29  ;;  %6275 = vmatmul.mubr.msk.f32.gmra.mrb[150].mxu0 %vm562_vm3, %v3809_v53 }
0x1069   :  { %6248 = vmatprep.mubr.msk.f32.mxu1 %vm6874_vm1, %v6873_v3  ;;  %6277 = vmatprep.mubr.msk.f32.mxu0 %vm6874_vm1, %v6873_v3 }
0x106a   :  { %6534 = vmatprep.subr.bf16.mxu1 %v6876_v59 }
0x106b   :  { %v3693_v26 = vpop.f32.mrb[124].mxu0  ;;  %v3814_v35 = vpop.f32.mrb[108].mxu1 }
0x106c   :  { %v6175_v31 = vpop.f32.mrb[125].mxu0  ;;  %v6198_v22 = vpop.f32.mrb[109].mxu1  ;;  %6249 = vmatmul.mubr.msk.f32.gmra.mrb[122].mxu1 %vm562_vm3, %v3693_v26  ;;  %6278 = vmatmul.mubr.msk.f32.gmra.mrb[152].mxu0 %vm562_vm3, %v3814_v35 }
0x106d   :  { %6251 = vmatprep.mubr.msk.f32.mxu1 %vm6874_vm1, %v6873_v3  ;;  %6280 = vmatprep.mubr.msk.f32.mxu0 %vm6874_vm1, %v6873_v3 }
0x106f   :  { %v3698_v60 = vpop.f32.mrb[126].mxu0  ;;  %v3819_v61 = vpop.f32.mrb[110].mxu1 }
0x1070   :  { %v6178_v39 = vpop.f32.mrb[127].mxu0  ;;  %v6201_v33 = vpop.f32.mrb[111].mxu1  ;;  %6252 = vmatmul.mubr.msk.f32.gmra.mrb[124].mxu1 %vm562_vm3, %v3698_v60  ;;  %6281 = vmatmul.mubr.msk.f32.gmra.mrb[154].mxu0 %vm562_vm3, %v3819_v61 }
0x1071   :  { %6254 = vmatprep.mubr.msk.f32.mxu1 %vm6874_vm1, %v6873_v3  ;;  %6283 = vmatprep.mubr.msk.f32.mxu0 %vm6874_vm1, %v6873_v3 }
0x1073   :  { %v3703_v43 = vpop.f32.mrb[128].mxu0  ;;  %v3824_v44 = vpop.f32.mrb[112].mxu1 }
0x1074   :  { %v6181_v17 = vpop.f32.mrb[129].mxu0  ;;  %v6204_v50 = vpop.f32.mrb[113].mxu1  ;;  %6255 = vmatmul.mubr.msk.f32.gmra.mrb[126].mxu1 %vm562_vm3, %v3703_v43  ;;  %6284 = vmatmul.mubr.msk.f32.gmra.mrb[156].mxu0 %vm562_vm3, %v3824_v44 }
0x1075   :  { %6294 = vmatprep.mubr.msk.f32.mxu1 %vm6874_vm1, %v6873_v3  ;;  %6329 = vmatprep.mubr.msk.f32.mxu0 %vm6874_vm1, %v6873_v3 }
0x10d6   :  { %v3926_v18 = vpop.f32.mrb[130].mxu0 }
0x10d7   :  { %v3960_v46 = vmul.f32 %v3926_v18, %v3926_v18  ;;  %v6209_v16 = vpop.f32.mrb[131].mxu0 }
0x10d9   :  { %v3967_v13 = vsel %vm532_vm5, %v3960_v46, 0.0 }
0x10da   :  { %3968 = vadd.xlane.f32.xlu1 %v3967_v13  ;;  %v3931_v37 = vpop.f32.mrb[132].mxu0 }
0x10db   :  { %v3961_v5 = vmul.f32 %v3931_v37, %v3931_v37  ;;  %v6212_v47 = vpop.f32.mrb[133].mxu0 }
0x10dd   :  { %v3970_v45 = vsel %vm532_vm5, %v3961_v5, 0.0 }
0x10de   :  { %3971 = vadd.xlane.f32.xlu0 %v3970_v45  ;;  %v3936_v48 = vpop.f32.mrb[134].mxu0 }
0x10df   :  { %v3962_v49 = vmul.f32 %v3936_v48, %v3936_v48  ;;  %v6215_v58 = vpop.f32.mrb[135].mxu0 }
0x10e1   :  { %v3973_v54 = vsel %vm532_vm5, %v3962_v49, 0.0  ;;  %v5328_v49 = vld [vmem:[%s8393_s3 + $0x290] ss:$0 sm:$0xff] }
0x10e2   :  { %3974 = vadd.xlane.f32.xlu0 %v3973_v54  ;;  %v3941_v56 = vpop.f32.mrb[136].mxu0 }
0x10e3   :  { %v3963_v57 = vmul.f32 %v3941_v56, %v3941_v56  ;;  %v6218_v55 = vpop.f32.mrb[137].mxu0  ;;  %v5329_v56 = vld [vmem:[%s8393_s3 + $0x298] ss:$0 sm:$0xff] }
0x10e5   :  { %v3976_v2 = vsel %vm532_vm5, %v3963_v57, 0.0 }
0x10e6   :  { %3977 = vadd.xlane.f32.xlu1 %v3976_v2  ;;  %v3946_v4 = vpop.f32.mrb[138].mxu0 }
0x10e7   :  { %v3964_v63 = vmul.f32 %v3946_v4, %v3946_v4  ;;  %v6221_v8 = vpop.f32.mrb[139].mxu0 }
0x10e9   :  { %v3979_v15 = vsel %vm532_vm5, %v3964_v63, 0.0 }
0x10ea   :  { %3980 = vadd.xlane.f32.xlu0 %v3979_v15  ;;  %v3951_v19 = vpop.f32.mrb[140].mxu0 }
0x10eb   :  { %v3965_v14 = vmul.f32 %v3951_v19, %v3951_v19  ;;  %v6224_v6 = vpop.f32.mrb[141].mxu0 }
0x10ed   :  { %v3982_v11 = vsel %vm532_vm5, %v3965_v14, 0.0 }
0x10ee   :  { %3983 = vadd.xlane.f32.xlu1 %v3982_v11  ;;  %v3956_v9 = vpop.f32.mrb[142].mxu0 }
0x10ef   :  { %v3966_v51 = vmul.f32 %v3956_v9, %v3956_v9  ;;  %v6227_v10 = vpop.f32.mrb[143].mxu0 }
0x10f1   :  { %v3985_v20 = vsel %vm532_vm5, %v3966_v51, 0.0 }
0x10f2   :  { %3986 = vadd.xlane.f32.xlu0 %v3985_v20 }
0x1121   :  { %4497 = vxpose.xlu1.b32.start [1/7] (short) (narrow) %v7995_v28, 8 }
0x1125   :  { %4498 = vxpose.xlu1.b32.cont [2/7] (short) (narrow) %v8018_v42, 8 }
0x1129   :  { %4499 = vxpose.xlu1.b32.cont [3/7] (short) (narrow) %v8032_v40, 8 }
0x112d   :  { %4500 = vxpose.xlu1.b32.cont [4/7] (short) (narrow) %v8049_v25, 8 }
0x112f   :  { %v4083_v7 = vpop.f32.mrb[114].mxu1  ;;  %v4204_v21 = vpop.f32.mrb[144].mxu0 }
0x1130   :  { %v4205_v30 = vadd.f32 %v4204_v21, %v4083_v7  ;;  %v6238_v29 = vpop.f32.mrb[115].mxu1  ;;  %v6267_v53 = vpop.f32.mrb[145].mxu0 }
0x1131   :  { %4501 = vxpose.xlu1.b32.cont [5/7] (short) (narrow) %v8065_v38, 8 }
0x1133   :  { %v4088_v32 = vpop.f32.mrb[116].mxu1  ;;  %v4209_v62 = vpop.f32.mrb[146].mxu0 }
0x1134   :  { %v4210_v26 = vadd.f32 %v4209_v62, %v4088_v32  ;;  %v6241_v35 = vpop.f32.mrb[117].mxu1  ;;  %v6270_v31 = vpop.f32.mrb[147].mxu0 }
0x1135   :  { %4502 = vxpose.xlu1.b32.cont [6/7] (short) (narrow) %v8078_v34, 8 }
0x1137   :  { %v4093_v28 = vpop.f32.mrb[118].mxu1  ;;  %v4214_v42 = vpop.f32.mrb[148].mxu0 }
0x1138   :  { %v4215_v22 = vadd.f32 %v4214_v42, %v4093_v28  ;;  %v6244_v40 = vpop.f32.mrb[119].mxu1  ;;  %v6273_v60 = vpop.f32.mrb[149].mxu0 }
0x1139   :  { %4503 = vxpose.xlu1.b32.end [7/7] (short) (narrow) %v8103_v52, 8 }
0x113b   :  { %v4098_v25 = vpop.f32.mrb[120].mxu1  ;;  %v4219_v61 = vpop.f32.mrb[150].mxu0 }
0x113c   :  { %v4220_v39 = vadd.f32 %v4219_v61, %v4098_v25  ;;  %v6247_v33 = vpop.f32.mrb[121].mxu1  ;;  %v6276_v43 = vpop.f32.mrb[151].mxu0 }
0x113f   :  { %v4103_v38 = vpop.f32.mrb[122].mxu1  ;;  %v4224_v44 = vpop.f32.mrb[152].mxu0 }
0x1140   :  { %v4225_v17 = vadd.f32 %v4224_v44, %v4103_v38  ;;  %v6250_v50 = vpop.f32.mrb[123].mxu1  ;;  %v6279_v18 = vpop.f32.mrb[153].mxu0 }
0x1143   :  { %v4108_v46 = vpop.f32.mrb[124].mxu1  ;;  %v4229_v16 = vpop.f32.mrb[154].mxu0 }
0x1144   :  { %v4230_v34 = vadd.f32 %v4229_v16, %v4108_v46  ;;  %v6253_v13 = vpop.f32.mrb[125].mxu1  ;;  %v6282_v37 = vpop.f32.mrb[155].mxu0 }
0x1147   :  { %v4113_v5 = vpop.f32.mrb[126].mxu1  ;;  %v4234_v47 = vpop.f32.mrb[156].mxu0 }
0x1148   :  { %v4235_v45 = vadd.f32 %v4234_v47, %v4113_v5  ;;  %v6256_v48 = vpop.f32.mrb[127].mxu1  ;;  %v6285_v52 = vpop.f32.mrb[157].mxu0 }
0x1167   :  { %v3969_v58 = vpop.xlane.xlu1 %3968 }
0x1168   :  { %v4243_v54 = vmul.f32 %v5328_v49, %v3969_v58 }
0x116a   :  { %v4250_v57 = vadd.f32 %v4243_v54, %v4205_v30 }
0x116b   :  { %v3972_v55 = vpop.xlane.xlu0 %3971 }
0x116c   :  { %v4262_v2 = vadd.f32 %v5329_v56, %v4250_v57  ;;  %v4244_v4 = vmul.f32 %v5328_v49, %v3972_v55  ;;  %v4606_v55 = vld [vmem:[%s8393_s3 + $0x320] sm:$0xff] }
0x116e   :  { %v5330_v63 = vmul.f32 -1.442695, %v4262_v2  ;;  %v4251_v8 = vadd.f32 %v4244_v4, %v4210_v26  ;;  %v4608_v4 = vld [vmem:[%s8393_s3 + $0x330] sm:$0xff] }
0x116f   :  { %v3975_v15 = vpop.xlane.xlu0 %3974 }
0x1170   :  { %6779 = vpow2.f32 %v5330_v63  ;;  %v4263_v19 = vadd.f32 %v5329_v56, %v4251_v8  ;;  %v4245_v14 = vmul.f32 %v5328_v49, %v3975_v15  ;;  %v4609_v8 = vld [vmem:[%s8393_s3 + $0x338] sm:$0xff] }
0x1171   :  { %v6538_v15 = vpack.c.bf16 %v4609_v8, %v4608_v4 }
0x1172   :  { %v5331_v6 = vmul.f32 -1.442695, %v4263_v19  ;;  %v4252_v11 = vadd.f32 %v4245_v14, %v4215_v22 }
0x1173   :  { %v3978_v9 = vpop.xlane.xlu1 %3977 }
0x1174   :  { %6781 = vpow2.f32 %v5331_v6  ;;  %v4264_v51 = vadd.f32 %v5329_v56, %v4252_v11  ;;  %v4246_v10 = vmul.f32 %v5328_v49, %v3978_v9 }
0x1176   :  { %v5332_v20 = vmul.f32 -1.442695, %v4264_v51  ;;  %v4253_v23 = vadd.f32 %v4246_v10, %v4220_v39 }
0x1177   :  { %v3981_v0 = vpop.xlane.xlu0 %3980 }
0x1178   :  { %6783 = vpow2.f32 %v5332_v20  ;;  %v4265_v1 = vadd.f32 %v5329_v56, %v4253_v23  ;;  %v4247_v24 = vmul.f32 %v5328_v49, %v3981_v0 }
0x117a   :  { %v6780_v12 = vpop.eup %6779  ;;  %v5333_v27 = vmul.f32 -1.442695, %v4265_v1  ;;  %v4254_v7 = vadd.f32 %v4247_v24, %v4225_v17 }
0x117b   :  { %v4290_v21 = vadd.f32 1.0, %v6780_v12  ;;  %v3984_v30 = vpop.xlane.xlu1 %3983 }
0x117c   :  { %6785 = vpow2.f32 %v5333_v27  ;;  %v4266_v29 = vadd.f32 %v5329_v56, %v4254_v7  ;;  %v4248_v53 = vmul.f32 %v5328_v49, %v3984_v30 }
0x117d   :  { %6787 = vrcp.f32 %v4290_v21 }
0x117e   :  { %v6782_v32 = vpop.eup %6781  ;;  %v5334_v62 = vmul.f32 -1.442695, %v4266_v29  ;;  %v4255_v26 = vadd.f32 %v4248_v53, %v4230_v34 }
0x117f   :  { %v4291_v35 = vadd.f32 1.0, %v6782_v32  ;;  %v3987_v31 = vpop.xlane.xlu0 %3986 }
0x1180   :  { %6789 = vpow2.f32 %v5334_v62  ;;  %v4267_v28 = vadd.f32 %v5329_v56, %v4255_v26  ;;  %v4249_v42 = vmul.f32 %v5328_v49, %v3987_v31 }
0x1181   :  { %6791 = vrcp.f32 %v4291_v35 }
0x1182   :  { %v6784_v22 = vpop.eup %6783  ;;  %v5335_v40 = vmul.f32 -1.442695, %v4267_v28  ;;  %v4256_v60 = vadd.f32 %v4249_v42, %v4235_v45 }
0x1183   :  { %v4292_v25 = vadd.f32 1.0, %v6784_v22 }
0x1184   :  { %6793 = vpow2.f32 %v5335_v40  ;;  %v4268_v61 = vadd.f32 %v5329_v56, %v4256_v60 }
0x1185   :  { %6795 = vrcp.f32 %v4292_v25 }
0x1186   :  { %v6786_v39 = vpop.eup %6785  ;;  %v5336_v33 = vmul.f32 -1.442695, %v4268_v61 }
0x1187   :  { %v6788_v43 = vpop.eup %6787  ;;  %v4293_v38 = vadd.f32 1.0, %v6786_v39 }
0x1188   :  { %v4311_v44 = vmul.f32 %v6788_v43, %v4262_v2  ;;  %6797 = vpow2.f32 %v5336_v33  ;;  %v4607_v2 = vld [vmem:[%s8393_s3 + $0x328] sm:$0xff] }
0x1189   :  { %6799 = vrcp.f32 %v4293_v38  ;;  %v6535_v63 = vpack.c.bf16 %v4607_v2, %v4606_v55 }
0x118a   :  { %v6790_v17 = vpop.eup %6789  ;;  %6295 = vmatmul.mubr.msk.f32.vlgmr.msra.gmra.mrb[128].mxu1 %vm562_vm3, %v4311_v44 }
0x118b   :  { %v6792_v50 = vpop.eup %6791  ;;  %v4294_v18 = vadd.f32 1.0, %v6790_v17  ;;  %6297 = vmatprep.mubr.msk.f32.mxu1 %vm6874_vm1, %v6873_v3  ;;  %6536 = vmatpush3.bf16.msra.mxu1 %v6535_v63 }
0x118c   :  { %v4312_v46 = vmul.f32 %v6792_v50, %v4263_v19  ;;  %6537 = vmatprep.subr.bf16.mxu1 %v6876_v59  ;;  %v5337_v19 = vld [vmem:[%s8393_s3 + $0x2c0] ss:$0 sm:$0xff] }
0x118d   :  { %6801 = vrcp.f32 %v4294_v18 }
0x118e   :  { %v6794_v16 = vpop.eup %6793  ;;  %6298 = vmatmul.mubr.msk.f32.gmra.mrb[130].mxu1 %vm562_vm3, %v4312_v46 }
0x118f   :  { %v6796_v34 = vpop.eup %6795  ;;  %v4295_v13 = vadd.f32 1.0, %v6794_v16  ;;  %6300 = vmatprep.mubr.msk.f32.mxu1 %vm6874_vm1, %v6873_v3  ;;  %6539 = vmatpush3.bf16.msra.mxu1 %v6538_v15  ;;  %v4602_v15 = vld [vmem:[%s8393_s3 + $0x300] sm:$0xff] }
0x1190   :  { %v4313_v37 = vmul.f32 %v6796_v34, %v4264_v51  ;;  %6546 = vmatprep.subr.bf16.mxu1 %v6876_v59 }
0x1191   :  { %6803 = vrcp.f32 %v4295_v13 }
0x1192   :  { %v6798_v5 = vpop.eup %6797  ;;  %6301 = vmatmul.mubr.msk.f32.gmra.mrb[132].mxu1 %vm562_vm3, %v4313_v37 }
0x1193   :  { %v6800_v47 = vpop.eup %6799  ;;  %v4296_v45 = vadd.f32 1.0, %v6798_v5  ;;  %6303 = vmatprep.mubr.msk.f32.mxu1 %vm6874_vm1, %v6873_v3 }
0x1194   :  { %v4314_v48 = vmul.f32 %v6800_v47, %v4265_v1 }
0x1195   :  { %6805 = vrcp.f32 %v4296_v45 }
0x1196   :  { %6304 = vmatmul.mubr.msk.f32.gmra.mrb[134].mxu1 %vm562_vm3, %v4314_v48 }
0x1197   :  { %v6802_v52 = vpop.eup %6801  ;;  %6306 = vmatprep.mubr.msk.f32.mxu1 %vm6874_vm1, %v6873_v3 }
0x1198   :  { %v4315_v49 = vmul.f32 %v6802_v52, %v4266_v29 }
0x119a   :  { %6307 = vmatmul.mubr.msk.f32.gmra.mrb[136].mxu1 %vm562_vm3, %v4315_v49 }
0x119b   :  { %v6804_v58 = vpop.eup %6803  ;;  %6309 = vmatprep.mubr.msk.f32.mxu1 %vm6874_vm1, %v6873_v3 }
0x119c   :  { %v4316_v54 = vmul.f32 %v6804_v58, %v4267_v28 }
0x119e   :  { %6310 = vmatmul.mubr.msk.f32.gmra.mrb[138].mxu1 %vm562_vm3, %v4316_v54 }
0x119f   :  { %v6806_v56 = vpop.eup %6805  ;;  %6312 = vmatprep.mubr.msk.f32.mxu1 %vm6874_vm1, %v6873_v3 }
0x11a0   :  { %v4317_v57 = vmul.f32 %v6806_v56, %v4268_v61 }
0x11a2   :  { %6313 = vmatmul.mubr.msk.f32.gmra.mrb[140].mxu1 %vm562_vm3, %v4317_v57 }
0x11a3   :  { %6340 = vmatprep.mubr.msk.f32.mxu1 %vm6874_vm1, %v6873_v3 }
0x125d   :  { %v4414_v14 = vpop.f32.mrb[128].mxu1 }
0x125e   :  { %v4415_v6 = vadd.f32 %v5337_v19, %v4414_v14  ;;  %v6296_v11 = vpop.f32.mrb[129].mxu1 }
0x1260   :  { %v5345_v9 = vmul.f32 -1.442695, %v4415_v6 }
0x1261   :  { %v4419_v51 = vpop.f32.mrb[130].mxu1 }
0x1262   :  { %6807 = vpow2.f32 %v5345_v9  ;;  %v4420_v10 = vadd.f32 %v5337_v19, %v4419_v51  ;;  %v6299_v20 = vpop.f32.mrb[131].mxu1  ;;  %v4604_v9 = vld [vmem:[%s8393_s3 + $0x310] sm:$0xff]  ;;  %v4605_v51 = vld [vmem:[%s8393_s3 + $0x318] sm:$0xff] }
0x1264   :  { %v5346_v23 = vmul.f32 -1.442695, %v4420_v10 }
0x1265   :  { %v4424_v0 = vpop.f32.mrb[132].mxu1 }
0x1266   :  { %6809 = vpow2.f32 %v5346_v23  ;;  %v4425_v1 = vadd.f32 %v5337_v19, %v4424_v0  ;;  %v6302_v24 = vpop.f32.mrb[133].mxu1 }
0x1268   :  { %v5347_v12 = vmul.f32 -1.442695, %v4425_v1 }
0x1269   :  { %v4429_v27 = vpop.f32.mrb[134].mxu1 }
0x126a   :  { %6811 = vpow2.f32 %v5347_v12  ;;  %v4430_v7 = vadd.f32 %v5337_v19, %v4429_v27  ;;  %v6305_v21 = vpop.f32.mrb[135].mxu1  ;;  %v4769_v27 = vld [vmem:[%s8393_s3 + $0x348] sm:$0xff] }
0x126c   :  { %v6808_v30 = vpop.eup %6807  ;;  %v5348_v29 = vmul.f32 -1.442695, %v4430_v7 }
0x126d   :  { %v4469_v53 = vadd.f32 1.0, %v6808_v30  ;;  %v4434_v32 = vpop.f32.mrb[136].mxu1  ;;  %v4771_v30 = vld [vmem:[%s8393_s3 + $0x358] sm:$0xff] }
0x126e   :  { %6813 = vpow2.f32 %v5348_v29  ;;  %v4435_v62 = vadd.f32 %v5337_v19, %v4434_v32  ;;  %v6308_v26 = vpop.f32.mrb[137].mxu1  ;;  %v4772_v29 = vld [vmem:[%s8393_s3 + $0x360] sm:$0xff] }
0x126f   :  { %6815 = vrcp.f32 %v4469_v53  ;;  %v6550_v53 = vpack.c.bf16 %v4772_v29, %v4771_v30 }
0x1270   :  { %v6810_v35 = vpop.eup %6809  ;;  %v5349_v31 = vmul.f32 -1.442695, %v4435_v62 }
0x1271   :  { %v4470_v28 = vadd.f32 1.0, %v6810_v35  ;;  %v4439_v42 = vpop.f32.mrb[138].mxu1 }
0x1272   :  { %6817 = vpow2.f32 %v5349_v31  ;;  %v4440_v22 = vadd.f32 %v5337_v19, %v4439_v42  ;;  %v6311_v40 = vpop.f32.mrb[139].mxu1 }
0x1273   :  { %6819 = vrcp.f32 %v4470_v28 }
0x1274   :  { %v6812_v60 = vpop.eup %6811  ;;  %v5350_v25 = vmul.f32 -1.442695, %v4440_v22 }
0x1275   :  { %v4471_v61 = vadd.f32 1.0, %v6812_v60  ;;  %v4444_v39 = vpop.f32.mrb[140].mxu1 }
0x1276   :  { %6821 = vpow2.f32 %v5350_v25  ;;  %v4445_v33 = vadd.f32 %v5337_v19, %v4444_v39  ;;  %v6314_v43 = vpop.f32.mrb[141].mxu1  ;;  %v4603_v19 = vld [vmem:[%s8393_s3 + $0x308] sm:$0xff]  ;;  %v4868_v25 = vld [vmem:[%s8393_s3 + $0x370] sm:$0xff]  ;;  %v4870_v39 = vld [vmem:[%s8393_s3 + $0x380] sm:$0xff] }
0x1277   :  { %6823 = vrcp.f32 %v4471_v61  ;;  %v6541_v11 = vpack.c.bf16 %v4603_v19, %v4602_v15  ;;  %v4869_v61 = vld [vmem:[%s8393_s3 + $0x378] sm:$0xff]  ;;  %v4871_v43 = vld [vmem:[%s8393_s3 + $0x388] sm:$0xff] }
0x1278   :  { %v6814_v38 = vpop.eup %6813  ;;  %v5351_v44 = vmul.f32 -1.442695, %v4445_v33  ;;  %v5362_v15 = vld [vmem:[%s8393_s3 + $0x3b8] ss:$0 sm:$0xff] }
0x1279   :  { %v4472_v17 = vadd.f32 1.0, %v6814_v38  ;;  %v6816_v50 = vpop.eup %6815  ;;  %v6556_v38 = vpack.c.bf16 %v4871_v43, %v4870_v39 }
0x127a   :  { %6825 = vpow2.f32 %v5351_v44  ;;  %v4490_v34 = vmul.f32 %v6816_v50, %v4415_v6  ;;  %v4513_v6 = vpop.trf.xlu1  ;;  %v5357_v44 = vld [vmem:[%s8393_s3 + $0x368] ss:$0 sm:$0xff] }
0x127b   :  { %6827 = vrcp.f32 %v4472_v17 }
0x127c   :  { %v6818_v18 = vpop.eup %6817 }
0x127d   :  { %v6820_v46 = vpop.eup %6819  ;;  %v4473_v16 = vadd.f32 1.0, %v6818_v18 }
0x127e   :  { %v4491_v13 = vmul.f32 %v6820_v46, %v4420_v10  ;;  %v6544_v10 = vpack.c.bf16 %v4605_v51, %v4604_v9 }
0x127f   :  { %6829 = vrcp.f32 %v4473_v16 }
0x1280   :  { %v6822_v37 = vpop.eup %6821  ;;  %v6526_v5 = vpack.c.bf16 %v4491_v13, %v4490_v34 }
0x1281   :  { %v4474_v47 = vadd.f32 1.0, %v6822_v37  ;;  %v6824_v45 = vpop.eup %6823 }
0x1282   :  { %6527 = vmatpush3.bf16.msra.mxu0 %v6526_v5  ;;  %v4492_v58 = vmul.f32 %v6824_v45, %v4425_v1  ;;  %v4957_v45 = vld [vmem:[%s8393_s3 + $0x398] sm:$0xff] }
0x1283   :  { %6831 = vrcp.f32 %v4474_v47  ;;  %6528 = vmatprep.subr.bf16.mxu0 %v6876_v59 }
0x1284   :  { %v6826_v48 = vpop.eup %6825 }
0x1285   :  { %v6828_v52 = vpop.eup %6827  ;;  %v4475_v49 = vadd.f32 1.0, %v6826_v48  ;;  %v4958_v48 = vld [vmem:[%s8393_s3 + $0x3a0] sm:$0xff] }
0x1286   :  { %v4493_v54 = vmul.f32 %v6828_v52, %v4430_v7  ;;  %v4770_v7 = vld [vmem:[%s8393_s3 + $0x350] sm:$0xff]  ;;  %v6559_v52 = vpack.c.bf16 %v4958_v48, %v4957_v45 }
0x1287   :  { %6833 = vrcp.f32 %v4475_v49  ;;  %v6547_v21 = vpack.c.bf16 %v4770_v7, %v4769_v27  ;;  %v4960_v49 = vld [vmem:[%s8393_s3 + $0x3b0] sm:$0xff]  ;;  %v5366_v27 = vld [vmem:[%s8393_s3 + $0x3c8] ss:$0 sm:$0xff] }
0x1288   :  { %v6529_v56 = vpack.c.bf16 %v4493_v54, %v4492_v58  ;;  %v5359_v54 = vld [vmem:[%s8393_s3 + $0x390] ss:$0 sm:$0xff] }
0x1289   :  { %v6830_v57 = vpop.eup %6829 }
0x128a   :  { %6530 = vmatpush3.bf16.msra.mxu0 %v6529_v56  ;;  %v4494_v2 = vmul.f32 %v6830_v57, %v4435_v62  ;;  %v5355_v62 = vld [vmem:[%s8393_s3 + $0x340] ss:$0 sm:$0xff] }
0x128b   :  { %6531 = vmatprep.subr.bf16.mxu0 %v6876_v59 }
0x128d   :  { %v6832_v55 = vpop.eup %6831 }
0x128e   :  { %v4495_v4 = vmul.f32 %v6832_v55, %v4440_v22 }
0x1290   :  { %v6532_v63 = vpack.c.bf16 %v4495_v4, %v4494_v2 }
0x1291   :  { %v6834_v8 = vpop.eup %6833 }
0x1292   :  { %6533 = vmatpush3.bf16.msra.mxu0 %v6532_v63  ;;  %v4496_v14 = vmul.f32 %v6834_v8, %v4445_v33  ;;  %v6553_v33 = vpack.c.bf16 %v4869_v61, %v4868_v25 }
0x1293   :  { %6327 = vmatprep.subr.mxu0 %v6873_v3 }
0x1296   :  { %6328 = vmatpush3.msra.mxu0 %v4496_v14 }
0x1297   :  { %6330 = vmatmul.mubr.msk.f32.vlgmr.msra.gmra.mrb[158].mxu0 %vm1369_vm6, %v4513_v6  ;;  %6540 = vmatprep.subr.bf16.mxu0 %v6876_v59 }
0x1298   :  { %6542 = vmatpush3.bf16.msra.mxu0 %v6541_v11  ;;  %6351 = vmatprep.mubr.msk.f32.mxu0 %vm6874_vm1, %v6873_v3 }
0x1299   :  { %6543 = vmatprep.subr.bf16.mxu0 %v6876_v59 }
0x129c   :  { %6545 = vmatpush3.bf16.msra.mxu0 %v6544_v10 }
0x129d   :  { %6552 = vmatprep.subr.bf16.mxu0 %v6876_v59 }
0x129f   :  { %6352 = vmatmul.mubr.msk.f32.vlgmr.msra.gmra.mrb[160].mxu0 %vm562_vm3, %v7992_v36 }
0x12a0   :  { %6373 = vmatprep.mubr.msk.f32.mxu0 %vm6874_vm1, %v6873_v3  ;;  %6554 = vmatpush3.bf16.msra.mxu0 %v6553_v33 }
0x12a1   :  { %6555 = vmatprep.subr.bf16.mxu0 %v6876_v59 }
0x12a4   :  { %6557 = vmatpush3.bf16.msra.mxu0 %v6556_v38 }
0x136a   :  { %v4598_v20 = vpop.f32.mrb[158].mxu0 }
0x136b   :  { %v4851_v23 = vand.u32 2147483647, %v4598_v20  ;;  %6341 = vmatmul.mubr.msk.f32.vlgmr.msra.gmra.mrb[142].mxu1 %vm562_vm3, %v4598_v20  ;;  %v6331_v0 = vpop.f32.mrb[159].mxu0  ;;  %v5365_v20 = vld [vmem:[%s8393_s3 + $0x3c0] ss:$0 sm:$0xff] }
0x136c   :  { %6362 = vmatprep.mubr.msk.f32.mxu1 %vm6874_vm1, %v6873_v3  ;;  %6548 = vmatpush3.bf16.msra.mxu1 %v6547_v21 }
0x136d   :  { %v4852_v1 = vsel %vm562_vm3, %v4851_v23, 0.0  ;;  %6549 = vmatprep.subr.bf16.mxu1 %v6876_v59 }
0x136e   :  { %4853 = vadd.xlane.f32.xlu0 %v4852_v1 }
0x1370   :  { %6551 = vmatpush3.bf16.msra.mxu1 %v6550_v53 }
0x1371   :  { %6558 = vmatprep.subr.bf16.mxu1 %v6876_v59 }
0x1372   :  { %v4752_v24 = vpop.f32.mrb[160].mxu0 }
0x1373   :  { %v6353_v12 = vpop.f32.mrb[161].mxu0 }
0x1374   :  { %v5062_v12 = vld [vmem:[%s8392_s2] sm:$0xff]  ;;  %s6848_s2 = scalar_lea.vmem %s5082_s19, 16 }
0x1375   :  { %p6849_p0 = scmp.ne.s32.totalorder %s5082_s19, %s6848_s2 }
0x13fb   :  { %v4854_v17 = vpop.xlane.xlu0 %4853 }
0x143e   :  { %v4679_v32 = vpop.f32.mrb[142].mxu1 }
0x143f   :  { %v4753_v26 = vadd.f32 %v4752_v24, %v4679_v32  ;;  %v6342_v35 = vpop.f32.mrb[143].mxu1  ;;  %v5061_v24 = vmul.u32 2, %v6960_v41 }
0x1441   :  { %v4761_v31 = vadd.f32 %v5355_v62, %v4753_v26  ;;  %vm5063_vm5 = vcmp.eq.s32.totalorder %v5061_v24, %v5062_v12 }
0x1442   :  { %v5064_v7 = vsel %vm5063_vm5, 1.0, %v6873_v3 }
0x1443   :  { %v5356_v28 = vmul.f32 -1.442695, %v4761_v31 }
0x1445   :  { %6835 = vpow2.f32 %v5356_v28 }
0x144f   :  { %v6836_v42 = vpop.eup %6835 }
0x1450   :  { %v4765_v22 = vadd.f32 1.0, %v6836_v42 }
0x1452   :  { %6837 = vrcp.f32 %v4765_v22 }
0x145c   :  { %v6838_v40 = vpop.eup %6837 }
0x145d   :  { %v4768_v60 = vmul.f32 %v6838_v40, %v4761_v31 }
0x145f   :  { %6363 = vmatmul.mubr.msk.f32.vlgmr.msra.gmra.mrb[144].mxu1 %vm562_vm3, %v4768_v60 }
0x1460   :  { %6384 = vmatprep.mubr.msk.f32.mxu1 %vm6874_vm1, %v6873_v3  ;;  %vm4855_vm1 = vcmp.gt.f32.partialorder %v4854_v17, 0.0  ;;  %6560 = vmatpush3.bf16.msra.mxu1 %v6559_v52 }
0x1461   :  { %6561 = vmatprep.subr.bf16.mxu1 %v6876_v59 }
0x1532   :  { %v4847_v50 = vpop.f32.mrb[144].mxu1 }
0x1533   :  { %v4848_v18 = vadd.f32 %v5357_v44, %v4847_v50  ;;  %v6364_v46 = vpop.f32.mrb[145].mxu1 }
0x1535   :  { %v4858_v16 = vsel %vm4855_vm1, %v4848_v18, %v7992_v36 }
0x1536   :  { %v4859_v34 = vand.u32 2147483647, %v4858_v16  ;;  %v4864_v37 = vadd.f32 %v4858_v16, %v7992_v36  ;;  %v4959_v36 = vld [vmem:[%s8393_s3 + $0x3a8] sm:$0xff]  ;;  %s6852_s3 = scalar_lea.vmem %s5082_s19, 32 }
0x1537   :  { %v6562_v58 = vpack.c.bf16 %v4960_v49, %v4959_v36  ;;  %p6854_p2 = scmp.lt.s32.totalorder %s6852_s3, %s6848_s2 }
0x1538   :  { %v4860_v13 = vsel %vm562_vm3, %v4859_v34, 0.0 }
0x1539   :  { %4861 = vadd.xlane.f32.xlu0 %v4860_v13  ;;  %6563 = vmatpush3.bf16.msra.mxu1 %v6562_v58  ;;  %p6855_p3 = por %p6854_p2, %p6853_p1 }
0x153b   :  { %p6856_p4 = pnand %p6855_p3, %p6849_p0 }
0x15c6   :  { %v4862_v5 = vpop.xlane.xlu0 %4861 }
0x15c7   :  { %vm4863_vm4 = vcmp.eq.f32.partialorder %v4862_v5, 0.0 }
0x15c8   :  { %v4867_v47 = vsel %vm4863_vm4, %v4864_v37, %v4858_v16 }
0x15c9   :  { %6374 = vmatmul.mubr.msk.f32.vlgmr.msra.gmra.mrb[162].mxu0 %vm562_vm3, %v4867_v47 }
0x169c   :  { %v4946_v56 = vpop.f32.mrb[162].mxu0 }
0x169d   :  { %v4947_v57 = vadd.f32 %v5359_v54, %v4946_v56  ;;  %v6375_v55 = vpop.f32.mrb[163].mxu0 }
0x169f   :  { %v5361_v2 = vmul.f32 -1.442695, %v4947_v57 }
0x16a1   :  { %6839 = vpow2.f32 %v5361_v2 }
0x16ab   :  { %v6840_v59 = vpop.eup %6839 }
0x16ac   :  { %v4953_v4 = vadd.f32 1.0, %v6840_v59 }
0x16ae   :  { %6841 = vrcp.f32 %v4953_v4 }
0x16b8   :  { %v6842_v63 = vpop.eup %6841 }
0x16b9   :  { %v4956_v8 = vmul.f32 %v6842_v63, %v4947_v57 }
0x16bb   :  { %6385 = vmatmul.mubr.msk.f32.vlgmr.msra.gmra.mrb[146].mxu1 %vm562_vm3, %v4956_v8 }
0x178e   :  { %v5035_v19 = vpop.f32.mrb[146].mxu1 }
0x178f   :  { %v5036_v14 = vadd.f32 %v5362_v15, %v5035_v19  ;;  %v6386_v6 = vpop.f32.mrb[147].mxu1 }
0x1791   :  { %v5364_v11 = vmul.f32 -1.442695, %v5036_v14 }
0x1793   :  { %6843 = vpow2.f32 %v5364_v11 }
0x179d   :  { %v6844_v9 = vpop.eup %6843 }
0x179e   :  { %v5042_v51 = vadd.f32 1.0, %v6844_v9 }
0x17a0   :  { %6845 = vrcp.f32 %v5042_v51 }
0x17aa   :  { %v6846_v10 = vpop.eup %6845 }
0x17ab   :  { %v5045_v23 = vmul.f32 %v6846_v10, %v5036_v14 }
0x17ad   :  { %v5051_v0 = vmul.f32 %v5365_v20, %v5045_v23 }
0x17af   :  { %v5052_v1 = vsel %vm562_vm3, %v5051_v0, 0.0  ;;  %vm5073_vm3 = vcmask 0  }
0x17b0   :  { %5053 = vadd.xlane.f32.xlu0 %v5052_v1 }
0x183d   :  { %v5054_v21 = vpop.xlane.xlu0 %5053 }
0x183e   :  { %v5060_v30 = vadd.f32 %v5366_v27, %v5054_v21 }
0x1840   :  { %v5065_v29 = vmul.f32 %v5064_v7, %v5060_v30 }
0x1842   :  { %v5066_v53 = vsel %vm19_vm0, %v5065_v29, 0.0 }
0x1843   :  { %v5067_v32 = vrot.slane %v5066_v53, 4 }
0x1845   :  { %v5068_v62 = vadd.f32 %v5067_v32, %v5066_v53 }
0x1847   :  { %v5069_v26 = vrot.slane %v5068_v62, 2 }
0x1849   :  { %v5070_v41 = vadd.f32 %v5069_v26, %v5068_v62 }
0x184b   :  { %v5071_v35 = vrot.slane %v5070_v41, 1 }
0x184d   :  { %v5072_v31 = vadd.f32 %v5071_v35, %v5070_v41 }
0x184f   :  { %5074 = vst.msk [vmem:[#allocation2] sm:$0x1] %vm5073_vm3, %v5072_v31 }
0x1850   :  { %6859 = shalt.err (!%p6856_p4)
}
0x1851   :  { %s6860_s27 = scalar_lea.hbm %s8394_s4, 16 }
0x1852   :  { %p6861_p5 = scmp.ne.s32.totalorder %s8394_s4, %s6860_s27  ;;  %p6864_p6 = scmp.lt.u32.totalorder %s6860_s27, %s8394_s4 }
0x1854   :  { %p6866_p7 = pnand %p6864_p6, %p6861_p5 }
0x1856   :  { %6869 = shalt.err (!%p6866_p7)
}
0x1857   :  { %5084 = dma.vmem_to_hbm [thread:$0]  %s5082_s19, 16, %s8394_s4, [#allocation3]  }
0x1858   :  { %6870 = dma.done.wait [#allocation3], 16  }
0x1859   :  { %6871 = vsyncadd [#allocation3], 4294967280 }
0x185a   :  { %5088 = vsyncpa [#allocation3], 1 }

</bundles_post_ra>
